<compile_context>
chip_gen: v5e
topology: v5e:2x2
jax: 0.10.0
libtpu: 0.0.40
codegen_flags: <defaults>
</compile_context>

<pallas_src>
from functools import partial

import numpy as np
import jax
import jax.numpy as jnp
from jax.experimental import pallas as pl
from jax.experimental.pallas import tpu as pltpu

# ----------------------------- small config (consistent with the module) -----
IMG_SIZE = (16, 16)
PATCH_SIZE = (4, 4)
IN_CHANS = 3
EMBED_DIM = 32
DEPTH = 2
NUM_HEADS = 4
DEC_EMBED_DIM = 32
DEC_DEPTH = 2
DEC_NUM_HEADS = 4
MLP_RATIO = 4.0
GRID = (IMG_SIZE[0] // PATCH_SIZE[0], IMG_SIZE[1] // PATCH_SIZE[1])
NUM_PATCHES = GRID[0] * GRID[1]
PATCH_DIM = PATCH_SIZE[0] * PATCH_SIZE[1] * IN_CHANS


# ----------------------------- GELU (exact erf if Mosaic supports it) --------
_GELU_IMPL = None


def _erf_gelu(v):
    return 0.5 * v * (1.0 + jax.lax.erf(v * 0.7071067811865475))


def _gelu(x):
    return _GELU_IMPL(x)


def _resolve_gelu():
    """Probe once at import time (hoisted out of the forward path)."""
    global _GELU_IMPL
    if _GELU_IMPL is not None:
        return

    def probe(x_ref, o_ref):
        o_ref[...] = _erf_gelu(x_ref[...])

    try:
        jax.block_until_ready(
            pl.pallas_call(
                probe, out_shape=jax.ShapeDtypeStruct((8, 128), jnp.float32)
            )(jnp.zeros((8, 128), jnp.float32))
        )
        _GELU_IMPL = _erf_gelu
    except Exception:
        # TODO(synk): exact erf-GELU not lowerable on this Mosaic build; tanh approximation fallback
        _GELU_IMPL = lambda v: jax.nn.gelu(v, approximate=True)


_resolve_gelu()


# ----------------------------- in-kernel helpers ------------------------------
def _ln(v, w, b, eps=1e-5):
    mu = jnp.mean(v, axis=-1, keepdims=True)
    var = jnp.mean((v - mu) ** 2, axis=-1, keepdims=True)
    return (v - mu) * jax.lax.rsqrt(var + eps) * w + b


def _block_compute(x, l1w, l1b, wqkv, bqkv, wpr, bpr, l2w, l2b, wf1, bf1, wf2, bf2, nh):
    """timm Block: x = x + Attn(LN1(x)); x = x + MLP(LN2(x)).  x: [S, D]."""
    S, D = x.shape
    hd = D // nh
    scale = float(hd) ** -0.5

    # ---- multi-head self-attention: heads batched into one dot_general each ----
    xn = _ln(x, l1w, l1b)
    qkv = jnp.dot(xn, wqkv, preferred_element_type=jnp.float32) + bqkv            # [S, 3D]
    q = jnp.stack([qkv[:, h * hd:(h + 1) * hd] for h in range(nh)], axis=0)        # [H, S, hd]
    k = jnp.stack([qkv[:, D + h * hd:D + (h + 1) * hd] for h in range(nh)], axis=0)
    v = jnp.stack([qkv[:, 2 * D + h * hd:2 * D + (h + 1) * hd] for h in range(nh)], axis=0)

    s = jnp.einsum("hqe,hke->hqk", q, k, preferred_element_type=jnp.float32) * scale
    s = s - jnp.max(s, axis=-1, keepdims=True)
    p = jnp.exp(s)
    p = p * pl.reciprocal(jnp.sum(p, axis=-1, keepdims=True), approx=True)         # softmax
    o = jnp.einsum("hqk,hke->hqe", p, v, preferred_element_type=jnp.float32)       # [H, S, hd]

    att = jnp.concatenate([o[h] for h in range(nh)], axis=-1)                      # [S, D]
    att = jnp.dot(att, wpr, preferred_element_type=jnp.float32) + bpr
    x = x + att

    # ---- MLP ----
    xn = _ln(x, l2w, l2b)
    h1 = _gelu(jnp.dot(xn, wf1, preferred_element_type=jnp.float32) + bf1)
    h2 = jnp.dot(h1, wf2, preferred_element_type=jnp.float32) + bf2
    return x + h2


# ----------------------------- fused encoder+decoder(+loss) kernel ------------
def _mae_kernel(xp_ref, ohk_ref, ohr_ref, msk_ref, tgt_ref,
                pw_ref, pb_ref, pos_ref, cls_ref,
                el1w, el1b, ewqkv, ebqkv, ewpr, ebpr, el2w, el2b, ewf1, ebf1, ewf2, ebf2,
                enw, enb,
                dw_ref, db_ref, mtk_ref, dpos_ref,
                dl1w, dl1b, dwqkv, dbqkv, dwpr, dbpr, dl2w, dl2b, dwf1, dbf1, dwf2, dbf2,
                dnw, dnb, prw_ref, prb_ref,
                pred_ref, num_ref, den_ref,
                *, enc_depth, dec_depth, enc_heads, dec_heads):
    # ---------------- encoder ----------------
    # PatchEmbed (conv with kernel==stride == matmul) + positional embedding
    x = jnp.dot(xp_ref[0], pw_ref[...], preferred_element_type=jnp.float32) + pb_ref[...]
    x = x + pos_ref[...]                                                   # [L, D]
    # random-masking keep-token gather, fused in-kernel as a one-hot matmul
    x = jnp.dot(ohk_ref[0], x, preferred_element_type=jnp.float32)         # [LK, D]
    # prepend (cls_token + pos_embed[:, :1])
    x = jnp.concatenate([cls_ref[...], x], axis=0)                         # [LK+1, D]
    for d in range(enc_depth):
        x = _block_compute(x, el1w[d], el1b[d], ewqkv[d], ebqkv[d], ewpr[d], ebpr[d],
                           el2w[d], el2b[d], ewf1[d], ebf1[d], ewf2[d], ebf2[d], enc_heads)
    lat = _ln(x, enw[...], enb[...])                                       # [LK+1, D]

    # ---------------- decoder ----------------
    L = ohr_ref.shape[1]
    DD = dw_ref.shape[1]
    y = jnp.dot(lat, dw_ref[...], preferred_element_type=jnp.float32) + db_ref[...]
    n_keep = y.shape[0] - 1
    y_cls = y[0:1, :]
    mtok = jnp.broadcast_to(mtk_ref[...], (L - n_keep, DD))
    y_seq = jnp.concatenate([y[1:, :], mtok], axis=0)                      # [L, DD]
    # unshuffle (torch.gather by ids_restore) as a one-hot matmul
    y_seq = jnp.dot(ohr_ref[0], y_seq, preferred_element_type=jnp.float32)
    y = jnp.concatenate([y_cls, y_seq], axis=0) + dpos_ref[...]            # [L+1, DD]
    for d in range(dec_depth):
        y = _block_compute(y, dl1w[d], dl1b[d], dwqkv[d], dbqkv[d], dwpr[d], dbpr[d],
                           dl2w[d], dl2b[d], dwf1[d], dbf1[d], dwf2[d], dbf2[d], dec_heads)
    y = _ln(y, dnw[...], dnb[...])
    pred = jnp.dot(y, prw_ref[...], preferred_element_type=jnp.float32) + prb_ref[...]
    pred = pred[1:, :]                                                     # drop cls: [L, P]
    pred_ref[0] = pred.astype(pred_ref.dtype)

    # masked-MSE partial sums for this batch row (norm_pix_loss=False)
    diff = pred - tgt_ref[0]
    m = msk_ref[0]                                                         # [L, 1]
    num_ref[0] = jnp.sum(diff * diff * m, keepdims=True) * (1.0 / pred.shape[1])
    den_ref[0] = jnp.sum(m, keepdims=True)


# ----------------------------- pallas_call wrapper ----------------------------
def _full_spec(shape):
    if len(shape) == 2:
        return pl.BlockSpec(shape, lambda i: (0, 0))
    return pl.BlockSpec(shape, lambda i: (0, 0, 0))


def _row_spec(shape):
    return pl.BlockSpec(shape, lambda i: (i,) + (0,) * (len(shape) - 1))


_BLOCK_KEYS = ("ln1_w", "ln1_b", "w_qkv_t", "b_qkv", "w_proj_t", "b_proj",
               "ln2_w", "ln2_b", "w_fc1_t", "b_fc1", "w_fc2_t", "b_fc2")


def _stack_blocks(blocks):
    return [jnp.stack([blk[k] for blk in blocks], axis=0) for k in _BLOCK_KEYS]


def pallas_mae(xp, oh_keep, oh_restore, mask3, target,
               patch_w_t, patch_b, pos_patch, cls_pos, enc_ws, norm_w, norm_b,
               dec_w, dec_b, mask_token, dec_pos, dec_ws, dnorm_w, dnorm_b,
               pred_w, pred_b, enc_heads, dec_heads):
    B, L, P = xp.shape
    LK = oh_keep.shape[1]
    enc_depth = enc_ws[0].shape[0]
    dec_depth = dec_ws[0].shape[0]

    in_specs = (
        [_row_spec((1, L, P)), _row_spec((1, LK, L)), _row_spec((1, L, L)),
         _row_spec((1, L, 1)), _row_spec((1, L, P)),
         _full_spec(patch_w_t.shape), _full_spec(patch_b.shape),
         _full_spec(pos_patch.shape), _full_spec(cls_pos.shape)]
        + [_full_spec(w.shape) for w in enc_ws]
        + [_full_spec(norm_w.shape), _full_spec(norm_b.shape),
           _full_spec(dec_w.shape), _full_spec(dec_b.shape),
           _full_spec(mask_token.shape), _full_spec(dec_pos.shape)]
        + [_full_spec(w.shape) for w in dec_ws]
        + [_full_spec(dnorm_w.shape), _full_spec(dnorm_b.shape),
           _full_spec(pred_w.shape), _full_spec(pred_b.shape)])

    out_shape = (jax.ShapeDtypeStruct((B, L, P), jnp.float32),
                 jax.ShapeDtypeStruct((B, 1, 1), jnp.float32),
                 jax.ShapeDtypeStruct((B, 1, 1), jnp.float32))
    out_specs = (_row_spec((1, L, P)), _row_spec((1, 1, 1)), _row_spec((1, 1, 1)))

    return pl.pallas_call(
        partial(_mae_kernel, enc_depth=enc_depth, dec_depth=dec_depth,
                enc_heads=enc_heads, dec_heads=dec_heads),
        out_shape=out_shape,
        grid=(B,),
        in_specs=in_specs,
        out_specs=out_specs,
        compiler_params=pltpu.CompilerParams(dimension_semantics=("parallel",)),
    )(xp, oh_keep, oh_restore, mask3, target,
      patch_w_t, patch_b, pos_patch, cls_pos, *enc_ws, norm_w, norm_b,
      dec_w, dec_b, mask_token, dec_pos, *dec_ws, dnorm_w, dnorm_b, pred_w, pred_b)


# ----------------------------- sin-cos positional embedding ------------------
def get_1d_sincos_pos_embed_from_grid(embed_dim, pos):
    omega = np.arange(embed_dim // 2, dtype=np.float64)
    omega /= embed_dim / 2.0
    omega = 1.0 / 10000 ** omega
    out = np.einsum("m,d->md", pos.reshape(-1), omega)
    return np.concatenate([np.sin(out), np.cos(out)], axis=1)


def get_2d_sincos_pos_embed(embed_dim, grid_size, cls_token=False):
    gh, gw = int(grid_size[0]), int(grid_size[1])
    grid_h = np.arange(gh, dtype=np.float64)
    grid_w = np.arange(gw, dtype=np.float64)
    grid = np.meshgrid(grid_w, grid_h)          # w goes first (MAE convention)
    grid = np.stack(grid, axis=0).reshape([2, 1, gh, gw])
    emb_h = get_1d_sincos_pos_embed_from_grid(embed_dim // 2, grid[0])
    emb_w = get_1d_sincos_pos_embed_from_grid(embed_dim // 2, grid[1])
    pos = np.concatenate([emb_h, emb_w], axis=1)
    if cls_token:
        pos = np.concatenate([np.zeros([1, embed_dim]), pos], axis=0)
    return pos


# ----------------------------- deterministic parameter init ------------------
def _xavier(key, fan_in, fan_out, shape):
    a = float(np.sqrt(6.0 / (fan_in + fan_out)))
    return jax.random.uniform(key, shape, jnp.float32, -a, a)


def init_block_params(key, dim, mlp_ratio):
    hidden = int(dim * mlp_ratio)
    ks = jax.random.split(key, 4)
    return {
        "ln1_w": jnp.ones((1, dim), jnp.float32),
        "ln1_b": jnp.zeros((1, dim), jnp.float32),
        "w_qkv_t": _xavier(ks[0], dim, 3 * dim, (dim, 3 * dim)),
        "b_qkv": jnp.zeros((1, 3 * dim), jnp.float32),
        "w_proj_t": _xavier(ks[1], dim, dim, (dim, dim)),
        "b_proj": jnp.zeros((1, dim), jnp.float32),
        "ln2_w": jnp.ones((1, dim), jnp.float32),
        "ln2_b": jnp.zeros((1, dim), jnp.float32),
        "w_fc1_t": _xavier(ks[2], dim, hidden, (dim, hidden)),
        "b_fc1": jnp.zeros((1, hidden), jnp.float32),
        "w_fc2_t": _xavier(ks[3], hidden, dim, (hidden, dim)),
        "b_fc2": jnp.zeros((1, dim), jnp.float32),
    }


def init_params(key):
    keys = jax.random.split(key, 8 + DEPTH + DEC_DEPTH)
    pos = get_2d_sincos_pos_embed(EMBED_DIM, GRID, cls_token=True)[None].astype(np.float32)
    dpos = get_2d_sincos_pos_embed(DEC_EMBED_DIM, GRID, cls_token=True)[None].astype(np.float32)
    return {
        "patch_w_t": _xavier(keys[0], PATCH_DIM, EMBED_DIM, (PATCH_DIM, EMBED_DIM)),
        "patch_b": jnp.zeros((1, EMBED_DIM), jnp.float32),
        "pos_embed": jnp.asarray(pos),
        "cls_token": 0.02 * jax.random.normal(keys[1], (1, 1, EMBED_DIM), jnp.float32),
        "norm_w": jnp.ones((1, EMBED_DIM), jnp.float32),
        "norm_b": jnp.zeros((1, EMBED_DIM), jnp.float32),
        "dec_embed_w_t": _xavier(keys[2], EMBED_DIM, DEC_EMBED_DIM, (EMBED_DIM, DEC_EMBED_DIM)),
        "dec_embed_b": jnp.zeros((1, DEC_EMBED_DIM), jnp.float32),
        "mask_token": 0.02 * jax.random.normal(keys[3], (1, 1, DEC_EMBED_DIM), jnp.float32),
        "dec_pos_embed": jnp.asarray(dpos),
        "dec_norm_w": jnp.ones((1, DEC_EMBED_DIM), jnp.float32),
        "dec_norm_b": jnp.zeros((1, DEC_EMBED_DIM), jnp.float32),
        "dec_pred_w_t": _xavier(keys[4], DEC_EMBED_DIM, PATCH_DIM, (DEC_EMBED_DIM, PATCH_DIM)),
        "dec_pred_b": jnp.zeros((1, PATCH_DIM), jnp.float32),
        "blocks": [init_block_params(keys[8 + i], EMBED_DIM, MLP_RATIO) for i in range(DEPTH)],
        "dec_blocks": [init_block_params(keys[8 + DEPTH + i], DEC_EMBED_DIM, MLP_RATIO)
                       for i in range(DEC_DEPTH)],
    }


# ----------------------------- glue: patch extraction ------------------------
def extract_patches_conv_order(imgs):
    # conv-equivalent flattening: per-patch layout (C, ph, pw), matching Conv2d weight flatten
    B, C, H, W = imgs.shape
    gh, gw = H // PATCH_SIZE[0], W // PATCH_SIZE[1]
    x = imgs.reshape(B, C, gh, PATCH_SIZE[0], gw, PATCH_SIZE[1])
    x = x.transpose(0, 2, 4, 1, 3, 5)
    return x.reshape(B, gh * gw, C * PATCH_SIZE[0] * PATCH_SIZE[1])


def patchify(imgs):
    # matches MaskedAutoencoderViT.patchify: per-patch layout (ph, pw, C)
    B, C, H, W = imgs.shape
    gh, gw = H // PATCH_SIZE[0], W // PATCH_SIZE[1]
    x = imgs.reshape(B, C, gh, PATCH_SIZE[0], gw, PATCH_SIZE[1])
    x = x.transpose(0, 2, 4, 3, 5, 1)
    return x.reshape(B, gh * gw, PATCH_SIZE[0] * PATCH_SIZE[1] * C)


# ----------------------------- full forward pass -----------------------------
@partial(jax.jit, static_argnames=("mask_ratio",))
def mae_forward(params, imgs, mask_ratio, mask_key):
    B = imgs.shape[0]
    L = NUM_PATCHES

    # ---- random unstructured masking: index generation only (argsort has no Pallas equivalent)
    len_keep = int(L * (1.0 - mask_ratio))
    noise = jax.random.uniform(mask_key, (B, L), jnp.float32)
    ids_shuffle = jnp.argsort(noise, axis=1)
    ids_restore = jnp.argsort(ids_shuffle, axis=1)
    ids_keep = ids_shuffle[:, :len_keep]
    mask = jnp.ones((B, L), jnp.float32).at[:, :len_keep].set(0.0)
    mask = jnp.take_along_axis(mask, ids_restore, axis=1)
    oh_keep = jax.nn.one_hot(ids_keep, L, dtype=jnp.float32)          # [B, LK, L]
    oh_restore = jax.nn.one_hot(ids_restore, L, dtype=jnp.float32)    # [B, L, L]

    # ---- tiny host-side layout plumbing (fused/folded by XLA under jit) ----
    xp = extract_patches_conv_order(imgs)                             # [B, L, P]
    target = patchify(imgs)                                           # [B, L, P]
    pos_patch = params["pos_embed"][0, 1:, :]                         # [L, D]
    cls_pos = params["cls_token"][0] + params["pos_embed"][0, :1, :]  # [1, D]
    enc_ws = _stack_blocks(params["blocks"])
    dec_ws = _stack_blocks(params["dec_blocks"])

    # ---- single fused encoder + decoder + masked-MSE kernel ----
    pred, num_p, den_p = pallas_mae(
        xp, oh_keep, oh_restore, mask[:, :, None], target,
        params["patch_w_t"], params["patch_b"], pos_patch, cls_pos, enc_ws,
        params["norm_w"], params["norm_b"],
        params["dec_embed_w_t"], params["dec_embed_b"],
        params["mask_token"][0], params["dec_pos_embed"][0],
        dec_ws, params["dec_norm_w"], params["dec_norm_b"],
        params["dec_pred_w_t"], params["dec_pred_b"], NUM_HEADS, DEC_NUM_HEADS)

    loss = jnp.sum(num_p) / jnp.maximum(jnp.sum(den_p), 1e-12)
    return loss, pred, mask


if __name__ == "__main__":
    key = jax.random.PRNGKey(0)
    pkey, ikey, mkey = jax.random.split(key, 3)
    params = init_params(pkey)
    imgs = jax.random.normal(ikey, (2, IN_CHANS, IMG_SIZE[0], IMG_SIZE[1]), jnp.float32)

    loss, pred, mask = mae_forward(params, imgs, mask_ratio=0.75, mask_key=mkey)
    jax.block_until_ready((loss, pred, mask))

    assert pred.shape == (2, NUM_PATCHES, PATCH_DIM)
    assert mask.shape == (2, NUM_PATCHES)
    assert bool(jnp.isfinite(loss))
    print("KERNEL_OK")
</pallas_src>

<mosaic_0001>
module attributes {stable_mosaic.version = 11 : i64} {
  func.func @probe(%arg0: memref<8x128xf32, #tpu.memory_space<vmem>>, %arg1: memref<8x128xf32, #tpu.memory_space<vmem>>) attributes {dimension_semantics = [], scalar_prefetch = 0 : i64, scratch_operands = 0 : i64, tpu.core_type = #tpu.core_type<tc>} {
    %c0 = arith.constant 0 : index
    %c0_0 = arith.constant 0 : index
    %0 = vector.load %arg0[%c0, %c0_0] : memref<8x128xf32, #tpu.memory_space<vmem>>, vector<8x128xf32>
    %cst = arith.constant 5.000000e-01 : f32
    %1 = vector.broadcast %cst : f32 to vector<8x128xf32>
    %2 = arith.mulf %1, %0 : vector<8x128xf32>
    %cst_1 = arith.constant 0.707106769 : f32
    %3 = vector.broadcast %cst_1 : f32 to vector<8x128xf32>
    %4 = arith.mulf %0, %3 : vector<8x128xf32>
    %5 = math.erf %4 : vector<8x128xf32>
    %cst_2 = arith.constant 1.000000e+00 : f32
    %6 = vector.broadcast %cst_2 : f32 to vector<8x128xf32>
    %7 = arith.addf %6, %5 : vector<8x128xf32>
    %8 = arith.mulf %2, %7 : vector<8x128xf32>
    %c0_3 = arith.constant 0 : index
    %c0_4 = arith.constant 0 : index
    %9 = vector.load %arg1[%c0_3, %c0_4] : memref<8x128xf32, #tpu.memory_space<vmem>>, vector<8x128xf32>
    tpu.vector_store %arg1[%c0_3, %c0_4], %8 {strides = array<i32>} : memref<8x128xf32, #tpu.memory_space<vmem>>, vector<8x128xf32>,
    return
  }
}

module attributes {stable_mosaic.version = 11 : i64} {
  func.func @_mae_kernel(%arg0: i32, %arg1: memref<1x16x48xf32, #tpu.memory_space<vmem>>, %arg2: memref<1x4x16xf32, #tpu.memory_space<vmem>>, %arg3: memref<1x16x16xf32, #tpu.memory_space<vmem>>, %arg4: memref<1x16x1xf32, #tpu.memory_space<vmem>>, %arg5: memref<1x16x48xf32, #tpu.memory_space<vmem>>, %arg6: memref<48x32xf32, #tpu.memory_space<vmem>>, %arg7: memref<1x32xf32, #tpu.memory_space<vmem>>, %arg8: memref<16x32xf32, #tpu.memory_space<vmem>>, %arg9: memref<1x32xf32, #tpu.memory_space<vmem>>, %arg10: memref<2x1x32xf32, #tpu.memory_space<vmem>>, %arg11: memref<2x1x32xf32, #tpu.memory_space<vmem>>, %arg12: memref<2x32x96xf32, #tpu.memory_space<vmem>>, %arg13: memref<2x1x96xf32, #tpu.memory_space<vmem>>, %arg14: memref<2x32x32xf32, #tpu.memory_space<vmem>>, %arg15: memref<2x1x32xf32, #tpu.memory_space<vmem>>, %arg16: memref<2x1x32xf32, #tpu.memory_space<vmem>>, %arg17: memref<2x1x32xf32, #tpu.memory_space<vmem>>, %arg18: memref<2x32x128xf32, #tpu.memory_space<vmem>>, %arg19: memref<2x1x128xf32, #tpu.memory_space<vmem>>, %arg20: memref<2x128x32xf32, #tpu.memory_space<vmem>>, %arg21: memref<2x1x32xf32, #tpu.memory_space<vmem>>, %arg22: memref<1x32xf32, #tpu.memory_space<vmem>>, %arg23: memref<1x32xf32, #tpu.memory_space<vmem>>, %arg24: memref<32x32xf32, #tpu.memory_space<vmem>>, %arg25: memref<1x32xf32, #tpu.memory_space<vmem>>, %arg26: memref<1x32xf32, #tpu.memory_space<vmem>>, %arg27: memref<17x32xf32, #tpu.memory_space<vmem>>, %arg28: memref<2x1x32xf32, #tpu.memory_space<vmem>>, %arg29: memref<2x1x32xf32, #tpu.memory_space<vmem>>, %arg30: memref<2x32x96xf32, #tpu.memory_space<vmem>>, %arg31: memref<2x1x96xf32, #tpu.memory_space<vmem>>, %arg32: memref<2x32x32xf32, #tpu.memory_space<vmem>>, %arg33: memref<2x1x32xf32, #tpu.memory_space<vmem>>, %arg34: memref<2x1x32xf32, #tpu.memory_space<vmem>>, %arg35: memref<2x1x32xf32, #tpu.memory_space<vmem>>, %arg36: memref<2x32x128xf32, #tpu.memory_space<vmem>>, %arg37: memref<2x1x128xf32, #tpu.memory_space<vmem>>, %arg38: memref<2x128x32xf32, #tpu.memory_space<vmem>>, %arg39: memref<2x1x32xf32, #tpu.memory_space<vmem>>, %arg40: memref<1x32xf32, #tpu.memory_space<vmem>>, %arg41: memref<1x32xf32, #tpu.memory_space<vmem>>, %arg42: memref<32x48xf32, #tpu.memory_space<vmem>>, %arg43: memref<1x48xf32, #tpu.memory_space<vmem>>, %arg44: memref<1x16x48xf32, #tpu.memory_space<vmem>>, %arg45: memref<1x1x1xf32, #tpu.memory_space<vmem>>, %arg46: memref<1x1x1xf32, #tpu.memory_space<vmem>>) attributes {dimension_semantics = [#tpu.dimension_semantics<parallel>], iteration_bounds = array<i64: 2>, scalar_prefetch = 0 : i64, scratch_operands = 0 : i64, tpu.core_type = #tpu.core_type<tc>, window_params = [{transform_indices = @transform_0, window_bounds = array<i64: 1, 16, 48>}, {transform_indices = @transform_1, window_bounds = array<i64: 1, 4, 16>}, {transform_indices = @transform_2, window_bounds = array<i64: 1, 16, 16>}, {transform_indices = @transform_3, window_bounds = array<i64: 1, 16, 1>}, {transform_indices = @transform_4, window_bounds = array<i64: 1, 16, 48>}, {pipeline_mode = #tpu.pipeline_mode<synchronous>, transform_indices = @transform_5, window_bounds = array<i64: 48, 32>}, {pipeline_mode = #tpu.pipeline_mode<synchronous>, transform_indices = @transform_6, window_bounds = array<i64: 1, 32>}, {pipeline_mode = #tpu.pipeline_mode<synchronous>, transform_indices = @transform_7, window_bounds = array<i64: 16, 32>}, {pipeline_mode = #tpu.pipeline_mode<synchronous>, transform_indices = @transform_8, window_bounds = array<i64: 1, 32>}, {pipeline_mode = #tpu.pipeline_mode<synchronous>, transform_indices = @transform_9, window_bounds = array<i64: 2, 1, 32>}, {pipeline_mode = #tpu.pipeline_mode<synchronous>, transform_indices = @transform_10, window_bounds = array<i64: 2, 1, 32>}, {pipeline_mode = #tpu.pipeline_mode<synchronous>, transform_indices = @transform_11, window_bounds = array<i64: 2, 32, 96>}, {pipeline_mode = #tpu.pipeline_mode<synchronous>, transform_indices = @transform_12, window_bounds = array<i64: 2, 1, 96>}, {pipeline_mode = #tpu.pipeline_mode<synchronous>, transform_indices = @transform_13, window_bounds = array<i64: 2, 32, 32>}, {pipeline_mode = #tpu.pipeline_mode<synchronous>, transform_indices = @transform_14, window_bounds = array<i64: 2, 1, 32>}, {pipeline_mode = #tpu.pipeline_mode<synchronous>, transform_indices = @transform_15, window_bounds = array<i64: 2, 1, 32>}, {pipeline_mode = #tpu.pipeline_mode<synchronous>, transform_indices = @transform_16, window_bounds = array<i64: 2, 1, 32>}, {pipeline_mode = #tpu.pipeline_mode<synchronous>, transform_indices = @transform_17, window_bounds = array<i64: 2, 32, 128>}, {pipeline_mode = #tpu.pipeline_mode<synchronous>, transform_indices = @transform_18, window_bounds = array<i64: 2, 1, 128>}, {pipeline_mode = #tpu.pipeline_mode<synchronous>, transform_indices = @transform_19, window_bounds = array<i64: 2, 128, 32>}, {pipeline_mode = #tpu.pipeline_mode<synchronous>, transform_indices = @transform_20, window_bounds = array<i64: 2, 1, 32>}, {pipeline_mode = #tpu.pipeline_mode<synchronous>, transform_indices = @transform_21, window_bounds = array<i64: 1, 32>}, {pipeline_mode = #tpu.pipeline_mode<synchronous>, transform_indices = @transform_22, window_bounds = array<i64: 1, 32>}, {pipeline_mode = #tpu.pipeline_mode<synchronous>, transform_indices = @transform_23, window_bounds = array<i64: 32, 32>}, {pipeline_mode = #tpu.pipeline_mode<synchronous>, transform_indices = @transform_24, window_bounds = array<i64: 1, 32>}, {pipeline_mode = #tpu.pipeline_mode<synchronous>, transform_indices = @transform_25, window_bounds = array<i64: 1, 32>}, {pipeline_mode = #tpu.pipeline_mode<synchronous>, transform_indices = @transform_26, window_bounds = array<i64: 17, 32>}, {pipeline_mode = #tpu.pipeline_mode<synchronous>, transform_indices = @transform_27, window_bounds = array<i64: 2, 1, 32>}, {pipeline_mode = #tpu.pipeline_mode<synchronous>, transform_indices = @transform_28, window_bounds = array<i64: 2, 1, 32>}, {pipeline_mode = #tpu.pipeline_mode<synchronous>, transform_indices = @transform_29, window_bounds = array<i64: 2, 32, 96>}, {pipeline_mode = #tpu.pipeline_mode<synchronous>, transform_indices = @transform_30, window_bounds = array<i64: 2, 1, 96>}, {pipeline_mode = #tpu.pipeline_mode<synchronous>, transform_indices = @transform_31, window_bounds = array<i64: 2, 32, 32>}, {pipeline_mode = #tpu.pipeline_mode<synchronous>, transform_indices = @transform_32, window_bounds = array<i64: 2, 1, 32>}, {pipeline_mode = #tpu.pipeline_mode<synchronous>, transform_indices = @transform_33, window_bounds = array<i64: 2, 1, 32>}, {pipeline_mode = #tpu.pipeline_mode<synchronous>, transform_indices = @transform_34, window_bounds = array<i64: 2, 1, 32>}, {pipeline_mode = #tpu.pipeline_mode<synchronous>, transform_indices = @transform_35, window_bounds = array<i64: 2, 32, 128>}, {pipeline_mode = #tpu.pipeline_mode<synchronous>, transform_indices = @transform_36, window_bounds = array<i64: 2, 1, 128>}, {pipeline_mode = #tpu.pipeline_mode<synchronous>, transform_indices = @transform_37, window_bounds = array<i64: 2, 128, 32>}, {pipeline_mode = #tpu.pipeline_mode<synchronous>, transform_indices = @transform_38, window_bounds = array<i64: 2, 1, 32>}, {pipeline_mode = #tpu.pipeline_mode<synchronous>, transform_indices = @transform_39, window_bounds = array<i64: 1, 32>}, {pipeline_mode = #tpu.pipeline_mode<synchronous>, transform_indices = @transform_40, window_bounds = array<i64: 1, 32>}, {pipeline_mode = #tpu.pipeline_mode<synchronous>, transform_indices = @transform_41, window_bounds = array<i64: 32, 48>}, {pipeline_mode = #tpu.pipeline_mode<synchronous>, transform_indices = @transform_42, window_bounds = array<i64: 1, 48>}, {transform_indices = @transform_43, window_bounds = array<i64: 1, 16, 48>}, {transform_indices = @transform_44, window_bounds = array<i64: 1, 1, 1>}, {transform_indices = @transform_45, window_bounds = array<i64: 1, 1, 1>}]} {
    %c0 = arith.constant 0 : index
    %c0_0 = arith.constant 0 : index
    %c0_1 = arith.constant 0 : index
    %0 = vector.load %arg1[%c0, %c0_0, %c0_1] : memref<1x16x48xf32, #tpu.memory_space<vmem>>, vector<1x16x48xf32>
    %1 = vector.shape_cast %0 : vector<1x16x48xf32> to vector<16x48xf32>
    %c0_2 = arith.constant 0 : index
    %c0_3 = arith.constant 0 : index
    %2 = vector.load %arg6[%c0_2, %c0_3] : memref<48x32xf32, #tpu.memory_space<vmem>>, vector<48x32xf32>
    %cst = arith.constant dense<0.000000e+00> : vector<16x32xf32>
    %3 = tpu.matmul %1, %2, %cst {dimension_numbers = #tpu.dot_dimension_numbers<[1], [0], [0], [1], [0, 0, 1, 1], [], []>} : vector<16x48xf32>, vector<48x32xf32>, vector<16x32xf32> -> vector<16x32xf32>
    %c0_4 = arith.constant 0 : index
    %c0_5 = arith.constant 0 : index
    %4 = vector.load %arg7[%c0_4, %c0_5] : memref<1x32xf32, #tpu.memory_space<vmem>>, vector<1x32xf32>
    %5 = vector.broadcast %4 : vector<1x32xf32> to vector<16x32xf32>
    %6 = arith.addf %3, %5 : vector<16x32xf32>
    %c0_6 = arith.constant 0 : index
    %c0_7 = arith.constant 0 : index
    %7 = vector.load %arg8[%c0_6, %c0_7] : memref<16x32xf32, #tpu.memory_space<vmem>>, vector<16x32xf32>
    %8 = arith.addf %6, %7 : vector<16x32xf32>
    %c0_8 = arith.constant 0 : index
    %c0_9 = arith.constant 0 : index
    %c0_10 = arith.constant 0 : index
    %9 = vector.load %arg2[%c0_8, %c0_9, %c0_10] : memref<1x4x16xf32, #tpu.memory_space<vmem>>, vector<1x4x16xf32>
    %10 = vector.shape_cast %9 : vector<1x4x16xf32> to vector<4x16xf32>
    %cst_11 = arith.constant dense<0.000000e+00> : vector<4x32xf32>
    %11 = tpu.matmul %10, %8, %cst_11 {dimension_numbers = #tpu.dot_dimension_numbers<[1], [0], [0], [1], [0, 0, 1, 1], [], []>} : vector<4x16xf32>, vector<16x32xf32>, vector<4x32xf32> -> vector<4x32xf32>
    %c0_12 = arith.constant 0 : index
    %c0_13 = arith.constant 0 : index
    %12 = vector.load %arg9[%c0_12, %c0_13] : memref<1x32xf32, #tpu.memory_space<vmem>>, vector<1x32xf32>
    %13 = tpu.concatenate %12, %11 in 0 : vector<1x32xf32>, vector<4x32xf32> -> vector<5x32xf32>
    %c0_14 = arith.constant 0 : index
    %c0_15 = arith.constant 0 : index
    %c0_16 = arith.constant 0 : index
    %14 = vector.load %arg10[%c0_14, %c0_15, %c0_16] : memref<2x1x32xf32, #tpu.memory_space<vmem>>, vector<1x1x32xf32>
    %15 = vector.shape_cast %14 : vector<1x1x32xf32> to vector<1x32xf32>
    %c0_17 = arith.constant 0 : index
    %c0_18 = arith.constant 0 : index
    %c0_19 = arith.constant 0 : index
    %16 = vector.load %arg11[%c0_17, %c0_18, %c0_19] : memref<2x1x32xf32, #tpu.memory_space<vmem>>, vector<1x1x32xf32>
    %17 = vector.shape_cast %16 : vector<1x1x32xf32> to vector<1x32xf32>
    %c0_20 = arith.constant 0 : index
    %c0_21 = arith.constant 0 : index
    %c0_22 = arith.constant 0 : index
    %18 = vector.load %arg12[%c0_20, %c0_21, %c0_22] : memref<2x32x96xf32, #tpu.memory_space<vmem>>, vector<1x32x96xf32>
    %19 = vector.shape_cast %18 : vector<1x32x96xf32> to vector<32x96xf32>
    %c0_23 = arith.constant 0 : index
    %c0_24 = arith.constant 0 : index
    %c0_25 = arith.constant 0 : index
    %20 = vector.load %arg13[%c0_23, %c0_24, %c0_25] : memref<2x1x96xf32, #tpu.memory_space<vmem>>, vector<1x1x96xf32>
    %21 = vector.shape_cast %20 : vector<1x1x96xf32> to vector<1x96xf32>
    %c0_26 = arith.constant 0 : index
    %c0_27 = arith.constant 0 : index
    %c0_28 = arith.constant 0 : index
    %22 = vector.load %arg14[%c0_26, %c0_27, %c0_28] : memref<2x32x32xf32, #tpu.memory_space<vmem>>, vector<1x32x32xf32>
    %23 = vector.shape_cast %22 : vector<1x32x32xf32> to vector<32x32xf32>
    %c0_29 = arith.constant 0 : index
    %c0_30 = arith.constant 0 : index
    %c0_31 = arith.constant 0 : index
    %24 = vector.load %arg15[%c0_29, %c0_30, %c0_31] : memref<2x1x32xf32, #tpu.memory_space<vmem>>, vector<1x1x32xf32>
    %25 = vector.shape_cast %24 : vector<1x1x32xf32> to vector<1x32xf32>
    %c0_32 = arith.constant 0 : index
    %c0_33 = arith.constant 0 : index
    %c0_34 = arith.constant 0 : index
    %26 = vector.load %arg16[%c0_32, %c0_33, %c0_34] : memref<2x1x32xf32, #tpu.memory_space<vmem>>, vector<1x1x32xf32>
    %27 = vector.shape_cast %26 : vector<1x1x32xf32> to vector<1x32xf32>
    %c0_35 = arith.constant 0 : index
    %c0_36 = arith.constant 0 : index
    %c0_37 = arith.constant 0 : index
    %28 = vector.load %arg17[%c0_35, %c0_36, %c0_37] : memref<2x1x32xf32, #tpu.memory_space<vmem>>, vector<1x1x32xf32>
    %29 = vector.shape_cast %28 : vector<1x1x32xf32> to vector<1x32xf32>
    %c0_38 = arith.constant 0 : index
    %c0_39 = arith.constant 0 : index
    %c0_40 = arith.constant 0 : index
    %30 = vector.load %arg18[%c0_38, %c0_39, %c0_40] : memref<2x32x128xf32, #tpu.memory_space<vmem>>, vector<1x32x128xf32>
    %31 = vector.shape_cast %30 : vector<1x32x128xf32> to vector<32x128xf32>
    %c0_41 = arith.constant 0 : index
    %c0_42 = arith.constant 0 : index
    %c0_43 = arith.constant 0 : index
    %32 = vector.load %arg19[%c0_41, %c0_42, %c0_43] : memref<2x1x128xf32, #tpu.memory_space<vmem>>, vector<1x1x128xf32>
    %33 = vector.shape_cast %32 : vector<1x1x128xf32> to vector<1x128xf32>
    %c0_44 = arith.constant 0 : index
    %c0_45 = arith.constant 0 : index
    %c0_46 = arith.constant 0 : index
    %34 = vector.load %arg20[%c0_44, %c0_45, %c0_46] : memref<2x128x32xf32, #tpu.memory_space<vmem>>, vector<1x128x32xf32>
    %35 = vector.shape_cast %34 : vector<1x128x32xf32> to vector<128x32xf32>
    %c0_47 = arith.constant 0 : index
    %c0_48 = arith.constant 0 : index
    %c0_49 = arith.constant 0 : index
    %36 = vector.load %arg21[%c0_47, %c0_48, %c0_49] : memref<2x1x32xf32, #tpu.memory_space<vmem>>, vector<1x1x32xf32>
    %37 = vector.shape_cast %36 : vector<1x1x32xf32> to vector<1x32xf32>
    %cst_50 = arith.constant dense<0.000000e+00> : vector<5xf32>
    %38 = vector.multi_reduction <add>, %13, %cst_50 [1] : vector<5x32xf32> to vector<5xf32>
    %39 = vector.shape_cast %38 : vector<5xf32> to vector<5x1xf32>
    %cst_51 = arith.constant 3.200000e+01 : f32
    %40 = vector.broadcast %cst_51 : f32 to vector<5x1xf32>
    %41 = arith.divf %39, %40 : vector<5x1xf32>
    %42 = vector.broadcast %41 : vector<5x1xf32> to vector<5x32xf32>
    %43 = arith.subf %13, %42 : vector<5x32xf32>
    %44 = arith.mulf %43, %43 : vector<5x32xf32>
    %cst_52 = arith.constant dense<0.000000e+00> : vector<5xf32>
    %45 = vector.multi_reduction <add>, %44, %cst_52 [1] : vector<5x32xf32> to vector<5xf32>
    %46 = vector.shape_cast %45 : vector<5xf32> to vector<5x1xf32>
    %cst_53 = arith.constant 3.200000e+01 : f32
    %47 = vector.broadcast %cst_53 : f32 to vector<5x1xf32>
    %48 = arith.divf %46, %47 : vector<5x1xf32>
    %49 = vector.broadcast %41 : vector<5x1xf32> to vector<5x32xf32>
    %50 = arith.subf %13, %49 : vector<5x32xf32>
    %cst_54 = arith.constant 9.99999974E-6 : f32
    %51 = vector.broadcast %cst_54 : f32 to vector<5x1xf32>
    %52 = arith.addf %48, %51 : vector<5x1xf32>
    %53 = math.rsqrt %52 : vector<5x1xf32>
    %54 = vector.broadcast %53 : vector<5x1xf32> to vector<5x32xf32>
    %55 = arith.mulf %50, %54 : vector<5x32xf32>
    %56 = vector.broadcast %15 : vector<1x32xf32> to vector<5x32xf32>
    %57 = arith.mulf %55, %56 : vector<5x32xf32>
    %58 = vector.broadcast %17 : vector<1x32xf32> to vector<5x32xf32>
    %59 = arith.addf %57, %58 : vector<5x32xf32>
    %cst_55 = arith.constant dense<0.000000e+00> : vector<5x96xf32>
    %60 = tpu.matmul %59, %19, %cst_55 {dimension_numbers = #tpu.dot_dimension_numbers<[1], [0], [0], [1], [0, 0, 1, 1], [], []>} : vector<5x32xf32>, vector<32x96xf32>, vector<5x96xf32> -> vector<5x96xf32>
    %61 = vector.broadcast %21 : vector<1x96xf32> to vector<5x96xf32>
    %62 = arith.addf %60, %61 : vector<5x96xf32>
    %63 = vector.extract_strided_slice %62 {offsets = [0, 0], sizes = [5, 8], strides = [1, 1]} : vector<5x96xf32> to vector<5x8xf32>
    %64 = vector.extract_strided_slice %62 {offsets = [0, 8], sizes = [5, 8], strides = [1, 1]} : vector<5x96xf32> to vector<5x8xf32>
    %65 = vector.extract_strided_slice %62 {offsets = [0, 16], sizes = [5, 8], strides = [1, 1]} : vector<5x96xf32> to vector<5x8xf32>
    %66 = vector.extract_strided_slice %62 {offsets = [0, 24], sizes = [5, 8], strides = [1, 1]} : vector<5x96xf32> to vector<5x8xf32>
    %67 = vector.shape_cast %63 : vector<5x8xf32> to vector<1x5x8xf32>
    %68 = vector.shape_cast %64 : vector<5x8xf32> to vector<1x5x8xf32>
    %69 = vector.shape_cast %65 : vector<5x8xf32> to vector<1x5x8xf32>
    %70 = vector.shape_cast %66 : vector<5x8xf32> to vector<1x5x8xf32>
    %71 = tpu.concatenate %67, %68, %69, %70 in 0 : vector<1x5x8xf32>, vector<1x5x8xf32>, vector<1x5x8xf32>, vector<1x5x8xf32> -> vector<4x5x8xf32>
    %72 = vector.extract_strided_slice %62 {offsets = [0, 32], sizes = [5, 8], strides = [1, 1]} : vector<5x96xf32> to vector<5x8xf32>
    %73 = vector.extract_strided_slice %62 {offsets = [0, 40], sizes = [5, 8], strides = [1, 1]} : vector<5x96xf32> to vector<5x8xf32>
    %74 = vector.extract_strided_slice %62 {offsets = [0, 48], sizes = [5, 8], strides = [1, 1]} : vector<5x96xf32> to vector<5x8xf32>
    %75 = vector.extract_strided_slice %62 {offsets = [0, 56], sizes = [5, 8], strides = [1, 1]} : vector<5x96xf32> to vector<5x8xf32>
    %76 = vector.shape_cast %72 : vector<5x8xf32> to vector<1x5x8xf32>
    %77 = vector.shape_cast %73 : vector<5x8xf32> to vector<1x5x8xf32>
    %78 = vector.shape_cast %74 : vector<5x8xf32> to vector<1x5x8xf32>
    %79 = vector.shape_cast %75 : vector<5x8xf32> to vector<1x5x8xf32>
    %80 = tpu.concatenate %76, %77, %78, %79 in 0 : vector<1x5x8xf32>, vector<1x5x8xf32>, vector<1x5x8xf32>, vector<1x5x8xf32> -> vector<4x5x8xf32>
    %81 = vector.extract_strided_slice %62 {offsets = [0, 64], sizes = [5, 8], strides = [1, 1]} : vector<5x96xf32> to vector<5x8xf32>
    %82 = vector.extract_strided_slice %62 {offsets = [0, 72], sizes = [5, 8], strides = [1, 1]} : vector<5x96xf32> to vector<5x8xf32>
    %83 = vector.extract_strided_slice %62 {offsets = [0, 80], sizes = [5, 8], strides = [1, 1]} : vector<5x96xf32> to vector<5x8xf32>
    %84 = vector.extract_strided_slice %62 {offsets = [0, 88], sizes = [5, 8], strides = [1, 1]} : vector<5x96xf32> to vector<5x8xf32>
    %85 = vector.shape_cast %81 : vector<5x8xf32> to vector<1x5x8xf32>
    %86 = vector.shape_cast %82 : vector<5x8xf32> to vector<1x5x8xf32>
    %87 = vector.shape_cast %83 : vector<5x8xf32> to vector<1x5x8xf32>
    %88 = vector.shape_cast %84 : vector<5x8xf32> to vector<1x5x8xf32>
    %89 = tpu.concatenate %85, %86, %87, %88 in 0 : vector<1x5x8xf32>, vector<1x5x8xf32>, vector<1x5x8xf32>, vector<1x5x8xf32> -> vector<4x5x8xf32>
    "tpu.trace_start"() <{level = 10 : i32, message = "hqe,hke->hqk"}> : () -> ()
    %cst_56 = arith.constant dense<0.000000e+00> : vector<4x5x5xf32>
    %90 = tpu.matmul %71, %80, %cst_56 {dimension_numbers = #tpu.dot_dimension_numbers<[2], [2], [1], [1], [0, 0, 0, 1, 1, 1], [0], [0]>} : vector<4x5x8xf32>, vector<4x5x8xf32>, vector<4x5x5xf32> -> vector<4x5x5xf32>
    "tpu.trace_stop"() : () -> ()
    %cst_57 = arith.constant 0.353553385 : f32
    %91 = vector.broadcast %cst_57 : f32 to vector<4x5x5xf32>
    %92 = arith.mulf %90, %91 : vector<4x5x5xf32>
    %cst_58 = arith.constant dense<0xFF800000> : vector<4x5xf32>
    %93 = vector.multi_reduction <maximumf>, %92, %cst_58 [2] : vector<4x5x5xf32> to vector<4x5xf32>
    %94 = vector.shape_cast %93 : vector<4x5xf32> to vector<4x5x1xf32>
    %95 = vector.broadcast %94 : vector<4x5x1xf32> to vector<4x5x5xf32>
    %96 = arith.subf %92, %95 : vector<4x5x5xf32>
    %97 = math.exp %96 : vector<4x5x5xf32>
    %cst_59 = arith.constant dense<0.000000e+00> : vector<4x5xf32>
    %98 = vector.multi_reduction <add>, %97, %cst_59 [2] : vector<4x5x5xf32> to vector<4x5xf32>
    %99 = vector.shape_cast %98 : vector<4x5xf32> to vector<4x5x1xf32>
    %100 = tpu.reciprocal %99 {approx = true} : vector<4x5x1xf32> -> vector<4x5x1xf32>
    %101 = vector.broadcast %100 : vector<4x5x1xf32> to vector<4x5x5xf32>
    %102 = arith.mulf %97, %101 : vector<4x5x5xf32>
    "tpu.trace_start"() <{level = 10 : i32, message = "hqk,hke->hqe"}> : () -> ()
    %cst_60 = arith.constant dense<0.000000e+00> : vector<4x5x8xf32>
    %103 = tpu.matmul %102, %89, %cst_60 {dimension_numbers = #tpu.dot_dimension_numbers<[2], [1], [1], [2], [0, 0, 0, 1, 1, 2], [0], [0]>} : vector<4x5x5xf32>, vector<4x5x8xf32>, vector<4x5x8xf32> -> vector<4x5x8xf32>
    "tpu.trace_stop"() : () -> ()
    %104 = vector.extract_strided_slice %103 {offsets = [0, 0, 0], sizes = [1, 5, 8], strides = [1, 1, 1]} : vector<4x5x8xf32> to vector<1x5x8xf32>
    %105 = vector.shape_cast %104 : vector<1x5x8xf32> to vector<5x8xf32>
    %106 = vector.extract_strided_slice %103 {offsets = [1, 0, 0], sizes = [1, 5, 8], strides = [1, 1, 1]} : vector<4x5x8xf32> to vector<1x5x8xf32>
    %107 = vector.shape_cast %106 : vector<1x5x8xf32> to vector<5x8xf32>
    %108 = vector.extract_strided_slice %103 {offsets = [2, 0, 0], sizes = [1, 5, 8], strides = [1, 1, 1]} : vector<4x5x8xf32> to vector<1x5x8xf32>
    %109 = vector.shape_cast %108 : vector<1x5x8xf32> to vector<5x8xf32>
    %110 = vector.extract_strided_slice %103 {offsets = [3, 0, 0], sizes = [1, 5, 8], strides = [1, 1, 1]} : vector<4x5x8xf32> to vector<1x5x8xf32>
    %111 = vector.shape_cast %110 : vector<1x5x8xf32> to vector<5x8xf32>
    %112 = tpu.concatenate %105, %107, %109, %111 in 1 : vector<5x8xf32>, vector<5x8xf32>, vector<5x8xf32>, vector<5x8xf32> -> vector<5x32xf32>
    %cst_61 = arith.constant dense<0.000000e+00> : vector<5x32xf32>
    %113 = tpu.matmul %112, %23, %cst_61 {dimension_numbers = #tpu.dot_dimension_numbers<[1], [0], [0], [1], [0, 0, 1, 1], [], []>} : vector<5x32xf32>, vector<32x32xf32>, vector<5x32xf32> -> vector<5x32xf32>
    %114 = vector.broadcast %25 : vector<1x32xf32> to vector<5x32xf32>
    %115 = arith.addf %113, %114 : vector<5x32xf32>
    %116 = arith.addf %13, %115 : vector<5x32xf32>
    %cst_62 = arith.constant dense<0.000000e+00> : vector<5xf32>
    %117 = vector.multi_reduction <add>, %116, %cst_62 [1] : vector<5x32xf32> to vector<5xf32>
    %118 = vector.shape_cast %117 : vector<5xf32> to vector<5x1xf32>
    %cst_63 = arith.constant 3.200000e+01 : f32
    %119 = vector.broadcast %cst_63 : f32 to vector<5x1xf32>
    %120 = arith.divf %118, %119 : vector<5x1xf32>
    %121 = vector.broadcast %120 : vector<5x1xf32> to vector<5x32xf32>
    %122 = arith.subf %116, %121 : vector<5x32xf32>
    %123 = arith.mulf %122, %122 : vector<5x32xf32>
    %cst_64 = arith.constant dense<0.000000e+00> : vector<5xf32>
    %124 = vector.multi_reduction <add>, %123, %cst_64 [1] : vector<5x32xf32> to vector<5xf32>
    %125 = vector.shape_cast %124 : vector<5xf32> to vector<5x1xf32>
    %cst_65 = arith.constant 3.200000e+01 : f32
    %126 = vector.broadcast %cst_65 : f32 to vector<5x1xf32>
    %127 = arith.divf %125, %126 : vector<5x1xf32>
    %128 = vector.broadcast %120 : vector<5x1xf32> to vector<5x32xf32>
    %129 = arith.subf %116, %128 : vector<5x32xf32>
    %cst_66 = arith.constant 9.99999974E-6 : f32
    %130 = vector.broadcast %cst_66 : f32 to vector<5x1xf32>
    %131 = arith.addf %127, %130 : vector<5x1xf32>
    %132 = math.rsqrt %131 : vector<5x1xf32>
    %133 = vector.broadcast %132 : vector<5x1xf32> to vector<5x32xf32>
    %134 = arith.mulf %129, %133 : vector<5x32xf32>
    %135 = vector.broadcast %27 : vector<1x32xf32> to vector<5x32xf32>
    %136 = arith.mulf %134, %135 : vector<5x32xf32>
    %137 = vector.broadcast %29 : vector<1x32xf32> to vector<5x32xf32>
    %138 = arith.addf %136, %137 : vector<5x32xf32>
    %cst_67 = arith.constant dense<0.000000e+00> : vector<5x128xf32>
    %139 = tpu.matmul %138, %31, %cst_67 {dimension_numbers = #tpu.dot_dimension_numbers<[1], [0], [0], [1], [0, 0, 1, 1], [], []>} : vector<5x32xf32>, vector<32x128xf32>, vector<5x128xf32> -> vector<5x128xf32>
    %140 = vector.broadcast %33 : vector<1x128xf32> to vector<5x128xf32>
    %141 = arith.addf %139, %140 : vector<5x128xf32>
    %142 = arith.mulf %141, %141 : vector<5x128xf32>
    %143 = arith.mulf %141, %142 : vector<5x128xf32>
    %cst_68 = arith.constant 4.471500e-02 : f32
    %144 = vector.broadcast %cst_68 : f32 to vector<5x128xf32>
    %145 = arith.mulf %144, %143 : vector<5x128xf32>
    %146 = arith.addf %141, %145 : vector<5x128xf32>
    %cst_69 = arith.constant 0.797884583 : f32
    %147 = vector.broadcast %cst_69 : f32 to vector<5x128xf32>
    %148 = arith.mulf %147, %146 : vector<5x128xf32>
    %149 = math.tanh %148 : vector<5x128xf32>
    %cst_70 = arith.constant 1.000000e+00 : f32
    %150 = vector.broadcast %cst_70 : f32 to vector<5x128xf32>
    %151 = arith.addf %150, %149 : vector<5x128xf32>
    %cst_71 = arith.constant 5.000000e-01 : f32
    %152 = vector.broadcast %cst_71 : f32 to vector<5x128xf32>
    %153 = arith.mulf %152, %151 : vector<5x128xf32>
    %154 = arith.mulf %141, %153 : vector<5x128xf32>
    %cst_72 = arith.constant dense<0.000000e+00> : vector<5x32xf32>
    %155 = tpu.matmul %154, %35, %cst_72 {dimension_numbers = #tpu.dot_dimension_numbers<[1], [0], [0], [1], [0, 0, 1, 1], [], []>} : vector<5x128xf32>, vector<128x32xf32>, vector<5x32xf32> -> vector<5x32xf32>
    %156 = vector.broadcast %37 : vector<1x32xf32> to vector<5x32xf32>
    %157 = arith.addf %155, %156 : vector<5x32xf32>
    %158 = arith.addf %116, %157 : vector<5x32xf32>
    %c1 = arith.constant 1 : index
    %c0_73 = arith.constant 0 : index
    %c0_74 = arith.constant 0 : index
    %159 = vector.load %arg10[%c1, %c0_73, %c0_74] : memref<2x1x32xf32, #tpu.memory_space<vmem>>, vector<1x1x32xf32>
    %160 = vector.shape_cast %159 : vector<1x1x32xf32> to vector<1x32xf32>
    %c1_75 = arith.constant 1 : index
    %c0_76 = arith.constant 0 : index
    %c0_77 = arith.constant 0 : index
    %161 = vector.load %arg11[%c1_75, %c0_76, %c0_77] : memref<2x1x32xf32, #tpu.memory_space<vmem>>, vector<1x1x32xf32>
    %162 = vector.shape_cast %161 : vector<1x1x32xf32> to vector<1x32xf32>
    %c1_78 = arith.constant 1 : index
    %c0_79 = arith.constant 0 : index
    %c0_80 = arith.constant 0 : index
    %163 = vector.load %arg12[%c1_78, %c0_79, %c0_80] : memref<2x32x96xf32, #tpu.memory_space<vmem>>, vector<1x32x96xf32>
    %164 = vector.shape_cast %163 : vector<1x32x96xf32> to vector<32x96xf32>
    %c1_81 = arith.constant 1 : index
    %c0_82 = arith.constant 0 : index
    %c0_83 = arith.constant 0 : index
    %165 = vector.load %arg13[%c1_81, %c0_82, %c0_83] : memref<2x1x96xf32, #tpu.memory_space<vmem>>, vector<1x1x96xf32>
    %166 = vector.shape_cast %165 : vector<1x1x96xf32> to vector<1x96xf32>
    %c1_84 = arith.constant 1 : index
    %c0_85 = arith.constant 0 : index
    %c0_86 = arith.constant 0 : index
    %167 = vector.load %arg14[%c1_84, %c0_85, %c0_86] : memref<2x32x32xf32, #tpu.memory_space<vmem>>, vector<1x32x32xf32>
    %168 = vector.shape_cast %167 : vector<1x32x32xf32> to vector<32x32xf32>
    %c1_87 = arith.constant 1 : index
    %c0_88 = arith.constant 0 : index
    %c0_89 = arith.constant 0 : index
    %169 = vector.load %arg15[%c1_87, %c0_88, %c0_89] : memref<2x1x32xf32, #tpu.memory_space<vmem>>, vector<1x1x32xf32>
    %170 = vector.shape_cast %169 : vector<1x1x32xf32> to vector<1x32xf32>
    %c1_90 = arith.constant 1 : index
    %c0_91 = arith.constant 0 : index
    %c0_92 = arith.constant 0 : index
    %171 = vector.load %arg16[%c1_90, %c0_91, %c0_92] : memref<2x1x32xf32, #tpu.memory_space<vmem>>, vector<1x1x32xf32>
    %172 = vector.shape_cast %171 : vector<1x1x32xf32> to vector<1x32xf32>
    %c1_93 = arith.constant 1 : index
    %c0_94 = arith.constant 0 : index
    %c0_95 = arith.constant 0 : index
    %173 = vector.load %arg17[%c1_93, %c0_94, %c0_95] : memref<2x1x32xf32, #tpu.memory_space<vmem>>, vector<1x1x32xf32>
    %174 = vector.shape_cast %173 : vector<1x1x32xf32> to vector<1x32xf32>
    %c1_96 = arith.constant 1 : index
    %c0_97 = arith.constant 0 : index
    %c0_98 = arith.constant 0 : index
    %175 = vector.load %arg18[%c1_96, %c0_97, %c0_98] : memref<2x32x128xf32, #tpu.memory_space<vmem>>, vector<1x32x128xf32>
    %176 = vector.shape_cast %175 : vector<1x32x128xf32> to vector<32x128xf32>
    %c1_99 = arith.constant 1 : index
    %c0_100 = arith.constant 0 : index
    %c0_101 = arith.constant 0 : index
    %177 = vector.load %arg19[%c1_99, %c0_100, %c0_101] : memref<2x1x128xf32, #tpu.memory_space<vmem>>, vector<1x1x128xf32>
    %178 = vector.shape_cast %177 : vector<1x1x128xf32> to vector<1x128xf32>
    %c1_102 = arith.constant 1 : index
    %c0_103 = arith.constant 0 : index
    %c0_104 = arith.constant 0 : index
    %179 = vector.load %arg20[%c1_102, %c0_103, %c0_104] : memref<2x128x32xf32, #tpu.memory_space<vmem>>, vector<1x128x32xf32>
    %180 = vector.shape_cast %179 : vector<1x128x32xf32> to vector<128x32xf32>
    %c1_105 = arith.constant 1 : index
    %c0_106 = arith.constant 0 : index
    %c0_107 = arith.constant 0 : index
    %181 = vector.load %arg21[%c1_105, %c0_106, %c0_107] : memref<2x1x32xf32, #tpu.memory_space<vmem>>, vector<1x1x32xf32>
    %182 = vector.shape_cast %181 : vector<1x1x32xf32> to vector<1x32xf32>
    %cst_108 = arith.constant dense<0.000000e+00> : vector<5xf32>
    %183 = vector.multi_reduction <add>, %158, %cst_108 [1] : vector<5x32xf32> to vector<5xf32>
    %184 = vector.shape_cast %183 : vector<5xf32> to vector<5x1xf32>
    %cst_109 = arith.constant 3.200000e+01 : f32
    %185 = vector.broadcast %cst_109 : f32 to vector<5x1xf32>
    %186 = arith.divf %184, %185 : vector<5x1xf32>
    %187 = vector.broadcast %186 : vector<5x1xf32> to vector<5x32xf32>
    %188 = arith.subf %158, %187 : vector<5x32xf32>
    %189 = arith.mulf %188, %188 : vector<5x32xf32>
    %cst_110 = arith.constant dense<0.000000e+00> : vector<5xf32>
    %190 = vector.multi_reduction <add>, %189, %cst_110 [1] : vector<5x32xf32> to vector<5xf32>
    %191 = vector.shape_cast %190 : vector<5xf32> to vector<5x1xf32>
    %cst_111 = arith.constant 3.200000e+01 : f32
    %192 = vector.broadcast %cst_111 : f32 to vector<5x1xf32>
    %193 = arith.divf %191, %192 : vector<5x1xf32>
    %194 = vector.broadcast %186 : vector<5x1xf32> to vector<5x32xf32>
    %195 = arith.subf %158, %194 : vector<5x32xf32>
    %cst_112 = arith.constant 9.99999974E-6 : f32
    %196 = vector.broadcast %cst_112 : f32 to vector<5x1xf32>
    %197 = arith.addf %193, %196 : vector<5x1xf32>
    %198 = math.rsqrt %197 : vector<5x1xf32>
    %199 = vector.broadcast %198 : vector<5x1xf32> to vector<5x32xf32>
    %200 = arith.mulf %195, %199 : vector<5x32xf32>
    %201 = vector.broadcast %160 : vector<1x32xf32> to vector<5x32xf32>
    %202 = arith.mulf %200, %201 : vector<5x32xf32>
    %203 = vector.broadcast %162 : vector<1x32xf32> to vector<5x32xf32>
    %204 = arith.addf %202, %203 : vector<5x32xf32>
    %cst_113 = arith.constant dense<0.000000e+00> : vector<5x96xf32>
    %205 = tpu.matmul %204, %164, %cst_113 {dimension_numbers = #tpu.dot_dimension_numbers<[1], [0], [0], [1], [0, 0, 1, 1], [], []>} : vector<5x32xf32>, vector<32x96xf32>, vector<5x96xf32> -> vector<5x96xf32>
    %206 = vector.broadcast %166 : vector<1x96xf32> to vector<5x96xf32>
    %207 = arith.addf %205, %206 : vector<5x96xf32>
    %208 = vector.extract_strided_slice %207 {offsets = [0, 0], sizes = [5, 8], strides = [1, 1]} : vector<5x96xf32> to vector<5x8xf32>
    %209 = vector.extract_strided_slice %207 {offsets = [0, 8], sizes = [5, 8], strides = [1, 1]} : vector<5x96xf32> to vector<5x8xf32>
    %210 = vector.extract_strided_slice %207 {offsets = [0, 16], sizes = [5, 8], strides = [1, 1]} : vector<5x96xf32> to vector<5x8xf32>
    %211 = vector.extract_strided_slice %207 {offsets = [0, 24], sizes = [5, 8], strides = [1, 1]} : vector<5x96xf32> to vector<5x8xf32>
    %212 = vector.shape_cast %208 : vector<5x8xf32> to vector<1x5x8xf32>
    %213 = vector.shape_cast %209 : vector<5x8xf32> to vector<1x5x8xf32>
    %214 = vector.shape_cast %210 : vector<5x8xf32> to vector<1x5x8xf32>
    %215 = vector.shape_cast %211 : vector<5x8xf32> to vector<1x5x8xf32>
    %216 = tpu.concatenate %212, %213, %214, %215 in 0 : vector<1x5x8xf32>, vector<1x5x8xf32>, vector<1x5x8xf32>, vector<1x5x8xf32> -> vector<4x5x8xf32>
    %217 = vector.extract_strided_slice %207 {offsets = [0, 32], sizes = [5, 8], strides = [1, 1]} : vector<5x96xf32> to vector<5x8xf32>
    %218 = vector.extract_strided_slice %207 {offsets = [0, 40], sizes = [5, 8], strides = [1, 1]} : vector<5x96xf32> to vector<5x8xf32>
    %219 = vector.extract_strided_slice %207 {offsets = [0, 48], sizes = [5, 8], strides = [1, 1]} : vector<5x96xf32> to vector<5x8xf32>
    %220 = vector.extract_strided_slice %207 {offsets = [0, 56], sizes = [5, 8], strides = [1, 1]} : vector<5x96xf32> to vector<5x8xf32>
    %221 = vector.shape_cast %217 : vector<5x8xf32> to vector<1x5x8xf32>
    %222 = vector.shape_cast %218 : vector<5x8xf32> to vector<1x5x8xf32>
    %223 = vector.shape_cast %219 : vector<5x8xf32> to vector<1x5x8xf32>
    %224 = vector.shape_cast %220 : vector<5x8xf32> to vector<1x5x8xf32>
    %225 = tpu.concatenate %221, %222, %223, %224 in 0 : vector<1x5x8xf32>, vector<1x5x8xf32>, vector<1x5x8xf32>, vector<1x5x8xf32> -> vector<4x5x8xf32>
    %226 = vector.extract_strided_slice %207 {offsets = [0, 64], sizes = [5, 8], strides = [1, 1]} : vector<5x96xf32> to vector<5x8xf32>
    %227 = vector.extract_strided_slice %207 {offsets = [0, 72], sizes = [5, 8], strides = [1, 1]} : vector<5x96xf32> to vector<5x8xf32>
    %228 = vector.extract_strided_slice %207 {offsets = [0, 80], sizes = [5, 8], strides = [1, 1]} : vector<5x96xf32> to vector<5x8xf32>
    %229 = vector.extract_strided_slice %207 {offsets = [0, 88], sizes = [5, 8], strides = [1, 1]} : vector<5x96xf32> to vector<5x8xf32>
    %230 = vector.shape_cast %226 : vector<5x8xf32> to vector<1x5x8xf32>
    %231 = vector.shape_cast %227 : vector<5x8xf32> to vector<1x5x8xf32>
    %232 = vector.shape_cast %228 : vector<5x8xf32> to vector<1x5x8xf32>
    %233 = vector.shape_cast %229 : vector<5x8xf32> to vector<1x5x8xf32>
    %234 = tpu.concatenate %230, %231, %232, %233 in 0 : vector<1x5x8xf32>, vector<1x5x8xf32>, vector<1x5x8xf32>, vector<1x5x8xf32> -> vector<4x5x8xf32>
    "tpu.trace_start"() <{level = 10 : i32, message = "hqe,hke->hqk"}> : () -> ()
    %cst_114 = arith.constant dense<0.000000e+00> : vector<4x5x5xf32>
    %235 = tpu.matmul %216, %225, %cst_114 {dimension_numbers = #tpu.dot_dimension_numbers<[2], [2], [1], [1], [0, 0, 0, 1, 1, 1], [0], [0]>} : vector<4x5x8xf32>, vector<4x5x8xf32>, vector<4x5x5xf32> -> vector<4x5x5xf32>
    "tpu.trace_stop"() : () -> ()
    %cst_115 = arith.constant 0.353553385 : f32
    %236 = vector.broadcast %cst_115 : f32 to vector<4x5x5xf32>
    %237 = arith.mulf %235, %236 : vector<4x5x5xf32>
    %cst_116 = arith.constant dense<0xFF800000> : vector<4x5xf32>
    %238 = vector.multi_reduction <maximumf>, %237, %cst_116 [2] : vector<4x5x5xf32> to vector<4x5xf32>
    %239 = vector.shape_cast %238 : vector<4x5xf32> to vector<4x5x1xf32>
    %240 = vector.broadcast %239 : vector<4x5x1xf32> to vector<4x5x5xf32>
    %241 = arith.subf %237, %240 : vector<4x5x5xf32>
    %242 = math.exp %241 : vector<4x5x5xf32>
    %cst_117 = arith.constant dense<0.000000e+00> : vector<4x5xf32>
    %243 = vector.multi_reduction <add>, %242, %cst_117 [2] : vector<4x5x5xf32> to vector<4x5xf32>
    %244 = vector.shape_cast %243 : vector<4x5xf32> to vector<4x5x1xf32>
    %245 = tpu.reciprocal %244 {approx = true} : vector<4x5x1xf32> -> vector<4x5x1xf32>
    %246 = vector.broadcast %245 : vector<4x5x1xf32> to vector<4x5x5xf32>
    %247 = arith.mulf %242, %246 : vector<4x5x5xf32>
    "tpu.trace_start"() <{level = 10 : i32, message = "hqk,hke->hqe"}> : () -> ()
    %cst_118 = arith.constant dense<0.000000e+00> : vector<4x5x8xf32>
    %248 = tpu.matmul %247, %234, %cst_118 {dimension_numbers = #tpu.dot_dimension_numbers<[2], [1], [1], [2], [0, 0, 0, 1, 1, 2], [0], [0]>} : vector<4x5x5xf32>, vector<4x5x8xf32>, vector<4x5x8xf32> -> vector<4x5x8xf32>
    "tpu.trace_stop"() : () -> ()
    %249 = vector.extract_strided_slice %248 {offsets = [0, 0, 0], sizes = [1, 5, 8], strides = [1, 1, 1]} : vector<4x5x8xf32> to vector<1x5x8xf32>
    %250 = vector.shape_cast %249 : vector<1x5x8xf32> to vector<5x8xf32>
    %251 = vector.extract_strided_slice %248 {offsets = [1, 0, 0], sizes = [1, 5, 8], strides = [1, 1, 1]} : vector<4x5x8xf32> to vector<1x5x8xf32>
    %252 = vector.shape_cast %251 : vector<1x5x8xf32> to vector<5x8xf32>
    %253 = vector.extract_strided_slice %248 {offsets = [2, 0, 0], sizes = [1, 5, 8], strides = [1, 1, 1]} : vector<4x5x8xf32> to vector<1x5x8xf32>
    %254 = vector.shape_cast %253 : vector<1x5x8xf32> to vector<5x8xf32>
    %255 = vector.extract_strided_slice %248 {offsets = [3, 0, 0], sizes = [1, 5, 8], strides = [1, 1, 1]} : vector<4x5x8xf32> to vector<1x5x8xf32>
    %256 = vector.shape_cast %255 : vector<1x5x8xf32> to vector<5x8xf32>
    %257 = tpu.concatenate %250, %252, %254, %256 in 1 : vector<5x8xf32>, vector<5x8xf32>, vector<5x8xf32>, vector<5x8xf32> -> vector<5x32xf32>
    %cst_119 = arith.constant dense<0.000000e+00> : vector<5x32xf32>
    %258 = tpu.matmul %257, %168, %cst_119 {dimension_numbers = #tpu.dot_dimension_numbers<[1], [0], [0], [1], [0, 0, 1, 1], [], []>} : vector<5x32xf32>, vector<32x32xf32>, vector<5x32xf32> -> vector<5x32xf32>
    %259 = vector.broadcast %170 : vector<1x32xf32> to vector<5x32xf32>
    %260 = arith.addf %258, %259 : vector<5x32xf32>
    %261 = arith.addf %158, %260 : vector<5x32xf32>
    %cst_120 = arith.constant dense<0.000000e+00> : vector<5xf32>
    %262 = vector.multi_reduction <add>, %261, %cst_120 [1] : vector<5x32xf32> to vector<5xf32>
    %263 = vector.shape_cast %262 : vector<5xf32> to vector<5x1xf32>
    %cst_121 = arith.constant 3.200000e+01 : f32
    %264 = vector.broadcast %cst_121 : f32 to vector<5x1xf32>
    %265 = arith.divf %263, %264 : vector<5x1xf32>
    %266 = vector.broadcast %265 : vector<5x1xf32> to vector<5x32xf32>
    %267 = arith.subf %261, %266 : vector<5x32xf32>
    %268 = arith.mulf %267, %267 : vector<5x32xf32>
    %cst_122 = arith.constant dense<0.000000e+00> : vector<5xf32>
    %269 = vector.multi_reduction <add>, %268, %cst_122 [1] : vector<5x32xf32> to vector<5xf32>
    %270 = vector.shape_cast %269 : vector<5xf32> to vector<5x1xf32>
    %cst_123 = arith.constant 3.200000e+01 : f32
    %271 = vector.broadcast %cst_123 : f32 to vector<5x1xf32>
    %272 = arith.divf %270, %271 : vector<5x1xf32>
    %273 = vector.broadcast %265 : vector<5x1xf32> to vector<5x32xf32>
    %274 = arith.subf %261, %273 : vector<5x32xf32>
    %cst_124 = arith.constant 9.99999974E-6 : f32
    %275 = vector.broadcast %cst_124 : f32 to vector<5x1xf32>
    %276 = arith.addf %272, %275 : vector<5x1xf32>
    %277 = math.rsqrt %276 : vector<5x1xf32>
    %278 = vector.broadcast %277 : vector<5x1xf32> to vector<5x32xf32>
    %279 = arith.mulf %274, %278 : vector<5x32xf32>
    %280 = vector.broadcast %172 : vector<1x32xf32> to vector<5x32xf32>
    %281 = arith.mulf %279, %280 : vector<5x32xf32>
    %282 = vector.broadcast %174 : vector<1x32xf32> to vector<5x32xf32>
    %283 = arith.addf %281, %282 : vector<5x32xf32>
    %cst_125 = arith.constant dense<0.000000e+00> : vector<5x128xf32>
    %284 = tpu.matmul %283, %176, %cst_125 {dimension_numbers = #tpu.dot_dimension_numbers<[1], [0], [0], [1], [0, 0, 1, 1], [], []>} : vector<5x32xf32>, vector<32x128xf32>, vector<5x128xf32> -> vector<5x128xf32>
    %285 = vector.broadcast %178 : vector<1x128xf32> to vector<5x128xf32>
    %286 = arith.addf %284, %285 : vector<5x128xf32>
    %287 = arith.mulf %286, %286 : vector<5x128xf32>
    %288 = arith.mulf %286, %287 : vector<5x128xf32>
    %cst_126 = arith.constant 4.471500e-02 : f32
    %289 = vector.broadcast %cst_126 : f32 to vector<5x128xf32>
    %290 = arith.mulf %289, %288 : vector<5x128xf32>
    %291 = arith.addf %286, %290 : vector<5x128xf32>
    %cst_127 = arith.constant 0.797884583 : f32
    %292 = vector.broadcast %cst_127 : f32 to vector<5x128xf32>
    %293 = arith.mulf %292, %291 : vector<5x128xf32>
    %294 = math.tanh %293 : vector<5x128xf32>
    %cst_128 = arith.constant 1.000000e+00 : f32
    %295 = vector.broadcast %cst_128 : f32 to vector<5x128xf32>
    %296 = arith.addf %295, %294 : vector<5x128xf32>
    %cst_129 = arith.constant 5.000000e-01 : f32
    %297 = vector.broadcast %cst_129 : f32 to vector<5x128xf32>
    %298 = arith.mulf %297, %296 : vector<5x128xf32>
    %299 = arith.mulf %286, %298 : vector<5x128xf32>
    %cst_130 = arith.constant dense<0.000000e+00> : vector<5x32xf32>
    %300 = tpu.matmul %299, %180, %cst_130 {dimension_numbers = #tpu.dot_dimension_numbers<[1], [0], [0], [1], [0, 0, 1, 1], [], []>} : vector<5x128xf32>, vector<128x32xf32>, vector<5x32xf32> -> vector<5x32xf32>
    %301 = vector.broadcast %182 : vector<1x32xf32> to vector<5x32xf32>
    %302 = arith.addf %300, %301 : vector<5x32xf32>
    %303 = arith.addf %261, %302 : vector<5x32xf32>
    %c0_131 = arith.constant 0 : index
    %c0_132 = arith.constant 0 : index
    %304 = vector.load %arg22[%c0_131, %c0_132] : memref<1x32xf32, #tpu.memory_space<vmem>>, vector<1x32xf32>
    %c0_133 = arith.constant 0 : index
    %c0_134 = arith.constant 0 : index
    %305 = vector.load %arg23[%c0_133, %c0_134] : memref<1x32xf32, #tpu.memory_space<vmem>>, vector<1x32xf32>
    %cst_135 = arith.constant dense<0.000000e+00> : vector<5xf32>
    %306 = vector.multi_reduction <add>, %303, %cst_135 [1] : vector<5x32xf32> to vector<5xf32>
    %307 = vector.shape_cast %306 : vector<5xf32> to vector<5x1xf32>
    %cst_136 = arith.constant 3.200000e+01 : f32
    %308 = vector.broadcast %cst_136 : f32 to vector<5x1xf32>
    %309 = arith.divf %307, %308 : vector<5x1xf32>
    %310 = vector.broadcast %309 : vector<5x1xf32> to vector<5x32xf32>
    %311 = arith.subf %303, %310 : vector<5x32xf32>
    %312 = arith.mulf %311, %311 : vector<5x32xf32>
    %cst_137 = arith.constant dense<0.000000e+00> : vector<5xf32>
    %313 = vector.multi_reduction <add>, %312, %cst_137 [1] : vector<5x32xf32> to vector<5xf32>
    %314 = vector.shape_cast %313 : vector<5xf32> to vector<5x1xf32>
    %cst_138 = arith.constant 3.200000e+01 : f32
    %315 = vector.broadcast %cst_138 : f32 to vector<5x1xf32>
    %316 = arith.divf %314, %315 : vector<5x1xf32>
    %317 = vector.broadcast %309 : vector<5x1xf32> to vector<5x32xf32>
    %318 = arith.subf %303, %317 : vector<5x32xf32>
    %cst_139 = arith.constant 9.99999974E-6 : f32
    %319 = vector.broadcast %cst_139 : f32 to vector<5x1xf32>
    %320 = arith.addf %316, %319 : vector<5x1xf32>
    %321 = math.rsqrt %320 : vector<5x1xf32>
    %322 = vector.broadcast %321 : vector<5x1xf32> to vector<5x32xf32>
    %323 = arith.mulf %318, %322 : vector<5x32xf32>
    %324 = vector.broadcast %304 : vector<1x32xf32> to vector<5x32xf32>
    %325 = arith.mulf %323, %324 : vector<5x32xf32>
    %326 = vector.broadcast %305 : vector<1x32xf32> to vector<5x32xf32>
    %327 = arith.addf %325, %326 : vector<5x32xf32>
    %c0_140 = arith.constant 0 : index
    %c0_141 = arith.constant 0 : index
    %328 = vector.load %arg24[%c0_140, %c0_141] : memref<32x32xf32, #tpu.memory_space<vmem>>, vector<32x32xf32>
    %cst_142 = arith.constant dense<0.000000e+00> : vector<5x32xf32>
    %329 = tpu.matmul %327, %328, %cst_142 {dimension_numbers = #tpu.dot_dimension_numbers<[1], [0], [0], [1], [0, 0, 1, 1], [], []>} : vector<5x32xf32>, vector<32x32xf32>, vector<5x32xf32> -> vector<5x32xf32>
    %c0_143 = arith.constant 0 : index
    %c0_144 = arith.constant 0 : index
    %330 = vector.load %arg25[%c0_143, %c0_144] : memref<1x32xf32, #tpu.memory_space<vmem>>, vector<1x32xf32>
    %331 = vector.broadcast %330 : vector<1x32xf32> to vector<5x32xf32>
    %332 = arith.addf %329, %331 : vector<5x32xf32>
    %333 = vector.extract_strided_slice %332 {offsets = [0, 0], sizes = [1, 32], strides = [1, 1]} : vector<5x32xf32> to vector<1x32xf32>
    %c0_145 = arith.constant 0 : index
    %c0_146 = arith.constant 0 : index
    %334 = vector.load %arg26[%c0_145, %c0_146] : memref<1x32xf32, #tpu.memory_space<vmem>>, vector<1x32xf32>
    %335 = vector.shape_cast %334 : vector<1x32xf32> to vector<1x32xf32>
    %336 = vector.broadcast %335 : vector<1x32xf32> to vector<12x32xf32>
    %337 = vector.extract_strided_slice %332 {offsets = [1, 0], sizes = [4, 32], strides = [1, 1]} : vector<5x32xf32> to vector<4x32xf32>
    %338 = tpu.concatenate %337, %336 in 0 : vector<4x32xf32>, vector<12x32xf32> -> vector<16x32xf32>
    %c0_147 = arith.constant 0 : index
    %c0_148 = arith.constant 0 : index
    %c0_149 = arith.constant 0 : index
    %339 = vector.load %arg3[%c0_147, %c0_148, %c0_149] : memref<1x16x16xf32, #tpu.memory_space<vmem>>, vector<1x16x16xf32>
    %340 = vector.shape_cast %339 : vector<1x16x16xf32> to vector<16x16xf32>
    %cst_150 = arith.constant dense<0.000000e+00> : vector<16x32xf32>
    %341 = tpu.matmul %340, %338, %cst_150 {dimension_numbers = #tpu.dot_dimension_numbers<[1], [0], [0], [1], [0, 0, 1, 1], [], []>} : vector<16x16xf32>, vector<16x32xf32>, vector<16x32xf32> -> vector<16x32xf32>
    %342 = tpu.concatenate %333, %341 in 0 : vector<1x32xf32>, vector<16x32xf32> -> vector<17x32xf32>
    %c0_151 = arith.constant 0 : index
    %c0_152 = arith.constant 0 : index
    %343 = vector.load %arg27[%c0_151, %c0_152] : memref<17x32xf32, #tpu.memory_space<vmem>>, vector<17x32xf32>
    %344 = arith.addf %342, %343 : vector<17x32xf32>
    %c0_153 = arith.constant 0 : index
    %c0_154 = arith.constant 0 : index
    %c0_155 = arith.constant 0 : index
    %345 = vector.load %arg28[%c0_153, %c0_154, %c0_155] : memref<2x1x32xf32, #tpu.memory_space<vmem>>, vector<1x1x32xf32>
    %346 = vector.shape_cast %345 : vector<1x1x32xf32> to vector<1x32xf32>
    %c0_156 = arith.constant 0 : index
    %c0_157 = arith.constant 0 : index
    %c0_158 = arith.constant 0 : index
    %347 = vector.load %arg29[%c0_156, %c0_157, %c0_158] : memref<2x1x32xf32, #tpu.memory_space<vmem>>, vector<1x1x32xf32>
    %348 = vector.shape_cast %347 : vector<1x1x32xf32> to vector<1x32xf32>
    %c0_159 = arith.constant 0 : index
    %c0_160 = arith.constant 0 : index
    %c0_161 = arith.constant 0 : index
    %349 = vector.load %arg30[%c0_159, %c0_160, %c0_161] : memref<2x32x96xf32, #tpu.memory_space<vmem>>, vector<1x32x96xf32>
    %350 = vector.shape_cast %349 : vector<1x32x96xf32> to vector<32x96xf32>
    %c0_162 = arith.constant 0 : index
    %c0_163 = arith.constant 0 : index
    %c0_164 = arith.constant 0 : index
    %351 = vector.load %arg31[%c0_162, %c0_163, %c0_164] : memref<2x1x96xf32, #tpu.memory_space<vmem>>, vector<1x1x96xf32>
    %352 = vector.shape_cast %351 : vector<1x1x96xf32> to vector<1x96xf32>
    %c0_165 = arith.constant 0 : index
    %c0_166 = arith.constant 0 : index
    %c0_167 = arith.constant 0 : index
    %353 = vector.load %arg32[%c0_165, %c0_166, %c0_167] : memref<2x32x32xf32, #tpu.memory_space<vmem>>, vector<1x32x32xf32>
    %354 = vector.shape_cast %353 : vector<1x32x32xf32> to vector<32x32xf32>
    %c0_168 = arith.constant 0 : index
    %c0_169 = arith.constant 0 : index
    %c0_170 = arith.constant 0 : index
    %355 = vector.load %arg33[%c0_168, %c0_169, %c0_170] : memref<2x1x32xf32, #tpu.memory_space<vmem>>, vector<1x1x32xf32>
    %356 = vector.shape_cast %355 : vector<1x1x32xf32> to vector<1x32xf32>
    %c0_171 = arith.constant 0 : index
    %c0_172 = arith.constant 0 : index
    %c0_173 = arith.constant 0 : index
    %357 = vector.load %arg34[%c0_171, %c0_172, %c0_173] : memref<2x1x32xf32, #tpu.memory_space<vmem>>, vector<1x1x32xf32>
    %358 = vector.shape_cast %357 : vector<1x1x32xf32> to vector<1x32xf32>
    %c0_174 = arith.constant 0 : index
    %c0_175 = arith.constant 0 : index
    %c0_176 = arith.constant 0 : index
    %359 = vector.load %arg35[%c0_174, %c0_175, %c0_176] : memref<2x1x32xf32, #tpu.memory_space<vmem>>, vector<1x1x32xf32>
    %360 = vector.shape_cast %359 : vector<1x1x32xf32> to vector<1x32xf32>
    %c0_177 = arith.constant 0 : index
    %c0_178 = arith.constant 0 : index
    %c0_179 = arith.constant 0 : index
    %361 = vector.load %arg36[%c0_177, %c0_178, %c0_179] : memref<2x32x128xf32, #tpu.memory_space<vmem>>, vector<1x32x128xf32>
    %362 = vector.shape_cast %361 : vector<1x32x128xf32> to vector<32x128xf32>
    %c0_180 = arith.constant 0 : index
    %c0_181 = arith.constant 0 : index
    %c0_182 = arith.constant 0 : index
    %363 = vector.load %arg37[%c0_180, %c0_181, %c0_182] : memref<2x1x128xf32, #tpu.memory_space<vmem>>, vector<1x1x128xf32>
    %364 = vector.shape_cast %363 : vector<1x1x128xf32> to vector<1x128xf32>
    %c0_183 = arith.constant 0 : index
    %c0_184 = arith.constant 0 : index
    %c0_185 = arith.constant 0 : index
    %365 = vector.load %arg38[%c0_183, %c0_184, %c0_185] : memref<2x128x32xf32, #tpu.memory_space<vmem>>, vector<1x128x32xf32>
    %366 = vector.shape_cast %365 : vector<1x128x32xf32> to vector<128x32xf32>
    %c0_186 = arith.constant 0 : index
    %c0_187 = arith.constant 0 : index
    %c0_188 = arith.constant 0 : index
    %367 = vector.load %arg39[%c0_186, %c0_187, %c0_188] : memref<2x1x32xf32, #tpu.memory_space<vmem>>, vector<1x1x32xf32>
    %368 = vector.shape_cast %367 : vector<1x1x32xf32> to vector<1x32xf32>
    %cst_189 = arith.constant dense<0.000000e+00> : vector<17xf32>
    %369 = vector.multi_reduction <add>, %344, %cst_189 [1] : vector<17x32xf32> to vector<17xf32>
    %370 = vector.shape_cast %369 : vector<17xf32> to vector<17x1xf32>
    %cst_190 = arith.constant 3.200000e+01 : f32
    %371 = vector.broadcast %cst_190 : f32 to vector<17x1xf32>
    %372 = arith.divf %370, %371 : vector<17x1xf32>
    %373 = vector.broadcast %372 : vector<17x1xf32> to vector<17x32xf32>
    %374 = arith.subf %344, %373 : vector<17x32xf32>
    %375 = arith.mulf %374, %374 : vector<17x32xf32>
    %cst_191 = arith.constant dense<0.000000e+00> : vector<17xf32>
    %376 = vector.multi_reduction <add>, %375, %cst_191 [1] : vector<17x32xf32> to vector<17xf32>
    %377 = vector.shape_cast %376 : vector<17xf32> to vector<17x1xf32>
    %cst_192 = arith.constant 3.200000e+01 : f32
    %378 = vector.broadcast %cst_192 : f32 to vector<17x1xf32>
    %379 = arith.divf %377, %378 : vector<17x1xf32>
    %380 = vector.broadcast %372 : vector<17x1xf32> to vector<17x32xf32>
    %381 = arith.subf %344, %380 : vector<17x32xf32>
    %cst_193 = arith.constant 9.99999974E-6 : f32
    %382 = vector.broadcast %cst_193 : f32 to vector<17x1xf32>
    %383 = arith.addf %379, %382 : vector<17x1xf32>
    %384 = math.rsqrt %383 : vector<17x1xf32>
    %385 = vector.broadcast %384 : vector<17x1xf32> to vector<17x32xf32>
    %386 = arith.mulf %381, %385 : vector<17x32xf32>
    %387 = vector.broadcast %346 : vector<1x32xf32> to vector<17x32xf32>
    %388 = arith.mulf %386, %387 : vector<17x32xf32>
    %389 = vector.broadcast %348 : vector<1x32xf32> to vector<17x32xf32>
    %390 = arith.addf %388, %389 : vector<17x32xf32>
    %cst_194 = arith.constant dense<0.000000e+00> : vector<17x96xf32>
    %391 = tpu.matmul %390, %350, %cst_194 {dimension_numbers = #tpu.dot_dimension_numbers<[1], [0], [0], [1], [0, 0, 1, 1], [], []>} : vector<17x32xf32>, vector<32x96xf32>, vector<17x96xf32> -> vector<17x96xf32>
    %392 = vector.broadcast %352 : vector<1x96xf32> to vector<17x96xf32>
    %393 = arith.addf %391, %392 : vector<17x96xf32>
    %394 = vector.extract_strided_slice %393 {offsets = [0, 0], sizes = [17, 8], strides = [1, 1]} : vector<17x96xf32> to vector<17x8xf32>
    %395 = vector.extract_strided_slice %393 {offsets = [0, 8], sizes = [17, 8], strides = [1, 1]} : vector<17x96xf32> to vector<17x8xf32>
    %396 = vector.extract_strided_slice %393 {offsets = [0, 16], sizes = [17, 8], strides = [1, 1]} : vector<17x96xf32> to vector<17x8xf32>
    %397 = vector.extract_strided_slice %393 {offsets = [0, 24], sizes = [17, 8], strides = [1, 1]} : vector<17x96xf32> to vector<17x8xf32>
    %398 = vector.shape_cast %394 : vector<17x8xf32> to vector<1x17x8xf32>
    %399 = vector.shape_cast %395 : vector<17x8xf32> to vector<1x17x8xf32>
    %400 = vector.shape_cast %396 : vector<17x8xf32> to vector<1x17x8xf32>
    %401 = vector.shape_cast %397 : vector<17x8xf32> to vector<1x17x8xf32>
    %402 = tpu.concatenate %398, %399, %400, %401 in 0 : vector<1x17x8xf32>, vector<1x17x8xf32>, vector<1x17x8xf32>, vector<1x17x8xf32> -> vector<4x17x8xf32>
    %403 = vector.extract_strided_slice %393 {offsets = [0, 32], sizes = [17, 8], strides = [1, 1]} : vector<17x96xf32> to vector<17x8xf32>
    %404 = vector.extract_strided_slice %393 {offsets = [0, 40], sizes = [17, 8], strides = [1, 1]} : vector<17x96xf32> to vector<17x8xf32>
    %405 = vector.extract_strided_slice %393 {offsets = [0, 48], sizes = [17, 8], strides = [1, 1]} : vector<17x96xf32> to vector<17x8xf32>
    %406 = vector.extract_strided_slice %393 {offsets = [0, 56], sizes = [17, 8], strides = [1, 1]} : vector<17x96xf32> to vector<17x8xf32>
    %407 = vector.shape_cast %403 : vector<17x8xf32> to vector<1x17x8xf32>
    %408 = vector.shape_cast %404 : vector<17x8xf32> to vector<1x17x8xf32>
    %409 = vector.shape_cast %405 : vector<17x8xf32> to vector<1x17x8xf32>
    %410 = vector.shape_cast %406 : vector<17x8xf32> to vector<1x17x8xf32>
    %411 = tpu.concatenate %407, %408, %409, %410 in 0 : vector<1x17x8xf32>, vector<1x17x8xf32>, vector<1x17x8xf32>, vector<1x17x8xf32> -> vector<4x17x8xf32>
    %412 = vector.extract_strided_slice %393 {offsets = [0, 64], sizes = [17, 8], strides = [1, 1]} : vector<17x96xf32> to vector<17x8xf32>
    %413 = vector.extract_strided_slice %393 {offsets = [0, 72], sizes = [17, 8], strides = [1, 1]} : vector<17x96xf32> to vector<17x8xf32>
    %414 = vector.extract_strided_slice %393 {offsets = [0, 80], sizes = [17, 8], strides = [1, 1]} : vector<17x96xf32> to vector<17x8xf32>
    %415 = vector.extract_strided_slice %393 {offsets = [0, 88], sizes = [17, 8], strides = [1, 1]} : vector<17x96xf32> to vector<17x8xf32>
    %416 = vector.shape_cast %412 : vector<17x8xf32> to vector<1x17x8xf32>
    %417 = vector.shape_cast %413 : vector<17x8xf32> to vector<1x17x8xf32>
    %418 = vector.shape_cast %414 : vector<17x8xf32> to vector<1x17x8xf32>
    %419 = vector.shape_cast %415 : vector<17x8xf32> to vector<1x17x8xf32>
    %420 = tpu.concatenate %416, %417, %418, %419 in 0 : vector<1x17x8xf32>, vector<1x17x8xf32>, vector<1x17x8xf32>, vector<1x17x8xf32> -> vector<4x17x8xf32>
    "tpu.trace_start"() <{level = 10 : i32, message = "hqe,hke->hqk"}> : () -> ()
    %cst_195 = arith.constant dense<0.000000e+00> : vector<4x17x17xf32>
    %421 = tpu.matmul %402, %411, %cst_195 {dimension_numbers = #tpu.dot_dimension_numbers<[2], [2], [1], [1], [0, 0, 0, 1, 1, 1], [0], [0]>} : vector<4x17x8xf32>, vector<4x17x8xf32>, vector<4x17x17xf32> -> vector<4x17x17xf32>
    "tpu.trace_stop"() : () -> ()
    %cst_196 = arith.constant 0.353553385 : f32
    %422 = vector.broadcast %cst_196 : f32 to vector<4x17x17xf32>
    %423 = arith.mulf %421, %422 : vector<4x17x17xf32>
    %cst_197 = arith.constant dense<0xFF800000> : vector<4x17xf32>
    %424 = vector.multi_reduction <maximumf>, %423, %cst_197 [2] : vector<4x17x17xf32> to vector<4x17xf32>
    %425 = vector.shape_cast %424 : vector<4x17xf32> to vector<4x17x1xf32>
    %426 = vector.broadcast %425 : vector<4x17x1xf32> to vector<4x17x17xf32>
    %427 = arith.subf %423, %426 : vector<4x17x17xf32>
    %428 = math.exp %427 : vector<4x17x17xf32>
    %cst_198 = arith.constant dense<0.000000e+00> : vector<4x17xf32>
    %429 = vector.multi_reduction <add>, %428, %cst_198 [2] : vector<4x17x17xf32> to vector<4x17xf32>
    %430 = vector.shape_cast %429 : vector<4x17xf32> to vector<4x17x1xf32>
    %431 = tpu.reciprocal %430 {approx = true} : vector<4x17x1xf32> -> vector<4x17x1xf32>
    %432 = vector.broadcast %431 : vector<4x17x1xf32> to vector<4x17x17xf32>
    %433 = arith.mulf %428, %432 : vector<4x17x17xf32>
    "tpu.trace_start"() <{level = 10 : i32, message = "hqk,hke->hqe"}> : () -> ()
    %cst_199 = arith.constant dense<0.000000e+00> : vector<4x17x8xf32>
    %434 = tpu.matmul %433, %420, %cst_199 {dimension_numbers = #tpu.dot_dimension_numbers<[2], [1], [1], [2], [0, 0, 0, 1, 1, 2], [0], [0]>} : vector<4x17x17xf32>, vector<4x17x8xf32>, vector<4x17x8xf32> -> vector<4x17x8xf32>
    "tpu.trace_stop"() : () -> ()
    %435 = vector.extract_strided_slice %434 {offsets = [0, 0, 0], sizes = [1, 17, 8], strides = [1, 1, 1]} : vector<4x17x8xf32> to vector<1x17x8xf32>
    %436 = vector.shape_cast %435 : vector<1x17x8xf32> to vector<17x8xf32>
    %437 = vector.extract_strided_slice %434 {offsets = [1, 0, 0], sizes = [1, 17, 8], strides = [1, 1, 1]} : vector<4x17x8xf32> to vector<1x17x8xf32>
    %438 = vector.shape_cast %437 : vector<1x17x8xf32> to vector<17x8xf32>
    %439 = vector.extract_strided_slice %434 {offsets = [2, 0, 0], sizes = [1, 17, 8], strides = [1, 1, 1]} : vector<4x17x8xf32> to vector<1x17x8xf32>
    %440 = vector.shape_cast %439 : vector<1x17x8xf32> to vector<17x8xf32>
    %441 = vector.extract_strided_slice %434 {offsets = [3, 0, 0], sizes = [1, 17, 8], strides = [1, 1, 1]} : vector<4x17x8xf32> to vector<1x17x8xf32>
    %442 = vector.shape_cast %441 : vector<1x17x8xf32> to vector<17x8xf32>
    %443 = tpu.concatenate %436, %438, %440, %442 in 1 : vector<17x8xf32>, vector<17x8xf32>, vector<17x8xf32>, vector<17x8xf32> -> vector<17x32xf32>
    %cst_200 = arith.constant dense<0.000000e+00> : vector<17x32xf32>
    %444 = tpu.matmul %443, %354, %cst_200 {dimension_numbers = #tpu.dot_dimension_numbers<[1], [0], [0], [1], [0, 0, 1, 1], [], []>} : vector<17x32xf32>, vector<32x32xf32>, vector<17x32xf32> -> vector<17x32xf32>
    %445 = vector.broadcast %356 : vector<1x32xf32> to vector<17x32xf32>
    %446 = arith.addf %444, %445 : vector<17x32xf32>
    %447 = arith.addf %344, %446 : vector<17x32xf32>
    %cst_201 = arith.constant dense<0.000000e+00> : vector<17xf32>
    %448 = vector.multi_reduction <add>, %447, %cst_201 [1] : vector<17x32xf32> to vector<17xf32>
    %449 = vector.shape_cast %448 : vector<17xf32> to vector<17x1xf32>
    %cst_202 = arith.constant 3.200000e+01 : f32
    %450 = vector.broadcast %cst_202 : f32 to vector<17x1xf32>
    %451 = arith.divf %449, %450 : vector<17x1xf32>
    %452 = vector.broadcast %451 : vector<17x1xf32> to vector<17x32xf32>
    %453 = arith.subf %447, %452 : vector<17x32xf32>
    %454 = arith.mulf %453, %453 : vector<17x32xf32>
    %cst_203 = arith.constant dense<0.000000e+00> : vector<17xf32>
    %455 = vector.multi_reduction <add>, %454, %cst_203 [1] : vector<17x32xf32> to vector<17xf32>
    %456 = vector.shape_cast %455 : vector<17xf32> to vector<17x1xf32>
    %cst_204 = arith.constant 3.200000e+01 : f32
    %457 = vector.broadcast %cst_204 : f32 to vector<17x1xf32>
    %458 = arith.divf %456, %457 : vector<17x1xf32>
    %459 = vector.broadcast %451 : vector<17x1xf32> to vector<17x32xf32>
    %460 = arith.subf %447, %459 : vector<17x32xf32>
    %cst_205 = arith.constant 9.99999974E-6 : f32
    %461 = vector.broadcast %cst_205 : f32 to vector<17x1xf32>
    %462 = arith.addf %458, %461 : vector<17x1xf32>
    %463 = math.rsqrt %462 : vector<17x1xf32>
    %464 = vector.broadcast %463 : vector<17x1xf32> to vector<17x32xf32>
    %465 = arith.mulf %460, %464 : vector<17x32xf32>
    %466 = vector.broadcast %358 : vector<1x32xf32> to vector<17x32xf32>
    %467 = arith.mulf %465, %466 : vector<17x32xf32>
    %468 = vector.broadcast %360 : vector<1x32xf32> to vector<17x32xf32>
    %469 = arith.addf %467, %468 : vector<17x32xf32>
    %cst_206 = arith.constant dense<0.000000e+00> : vector<17x128xf32>
    %470 = tpu.matmul %469, %362, %cst_206 {dimension_numbers = #tpu.dot_dimension_numbers<[1], [0], [0], [1], [0, 0, 1, 1], [], []>} : vector<17x32xf32>, vector<32x128xf32>, vector<17x128xf32> -> vector<17x128xf32>
    %471 = vector.broadcast %364 : vector<1x128xf32> to vector<17x128xf32>
    %472 = arith.addf %470, %471 : vector<17x128xf32>
    %473 = arith.mulf %472, %472 : vector<17x128xf32>
    %474 = arith.mulf %472, %473 : vector<17x128xf32>
    %cst_207 = arith.constant 4.471500e-02 : f32
    %475 = vector.broadcast %cst_207 : f32 to vector<17x128xf32>
    %476 = arith.mulf %475, %474 : vector<17x128xf32>
    %477 = arith.addf %472, %476 : vector<17x128xf32>
    %cst_208 = arith.constant 0.797884583 : f32
    %478 = vector.broadcast %cst_208 : f32 to vector<17x128xf32>
    %479 = arith.mulf %478, %477 : vector<17x128xf32>
    %480 = math.tanh %479 : vector<17x128xf32>
    %cst_209 = arith.constant 1.000000e+00 : f32
    %481 = vector.broadcast %cst_209 : f32 to vector<17x128xf32>
    %482 = arith.addf %481, %480 : vector<17x128xf32>
    %cst_210 = arith.constant 5.000000e-01 : f32
    %483 = vector.broadcast %cst_210 : f32 to vector<17x128xf32>
    %484 = arith.mulf %483, %482 : vector<17x128xf32>
    %485 = arith.mulf %472, %484 : vector<17x128xf32>
    %cst_211 = arith.constant dense<0.000000e+00> : vector<17x32xf32>
    %486 = tpu.matmul %485, %366, %cst_211 {dimension_numbers = #tpu.dot_dimension_numbers<[1], [0], [0], [1], [0, 0, 1, 1], [], []>} : vector<17x128xf32>, vector<128x32xf32>, vector<17x32xf32> -> vector<17x32xf32>
    %487 = vector.broadcast %368 : vector<1x32xf32> to vector<17x32xf32>
    %488 = arith.addf %486, %487 : vector<17x32xf32>
    %489 = arith.addf %447, %488 : vector<17x32xf32>
    %c1_212 = arith.constant 1 : index
    %c0_213 = arith.constant 0 : index
    %c0_214 = arith.constant 0 : index
    %490 = vector.load %arg28[%c1_212, %c0_213, %c0_214] : memref<2x1x32xf32, #tpu.memory_space<vmem>>, vector<1x1x32xf32>
    %491 = vector.shape_cast %490 : vector<1x1x32xf32> to vector<1x32xf32>
    %c1_215 = arith.constant 1 : index
    %c0_216 = arith.constant 0 : index
    %c0_217 = arith.constant 0 : index
    %492 = vector.load %arg29[%c1_215, %c0_216, %c0_217] : memref<2x1x32xf32, #tpu.memory_space<vmem>>, vector<1x1x32xf32>
    %493 = vector.shape_cast %492 : vector<1x1x32xf32> to vector<1x32xf32>
    %c1_218 = arith.constant 1 : index
    %c0_219 = arith.constant 0 : index
    %c0_220 = arith.constant 0 : index
    %494 = vector.load %arg30[%c1_218, %c0_219, %c0_220] : memref<2x32x96xf32, #tpu.memory_space<vmem>>, vector<1x32x96xf32>
    %495 = vector.shape_cast %494 : vector<1x32x96xf32> to vector<32x96xf32>
    %c1_221 = arith.constant 1 : index
    %c0_222 = arith.constant 0 : index
    %c0_223 = arith.constant 0 : index
    %496 = vector.load %arg31[%c1_221, %c0_222, %c0_223] : memref<2x1x96xf32, #tpu.memory_space<vmem>>, vector<1x1x96xf32>
    %497 = vector.shape_cast %496 : vector<1x1x96xf32> to vector<1x96xf32>
    %c1_224 = arith.constant 1 : index
    %c0_225 = arith.constant 0 : index
    %c0_226 = arith.constant 0 : index
    %498 = vector.load %arg32[%c1_224, %c0_225, %c0_226] : memref<2x32x32xf32, #tpu.memory_space<vmem>>, vector<1x32x32xf32>
    %499 = vector.shape_cast %498 : vector<1x32x32xf32> to vector<32x32xf32>
    %c1_227 = arith.constant 1 : index
    %c0_228 = arith.constant 0 : index
    %c0_229 = arith.constant 0 : index
    %500 = vector.load %arg33[%c1_227, %c0_228, %c0_229] : memref<2x1x32xf32, #tpu.memory_space<vmem>>, vector<1x1x32xf32>
    %501 = vector.shape_cast %500 : vector<1x1x32xf32> to vector<1x32xf32>
    %c1_230 = arith.constant 1 : index
    %c0_231 = arith.constant 0 : index
    %c0_232 = arith.constant 0 : index
    %502 = vector.load %arg34[%c1_230, %c0_231, %c0_232] : memref<2x1x32xf32, #tpu.memory_space<vmem>>, vector<1x1x32xf32>
    %503 = vector.shape_cast %502 : vector<1x1x32xf32> to vector<1x32xf32>
    %c1_233 = arith.constant 1 : index
    %c0_234 = arith.constant 0 : index
    %c0_235 = arith.constant 0 : index
    %504 = vector.load %arg35[%c1_233, %c0_234, %c0_235] : memref<2x1x32xf32, #tpu.memory_space<vmem>>, vector<1x1x32xf32>
    %505 = vector.shape_cast %504 : vector<1x1x32xf32> to vector<1x32xf32>
    %c1_236 = arith.constant 1 : index
    %c0_237 = arith.constant 0 : index
    %c0_238 = arith.constant 0 : index
    %506 = vector.load %arg36[%c1_236, %c0_237, %c0_238] : memref<2x32x128xf32, #tpu.memory_space<vmem>>, vector<1x32x128xf32>
    %507 = vector.shape_cast %506 : vector<1x32x128xf32> to vector<32x128xf32>
    %c1_239 = arith.constant 1 : index
    %c0_240 = arith.constant 0 : index
    %c0_241 = arith.constant 0 : index
    %508 = vector.load %arg37[%c1_239, %c0_240, %c0_241] : memref<2x1x128xf32, #tpu.memory_space<vmem>>, vector<1x1x128xf32>
    %509 = vector.shape_cast %508 : vector<1x1x128xf32> to vector<1x128xf32>
    %c1_242 = arith.constant 1 : index
    %c0_243 = arith.constant 0 : index
    %c0_244 = arith.constant 0 : index
    %510 = vector.load %arg38[%c1_242, %c0_243, %c0_244] : memref<2x128x32xf32, #tpu.memory_space<vmem>>, vector<1x128x32xf32>
    %511 = vector.shape_cast %510 : vector<1x128x32xf32> to vector<128x32xf32>
    %c1_245 = arith.constant 1 : index
    %c0_246 = arith.constant 0 : index
    %c0_247 = arith.constant 0 : index
    %512 = vector.load %arg39[%c1_245, %c0_246, %c0_247] : memref<2x1x32xf32, #tpu.memory_space<vmem>>, vector<1x1x32xf32>
    %513 = vector.shape_cast %512 : vector<1x1x32xf32> to vector<1x32xf32>
    %cst_248 = arith.constant dense<0.000000e+00> : vector<17xf32>
    %514 = vector.multi_reduction <add>, %489, %cst_248 [1] : vector<17x32xf32> to vector<17xf32>
    %515 = vector.shape_cast %514 : vector<17xf32> to vector<17x1xf32>
    %cst_249 = arith.constant 3.200000e+01 : f32
    %516 = vector.broadcast %cst_249 : f32 to vector<17x1xf32>
    %517 = arith.divf %515, %516 : vector<17x1xf32>
    %518 = vector.broadcast %517 : vector<17x1xf32> to vector<17x32xf32>
    %519 = arith.subf %489, %518 : vector<17x32xf32>
    %520 = arith.mulf %519, %519 : vector<17x32xf32>
    %cst_250 = arith.constant dense<0.000000e+00> : vector<17xf32>
    %521 = vector.multi_reduction <add>, %520, %cst_250 [1] : vector<17x32xf32> to vector<17xf32>
    %522 = vector.shape_cast %521 : vector<17xf32> to vector<17x1xf32>
    %cst_251 = arith.constant 3.200000e+01 : f32
    %523 = vector.broadcast %cst_251 : f32 to vector<17x1xf32>
    %524 = arith.divf %522, %523 : vector<17x1xf32>
    %525 = vector.broadcast %517 : vector<17x1xf32> to vector<17x32xf32>
    %526 = arith.subf %489, %525 : vector<17x32xf32>
    %cst_252 = arith.constant 9.99999974E-6 : f32
    %527 = vector.broadcast %cst_252 : f32 to vector<17x1xf32>
    %528 = arith.addf %524, %527 : vector<17x1xf32>
    %529 = math.rsqrt %528 : vector<17x1xf32>
    %530 = vector.broadcast %529 : vector<17x1xf32> to vector<17x32xf32>
    %531 = arith.mulf %526, %530 : vector<17x32xf32>
    %532 = vector.broadcast %491 : vector<1x32xf32> to vector<17x32xf32>
    %533 = arith.mulf %531, %532 : vector<17x32xf32>
    %534 = vector.broadcast %493 : vector<1x32xf32> to vector<17x32xf32>
    %535 = arith.addf %533, %534 : vector<17x32xf32>
    %cst_253 = arith.constant dense<0.000000e+00> : vector<17x96xf32>
    %536 = tpu.matmul %535, %495, %cst_253 {dimension_numbers = #tpu.dot_dimension_numbers<[1], [0], [0], [1], [0, 0, 1, 1], [], []>} : vector<17x32xf32>, vector<32x96xf32>, vector<17x96xf32> -> vector<17x96xf32>
    %537 = vector.broadcast %497 : vector<1x96xf32> to vector<17x96xf32>
    %538 = arith.addf %536, %537 : vector<17x96xf32>
    %539 = vector.extract_strided_slice %538 {offsets = [0, 0], sizes = [17, 8], strides = [1, 1]} : vector<17x96xf32> to vector<17x8xf32>
    %540 = vector.extract_strided_slice %538 {offsets = [0, 8], sizes = [17, 8], strides = [1, 1]} : vector<17x96xf32> to vector<17x8xf32>
    %541 = vector.extract_strided_slice %538 {offsets = [0, 16], sizes = [17, 8], strides = [1, 1]} : vector<17x96xf32> to vector<17x8xf32>
    %542 = vector.extract_strided_slice %538 {offsets = [0, 24], sizes = [17, 8], strides = [1, 1]} : vector<17x96xf32> to vector<17x8xf32>
    %543 = vector.shape_cast %539 : vector<17x8xf32> to vector<1x17x8xf32>
    %544 = vector.shape_cast %540 : vector<17x8xf32> to vector<1x17x8xf32>
    %545 = vector.shape_cast %541 : vector<17x8xf32> to vector<1x17x8xf32>
    %546 = vector.shape_cast %542 : vector<17x8xf32> to vector<1x17x8xf32>
    %547 = tpu.concatenate %543, %544, %545, %546 in 0 : vector<1x17x8xf32>, vector<1x17x8xf32>, vector<1x17x8xf32>, vector<1x17x8xf32> -> vector<4x17x8xf32>
    %548 = vector.extract_strided_slice %538 {offsets = [0, 32], sizes = [17, 8], strides = [1, 1]} : vector<17x96xf32> to vector<17x8xf32>
    %549 = vector.extract_strided_slice %538 {offsets = [0, 40], sizes = [17, 8], strides = [1, 1]} : vector<17x96xf32> to vector<17x8xf32>
    %550 = vector.extract_strided_slice %538 {offsets = [0, 48], sizes = [17, 8], strides = [1, 1]} : vector<17x96xf32> to vector<17x8xf32>
    %551 = vector.extract_strided_slice %538 {offsets = [0, 56], sizes = [17, 8], strides = [1, 1]} : vector<17x96xf32> to vector<17x8xf32>
    %552 = vector.shape_cast %548 : vector<17x8xf32> to vector<1x17x8xf32>
    %553 = vector.shape_cast %549 : vector<17x8xf32> to vector<1x17x8xf32>
    %554 = vector.shape_cast %550 : vector<17x8xf32> to vector<1x17x8xf32>
    %555 = vector.shape_cast %551 : vector<17x8xf32> to vector<1x17x8xf32>
    %556 = tpu.concatenate %552, %553, %554, %555 in 0 : vector<1x17x8xf32>, vector<1x17x8xf32>, vector<1x17x8xf32>, vector<1x17x8xf32> -> vector<4x17x8xf32>
    %557 = vector.extract_strided_slice %538 {offsets = [0, 64], sizes = [17, 8], strides = [1, 1]} : vector<17x96xf32> to vector<17x8xf32>
    %558 = vector.extract_strided_slice %538 {offsets = [0, 72], sizes = [17, 8], strides = [1, 1]} : vector<17x96xf32> to vector<17x8xf32>
    %559 = vector.extract_strided_slice %538 {offsets = [0, 80], sizes = [17, 8], strides = [1, 1]} : vector<17x96xf32> to vector<17x8xf32>
    %560 = vector.extract_strided_slice %538 {offsets = [0, 88], sizes = [17, 8], strides = [1, 1]} : vector<17x96xf32> to vector<17x8xf32>
    %561 = vector.shape_cast %557 : vector<17x8xf32> to vector<1x17x8xf32>
    %562 = vector.shape_cast %558 : vector<17x8xf32> to vector<1x17x8xf32>
    %563 = vector.shape_cast %559 : vector<17x8xf32> to vector<1x17x8xf32>
    %564 = vector.shape_cast %560 : vector<17x8xf32> to vector<1x17x8xf32>
    %565 = tpu.concatenate %561, %562, %563, %564 in 0 : vector<1x17x8xf32>, vector<1x17x8xf32>, vector<1x17x8xf32>, vector<1x17x8xf32> -> vector<4x17x8xf32>
    "tpu.trace_start"() <{level = 10 : i32, message = "hqe,hke->hqk"}> : () -> ()
    %cst_254 = arith.constant dense<0.000000e+00> : vector<4x17x17xf32>
    %566 = tpu.matmul %547, %556, %cst_254 {dimension_numbers = #tpu.dot_dimension_numbers<[2], [2], [1], [1], [0, 0, 0, 1, 1, 1], [0], [0]>} : vector<4x17x8xf32>, vector<4x17x8xf32>, vector<4x17x17xf32> -> vector<4x17x17xf32>
    "tpu.trace_stop"() : () -> ()
    %cst_255 = arith.constant 0.353553385 : f32
    %567 = vector.broadcast %cst_255 : f32 to vector<4x17x17xf32>
    %568 = arith.mulf %566, %567 : vector<4x17x17xf32>
    %cst_256 = arith.constant dense<0xFF800000> : vector<4x17xf32>
    %569 = vector.multi_reduction <maximumf>, %568, %cst_256 [2] : vector<4x17x17xf32> to vector<4x17xf32>
    %570 = vector.shape_cast %569 : vector<4x17xf32> to vector<4x17x1xf32>
    %571 = vector.broadcast %570 : vector<4x17x1xf32> to vector<4x17x17xf32>
    %572 = arith.subf %568, %571 : vector<4x17x17xf32>
    %573 = math.exp %572 : vector<4x17x17xf32>
    %cst_257 = arith.constant dense<0.000000e+00> : vector<4x17xf32>
    %574 = vector.multi_reduction <add>, %573, %cst_257 [2] : vector<4x17x17xf32> to vector<4x17xf32>
    %575 = vector.shape_cast %574 : vector<4x17xf32> to vector<4x17x1xf32>
    %576 = tpu.reciprocal %575 {approx = true} : vector<4x17x1xf32> -> vector<4x17x1xf32>
    %577 = vector.broadcast %576 : vector<4x17x1xf32> to vector<4x17x17xf32>
    %578 = arith.mulf %573, %577 : vector<4x17x17xf32>
    "tpu.trace_start"() <{level = 10 : i32, message = "hqk,hke->hqe"}> : () -> ()
    %cst_258 = arith.constant dense<0.000000e+00> : vector<4x17x8xf32>
    %579 = tpu.matmul %578, %565, %cst_258 {dimension_numbers = #tpu.dot_dimension_numbers<[2], [1], [1], [2], [0, 0, 0, 1, 1, 2], [0], [0]>} : vector<4x17x17xf32>, vector<4x17x8xf32>, vector<4x17x8xf32> -> vector<4x17x8xf32>
    "tpu.trace_stop"() : () -> ()
    %580 = vector.extract_strided_slice %579 {offsets = [0, 0, 0], sizes = [1, 17, 8], strides = [1, 1, 1]} : vector<4x17x8xf32> to vector<1x17x8xf32>
    %581 = vector.shape_cast %580 : vector<1x17x8xf32> to vector<17x8xf32>
    %582 = vector.extract_strided_slice %579 {offsets = [1, 0, 0], sizes = [1, 17, 8], strides = [1, 1, 1]} : vector<4x17x8xf32> to vector<1x17x8xf32>
    %583 = vector.shape_cast %582 : vector<1x17x8xf32> to vector<17x8xf32>
    %584 = vector.extract_strided_slice %579 {offsets = [2, 0, 0], sizes = [1, 17, 8], strides = [1, 1, 1]} : vector<4x17x8xf32> to vector<1x17x8xf32>
    %585 = vector.shape_cast %584 : vector<1x17x8xf32> to vector<17x8xf32>
    %586 = vector.extract_strided_slice %579 {offsets = [3, 0, 0], sizes = [1, 17, 8], strides = [1, 1, 1]} : vector<4x17x8xf32> to vector<1x17x8xf32>
    %587 = vector.shape_cast %586 : vector<1x17x8xf32> to vector<17x8xf32>
    %588 = tpu.concatenate %581, %583, %585, %587 in 1 : vector<17x8xf32>, vector<17x8xf32>, vector<17x8xf32>, vector<17x8xf32> -> vector<17x32xf32>
    %cst_259 = arith.constant dense<0.000000e+00> : vector<17x32xf32>
    %589 = tpu.matmul %588, %499, %cst_259 {dimension_numbers = #tpu.dot_dimension_numbers<[1], [0], [0], [1], [0, 0, 1, 1], [], []>} : vector<17x32xf32>, vector<32x32xf32>, vector<17x32xf32> -> vector<17x32xf32>
    %590 = vector.broadcast %501 : vector<1x32xf32> to vector<17x32xf32>
    %591 = arith.addf %589, %590 : vector<17x32xf32>
    %592 = arith.addf %489, %591 : vector<17x32xf32>
    %cst_260 = arith.constant dense<0.000000e+00> : vector<17xf32>
    %593 = vector.multi_reduction <add>, %592, %cst_260 [1] : vector<17x32xf32> to vector<17xf32>
    %594 = vector.shape_cast %593 : vector<17xf32> to vector<17x1xf32>
    %cst_261 = arith.constant 3.200000e+01 : f32
    %595 = vector.broadcast %cst_261 : f32 to vector<17x1xf32>
    %596 = arith.divf %594, %595 : vector<17x1xf32>
    %597 = vector.broadcast %596 : vector<17x1xf32> to vector<17x32xf32>
    %598 = arith.subf %592, %597 : vector<17x32xf32>
    %599 = arith.mulf %598, %598 : vector<17x32xf32>
    %cst_262 = arith.constant dense<0.000000e+00> : vector<17xf32>
    %600 = vector.multi_reduction <add>, %599, %cst_262 [1] : vector<17x32xf32> to vector<17xf32>
    %601 = vector.shape_cast %600 : vector<17xf32> to vector<17x1xf32>
    %cst_263 = arith.constant 3.200000e+01 : f32
    %602 = vector.broadcast %cst_263 : f32 to vector<17x1xf32>
    %603 = arith.divf %601, %602 : vector<17x1xf32>
    %604 = vector.broadcast %596 : vector<17x1xf32> to vector<17x32xf32>
    %605 = arith.subf %592, %604 : vector<17x32xf32>
    %cst_264 = arith.constant 9.99999974E-6 : f32
    %606 = vector.broadcast %cst_264 : f32 to vector<17x1xf32>
    %607 = arith.addf %603, %606 : vector<17x1xf32>
    %608 = math.rsqrt %607 : vector<17x1xf32>
    %609 = vector.broadcast %608 : vector<17x1xf32> to vector<17x32xf32>
    %610 = arith.mulf %605, %609 : vector<17x32xf32>
    %611 = vector.broadcast %503 : vector<1x32xf32> to vector<17x32xf32>
    %612 = arith.mulf %610, %611 : vector<17x32xf32>
    %613 = vector.broadcast %505 : vector<1x32xf32> to vector<17x32xf32>
    %614 = arith.addf %612, %613 : vector<17x32xf32>
    %cst_265 = arith.constant dense<0.000000e+00> : vector<17x128xf32>
    %615 = tpu.matmul %614, %507, %cst_265 {dimension_numbers = #tpu.dot_dimension_numbers<[1], [0], [0], [1], [0, 0, 1, 1], [], []>} : vector<17x32xf32>, vector<32x128xf32>, vector<17x128xf32> -> vector<17x128xf32>
    %616 = vector.broadcast %509 : vector<1x128xf32> to vector<17x128xf32>
    %617 = arith.addf %615, %616 : vector<17x128xf32>
    %618 = arith.mulf %617, %617 : vector<17x128xf32>
    %619 = arith.mulf %617, %618 : vector<17x128xf32>
    %cst_266 = arith.constant 4.471500e-02 : f32
    %620 = vector.broadcast %cst_266 : f32 to vector<17x128xf32>
    %621 = arith.mulf %620, %619 : vector<17x128xf32>
    %622 = arith.addf %617, %621 : vector<17x128xf32>
    %cst_267 = arith.constant 0.797884583 : f32
    %623 = vector.broadcast %cst_267 : f32 to vector<17x128xf32>
    %624 = arith.mulf %623, %622 : vector<17x128xf32>
    %625 = math.tanh %624 : vector<17x128xf32>
    %cst_268 = arith.constant 1.000000e+00 : f32
    %626 = vector.broadcast %cst_268 : f32 to vector<17x128xf32>
    %627 = arith.addf %626, %625 : vector<17x128xf32>
    %cst_269 = arith.constant 5.000000e-01 : f32
    %628 = vector.broadcast %cst_269 : f32 to vector<17x128xf32>
    %629 = arith.mulf %628, %627 : vector<17x128xf32>
    %630 = arith.mulf %617, %629 : vector<17x128xf32>
    %cst_270 = arith.constant dense<0.000000e+00> : vector<17x32xf32>
    %631 = tpu.matmul %630, %511, %cst_270 {dimension_numbers = #tpu.dot_dimension_numbers<[1], [0], [0], [1], [0, 0, 1, 1], [], []>} : vector<17x128xf32>, vector<128x32xf32>, vector<17x32xf32> -> vector<17x32xf32>
    %632 = vector.broadcast %513 : vector<1x32xf32> to vector<17x32xf32>
    %633 = arith.addf %631, %632 : vector<17x32xf32>
    %634 = arith.addf %592, %633 : vector<17x32xf32>
    %c0_271 = arith.constant 0 : index
    %c0_272 = arith.constant 0 : index
    %635 = vector.load %arg40[%c0_271, %c0_272] : memref<1x32xf32, #tpu.memory_space<vmem>>, vector<1x32xf32>
    %c0_273 = arith.constant 0 : index
    %c0_274 = arith.constant 0 : index
    %636 = vector.load %arg41[%c0_273, %c0_274] : memref<1x32xf32, #tpu.memory_space<vmem>>, vector<1x32xf32>
    %cst_275 = arith.constant dense<0.000000e+00> : vector<17xf32>
    %637 = vector.multi_reduction <add>, %634, %cst_275 [1] : vector<17x32xf32> to vector<17xf32>
    %638 = vector.shape_cast %637 : vector<17xf32> to vector<17x1xf32>
    %cst_276 = arith.constant 3.200000e+01 : f32
    %639 = vector.broadcast %cst_276 : f32 to vector<17x1xf32>
    %640 = arith.divf %638, %639 : vector<17x1xf32>
    %641 = vector.broadcast %640 : vector<17x1xf32> to vector<17x32xf32>
    %642 = arith.subf %634, %641 : vector<17x32xf32>
    %643 = arith.mulf %642, %642 : vector<17x32xf32>
    %cst_277 = arith.constant dense<0.000000e+00> : vector<17xf32>
    %644 = vector.multi_reduction <add>, %643, %cst_277 [1] : vector<17x32xf32> to vector<17xf32>
    %645 = vector.shape_cast %644 : vector<17xf32> to vector<17x1xf32>
    %cst_278 = arith.constant 3.200000e+01 : f32
    %646 = vector.broadcast %cst_278 : f32 to vector<17x1xf32>
    %647 = arith.divf %645, %646 : vector<17x1xf32>
    %648 = vector.broadcast %640 : vector<17x1xf32> to vector<17x32xf32>
    %649 = arith.subf %634, %648 : vector<17x32xf32>
    %cst_279 = arith.constant 9.99999974E-6 : f32
    %650 = vector.broadcast %cst_279 : f32 to vector<17x1xf32>
    %651 = arith.addf %647, %650 : vector<17x1xf32>
    %652 = math.rsqrt %651 : vector<17x1xf32>
    %653 = vector.broadcast %652 : vector<17x1xf32> to vector<17x32xf32>
    %654 = arith.mulf %649, %653 : vector<17x32xf32>
    %655 = vector.broadcast %635 : vector<1x32xf32> to vector<17x32xf32>
    %656 = arith.mulf %654, %655 : vector<17x32xf32>
    %657 = vector.broadcast %636 : vector<1x32xf32> to vector<17x32xf32>
    %658 = arith.addf %656, %657 : vector<17x32xf32>
    %c0_280 = arith.constant 0 : index
    %c0_281 = arith.constant 0 : index
    %659 = vector.load %arg42[%c0_280, %c0_281] : memref<32x48xf32, #tpu.memory_space<vmem>>, vector<32x48xf32>
    %cst_282 = arith.constant dense<0.000000e+00> : vector<17x48xf32>
    %660 = tpu.matmul %658, %659, %cst_282 {dimension_numbers = #tpu.dot_dimension_numbers<[1], [0], [0], [1], [0, 0, 1, 1], [], []>} : vector<17x32xf32>, vector<32x48xf32>, vector<17x48xf32> -> vector<17x48xf32>
    %c0_283 = arith.constant 0 : index
    %c0_284 = arith.constant 0 : index
    %661 = vector.load %arg43[%c0_283, %c0_284] : memref<1x48xf32, #tpu.memory_space<vmem>>, vector<1x48xf32>
    %662 = vector.broadcast %661 : vector<1x48xf32> to vector<17x48xf32>
    %663 = arith.addf %660, %662 : vector<17x48xf32>
    %664 = vector.extract_strided_slice %663 {offsets = [1, 0], sizes = [16, 48], strides = [1, 1]} : vector<17x48xf32> to vector<16x48xf32>
    %c0_285 = arith.constant 0 : index
    %c0_286 = arith.constant 0 : index
    %c0_287 = arith.constant 0 : index
    %665 = vector.load %arg44[%c0_285, %c0_286, %c0_287] : memref<1x16x48xf32, #tpu.memory_space<vmem>>, vector<1x16x48xf32>
    %666 = vector.shape_cast %665 : vector<1x16x48xf32> to vector<16x48xf32>
    %667 = vector.shape_cast %664 : vector<16x48xf32> to vector<1x16x48xf32>
    tpu.vector_store %arg44[%c0_285, %c0_286, %c0_287], %667 {strides = array<i32>} : memref<1x16x48xf32, #tpu.memory_space<vmem>>, vector<1x16x48xf32>,
    %c0_288 = arith.constant 0 : index
    %c0_289 = arith.constant 0 : index
    %c0_290 = arith.constant 0 : index
    %668 = vector.load %arg5[%c0_288, %c0_289, %c0_290] : memref<1x16x48xf32, #tpu.memory_space<vmem>>, vector<1x16x48xf32>
    %669 = vector.shape_cast %668 : vector<1x16x48xf32> to vector<16x48xf32>
    %670 = arith.subf %664, %669 : vector<16x48xf32>
    %c0_291 = arith.constant 0 : index
    %c0_292 = arith.constant 0 : index
    %c0_293 = arith.constant 0 : index
    %671 = vector.load %arg4[%c0_291, %c0_292, %c0_293] : memref<1x16x1xf32, #tpu.memory_space<vmem>>, vector<1x16x1xf32>
    %672 = vector.shape_cast %671 : vector<1x16x1xf32> to vector<16x1xf32>
    %673 = arith.mulf %670, %670 : vector<16x48xf32>
    %674 = vector.broadcast %672 : vector<16x1xf32> to vector<16x48xf32>
    %675 = arith.mulf %673, %674 : vector<16x48xf32>
    %676 = vector.shape_cast %675 : vector<16x48xf32> to vector<1x16x48xf32>
    %cst_294 = arith.constant dense<0.000000e+00> : vector<1xf32>
    %677 = vector.multi_reduction <add>, %676, %cst_294 [1, 2] : vector<1x16x48xf32> to vector<1xf32>
    %678 = vector.shape_cast %677 : vector<1xf32> to vector<1x1x1xf32>
    %679 = vector.extract %678[0, 0, 0] : f32 from vector<1x1x1xf32>
    %680 = vector.broadcast %679 : f32 to vector<1x1xf32>
    %cst_295 = arith.constant 0.020833334 : f32
    %681 = vector.broadcast %cst_295 : f32 to vector<1x1xf32>
    %682 = arith.mulf %680, %681 : vector<1x1xf32>
    %c0_296 = arith.constant 0 : index
    %c0_297 = arith.constant 0 : index
    %c0_298 = arith.constant 0 : index
    %683 = vector.load %arg45[%c0_296, %c0_297, %c0_298] : memref<1x1x1xf32, #tpu.memory_space<vmem>>, vector<1x1x1xf32>
    %684 = vector.shape_cast %683 : vector<1x1x1xf32> to vector<1x1xf32>
    %685 = vector.shape_cast %682 : vector<1x1xf32> to vector<1x1x1xf32>
    tpu.vector_store %arg45[%c0_296, %c0_297, %c0_298], %685 {strides = array<i32>} : memref<1x1x1xf32, #tpu.memory_space<vmem>>, vector<1x1x1xf32>,
    %686 = vector.shape_cast %672 : vector<16x1xf32> to vector<1x16x1xf32>
    %cst_299 = arith.constant dense<0.000000e+00> : vector<1xf32>
    %687 = vector.multi_reduction <add>, %686, %cst_299 [1, 2] : vector<1x16x1xf32> to vector<1xf32>
    %688 = vector.shape_cast %687 : vector<1xf32> to vector<1x1x1xf32>
    %689 = vector.extract %688[0, 0, 0] : f32 from vector<1x1x1xf32>
    %690 = vector.broadcast %689 : f32 to vector<1x1xf32>
    %c0_300 = arith.constant 0 : index
    %c0_301 = arith.constant 0 : index
    %c0_302 = arith.constant 0 : index
    %691 = vector.load %arg46[%c0_300, %c0_301, %c0_302] : memref<1x1x1xf32, #tpu.memory_space<vmem>>, vector<1x1x1xf32>
    %692 = vector.shape_cast %691 : vector<1x1x1xf32> to vector<1x1xf32>
    %693 = vector.shape_cast %690 : vector<1x1xf32> to vector<1x1x1xf32>
    tpu.vector_store %arg46[%c0_300, %c0_301, %c0_302], %693 {strides = array<i32>} : memref<1x1x1xf32, #tpu.memory_space<vmem>>, vector<1x1x1xf32>,
    return
  }
  func.func @transform_0(%arg0: i32) -> (i32, i32, i32) {
    %c0_i32 = arith.constant 0 : i32
    %c0_i32_0 = arith.constant 0 : i32
    %c0_i32_1 = arith.constant 0 : i32
    return %arg0, %c0_i32, %c0_i32_0 : i32, i32, i32
  }
  func.func @transform_1(%arg0: i32) -> (i32, i32, i32) {
    %c0_i32 = arith.constant 0 : i32
    %c0_i32_0 = arith.constant 0 : i32
    %c0_i32_1 = arith.constant 0 : i32
    return %arg0, %c0_i32, %c0_i32_0 : i32, i32, i32
  }
  func.func @transform_2(%arg0: i32) -> (i32, i32, i32) {
    %c0_i32 = arith.constant 0 : i32
    %c0_i32_0 = arith.constant 0 : i32
    %c0_i32_1 = arith.constant 0 : i32
    return %arg0, %c0_i32, %c0_i32_0 : i32, i32, i32
  }
  func.func @transform_3(%arg0: i32) -> (i32, i32, i32) {
    %c0_i32 = arith.constant 0 : i32
    %c0_i32_0 = arith.constant 0 : i32
    %c0_i32_1 = arith.constant 0 : i32
    return %arg0, %c0_i32, %c0_i32_0 : i32, i32, i32
  }
  func.func @transform_4(%arg0: i32) -> (i32, i32, i32) {
    %c0_i32 = arith.constant 0 : i32
    %c0_i32_0 = arith.constant 0 : i32
    %c0_i32_1 = arith.constant 0 : i32
    return %arg0, %c0_i32, %c0_i32_0 : i32, i32, i32
  }
  func.func @transform_5(%arg0: i32) -> (i32, i32) {
    %c0_i32 = arith.constant 0 : i32
    %c0_i32_0 = arith.constant 0 : i32
    %c0_i32_1 = arith.constant 0 : i32
    return %c0_i32, %c0_i32_0 : i32, i32
  }
  func.func @transform_6(%arg0: i32) -> (i32, i32) {
    %c0_i32 = arith.constant 0 : i32
    %c0_i32_0 = arith.constant 0 : i32
    %c0_i32_1 = arith.constant 0 : i32
    return %c0_i32, %c0_i32_0 : i32, i32
  }
  func.func @transform_7(%arg0: i32) -> (i32, i32) {
    %c0_i32 = arith.constant 0 : i32
    %c0_i32_0 = arith.constant 0 : i32
    %c0_i32_1 = arith.constant 0 : i32
    return %c0_i32, %c0_i32_0 : i32, i32
  }
  func.func @transform_8(%arg0: i32) -> (i32, i32) {
    %c0_i32 = arith.constant 0 : i32
    %c0_i32_0 = arith.constant 0 : i32
    %c0_i32_1 = arith.constant 0 : i32
    return %c0_i32, %c0_i32_0 : i32, i32
  }
  func.func @transform_9(%arg0: i32) -> (i32, i32, i32) {
    %c0_i32 = arith.constant 0 : i32
    %c0_i32_0 = arith.constant 0 : i32
    %c0_i32_1 = arith.constant 0 : i32
    %c0_i32_2 = arith.constant 0 : i32
    return %c0_i32, %c0_i32_0, %c0_i32_1 : i32, i32, i32
  }
  func.func @transform_10(%arg0: i32) -> (i32, i32, i32) {
    %c0_i32 = arith.constant 0 : i32
    %c0_i32_0 = arith.constant 0 : i32
    %c0_i32_1 = arith.constant 0 : i32
    %c0_i32_2 = arith.constant 0 : i32
    return %c0_i32, %c0_i32_0, %c0_i32_1 : i32, i32, i32
  }
  func.func @transform_11(%arg0: i32) -> (i32, i32, i32) {
    %c0_i32 = arith.constant 0 : i32
    %c0_i32_0 = arith.constant 0 : i32
    %c0_i32_1 = arith.constant 0 : i32
    %c0_i32_2 = arith.constant 0 : i32
    return %c0_i32, %c0_i32_0, %c0_i32_1 : i32, i32, i32
  }
  func.func @transform_12(%arg0: i32) -> (i32, i32, i32) {
    %c0_i32 = arith.constant 0 : i32
    %c0_i32_0 = arith.constant 0 : i32
    %c0_i32_1 = arith.constant 0 : i32
    %c0_i32_2 = arith.constant 0 : i32
    return %c0_i32, %c0_i32_0, %c0_i32_1 : i32, i32, i32
  }
  func.func @transform_13(%arg0: i32) -> (i32, i32, i32) {
    %c0_i32 = arith.constant 0 : i32
    %c0_i32_0 = arith.constant 0 : i32
    %c0_i32_1 = arith.constant 0 : i32
    %c0_i32_2 = arith.constant 0 : i32
    return %c0_i32, %c0_i32_0, %c0_i32_1 : i32, i32, i32
  }
  func.func @transform_14(%arg0: i32) -> (i32, i32, i32) {
    %c0_i32 = arith.constant 0 : i32
    %c0_i32_0 = arith.constant 0 : i32
    %c0_i32_1 = arith.constant 0 : i32
    %c0_i32_2 = arith.constant 0 : i32
    return %c0_i32, %c0_i32_0, %c0_i32_1 : i32, i32, i32
  }
  func.func @transform_15(%arg0: i32) -> (i32, i32, i32) {
    %c0_i32 = arith.constant 0 : i32
    %c0_i32_0 = arith.constant 0 : i32
    %c0_i32_1 = arith.constant 0 : i32
    %c0_i32_2 = arith.constant 0 : i32
    return %c0_i32, %c0_i32_0, %c0_i32_1 : i32, i32, i32
  }
  func.func @transform_16(%arg0: i32) -> (i32, i32, i32) {
    %c0_i32 = arith.constant 0 : i32
    %c0_i32_0 = arith.constant 0 : i32
    %c0_i32_1 = arith.constant 0 : i32
    %c0_i32_2 = arith.constant 0 : i32
    return %c0_i32, %c0_i32_0, %c0_i32_1 : i32, i32, i32
  }
  func.func @transform_17(%arg0: i32) -> (i32, i32, i32) {
    %c0_i32 = arith.constant 0 : i32
    %c0_i32_0 = arith.constant 0 : i32
    %c0_i32_1 = arith.constant 0 : i32
    %c0_i32_2 = arith.constant 0 : i32
    return %c0_i32, %c0_i32_0, %c0_i32_1 : i32, i32, i32
  }
  func.func @transform_18(%arg0: i32) -> (i32, i32, i32) {
    %c0_i32 = arith.constant 0 : i32
    %c0_i32_0 = arith.constant 0 : i32
    %c0_i32_1 = arith.constant 0 : i32
    %c0_i32_2 = arith.constant 0 : i32
    return %c0_i32, %c0_i32_0, %c0_i32_1 : i32, i32, i32
  }
  func.func @transform_19(%arg0: i32) -> (i32, i32, i32) {
    %c0_i32 = arith.constant 0 : i32
    %c0_i32_0 = arith.constant 0 : i32
    %c0_i32_1 = arith.constant 0 : i32
    %c0_i32_2 = arith.constant 0 : i32
    return %c0_i32, %c0_i32_0, %c0_i32_1 : i32, i32, i32
  }
  func.func @transform_20(%arg0: i32) -> (i32, i32, i32) {
    %c0_i32 = arith.constant 0 : i32
    %c0_i32_0 = arith.constant 0 : i32
    %c0_i32_1 = arith.constant 0 : i32
    %c0_i32_2 = arith.constant 0 : i32
    return %c0_i32, %c0_i32_0, %c0_i32_1 : i32, i32, i32
  }
  func.func @transform_21(%arg0: i32) -> (i32, i32) {
    %c0_i32 = arith.constant 0 : i32
    %c0_i32_0 = arith.constant 0 : i32
    %c0_i32_1 = arith.constant 0 : i32
    return %c0_i32, %c0_i32_0 : i32, i32
  }
  func.func @transform_22(%arg0: i32) -> (i32, i32) {
    %c0_i32 = arith.constant 0 : i32
    %c0_i32_0 = arith.constant 0 : i32
    %c0_i32_1 = arith.constant 0 : i32
    return %c0_i32, %c0_i32_0 : i32, i32
  }
  func.func @transform_23(%arg0: i32) -> (i32, i32) {
    %c0_i32 = arith.constant 0 : i32
    %c0_i32_0 = arith.constant 0 : i32
    %c0_i32_1 = arith.constant 0 : i32
    return %c0_i32, %c0_i32_0 : i32, i32
  }
  func.func @transform_24(%arg0: i32) -> (i32, i32) {
    %c0_i32 = arith.constant 0 : i32
    %c0_i32_0 = arith.constant 0 : i32
    %c0_i32_1 = arith.constant 0 : i32
    return %c0_i32, %c0_i32_0 : i32, i32
  }
  func.func @transform_25(%arg0: i32) -> (i32, i32) {
    %c0_i32 = arith.constant 0 : i32
    %c0_i32_0 = arith.constant 0 : i32
    %c0_i32_1 = arith.constant 0 : i32
    return %c0_i32, %c0_i32_0 : i32, i32
  }
  func.func @transform_26(%arg0: i32) -> (i32, i32) {
    %c0_i32 = arith.constant 0 : i32
    %c0_i32_0 = arith.constant 0 : i32
    %c0_i32_1 = arith.constant 0 : i32
    return %c0_i32, %c0_i32_0 : i32, i32
  }
  func.func @transform_27(%arg0: i32) -> (i32, i32, i32) {
    %c0_i32 = arith.constant 0 : i32
    %c0_i32_0 = arith.constant 0 : i32
    %c0_i32_1 = arith.constant 0 : i32
    %c0_i32_2 = arith.constant 0 : i32
    return %c0_i32, %c0_i32_0, %c0_i32_1 : i32, i32, i32
  }
  func.func @transform_28(%arg0: i32) -> (i32, i32, i32) {
    %c0_i32 = arith.constant 0 : i32
    %c0_i32_0 = arith.constant 0 : i32
    %c0_i32_1 = arith.constant 0 : i32
    %c0_i32_2 = arith.constant 0 : i32
    return %c0_i32, %c0_i32_0, %c0_i32_1 : i32, i32, i32
  }
  func.func @transform_29(%arg0: i32) -> (i32, i32, i32) {
    %c0_i32 = arith.constant 0 : i32
    %c0_i32_0 = arith.constant 0 : i32
    %c0_i32_1 = arith.constant 0 : i32
    %c0_i32_2 = arith.constant 0 : i32
    return %c0_i32, %c0_i32_0, %c0_i32_1 : i32, i32, i32
  }
  func.func @transform_30(%arg0: i32) -> (i32, i32, i32) {
    %c0_i32 = arith.constant 0 : i32
    %c0_i32_0 = arith.constant 0 : i32
    %c0_i32_1 = arith.constant 0 : i32
    %c0_i32_2 = arith.constant 0 : i32
    return %c0_i32, %c0_i32_0, %c0_i32_1 : i32, i32, i32
  }
  func.func @transform_31(%arg0: i32) -> (i32, i32, i32) {
    %c0_i32 = arith.constant 0 : i32
    %c0_i32_0 = arith.constant 0 : i32
    %c0_i32_1 = arith.constant 0 : i32
    %c0_i32_2 = arith.constant 0 : i32
    return %c0_i32, %c0_i32_0, %c0_i32_1 : i32, i32, i32
  }
  func.func @transform_32(%arg0: i32) -> (i32, i32, i32) {
    %c0_i32 = arith.constant 0 : i32
    %c0_i32_0 = arith.constant 0 : i32
    %c0_i32_1 = arith.constant 0 : i32
    %c0_i32_2 = arith.constant 0 : i32
    return %c0_i32, %c0_i32_0, %c0_i32_1 : i32, i32, i32
  }
  func.func @transform_33(%arg0: i32) -> (i32, i32, i32) {
    %c0_i32 = arith.constant 0 : i32
    %c0_i32_0 = arith.constant 0 : i32
    %c0_i32_1 = arith.constant 0 : i32
    %c0_i32_2 = arith.constant 0 : i32
    return %c0_i32, %c0_i32_0, %c0_i32_1 : i32, i32, i32
  }
  func.func @transform_34(%arg0: i32) -> (i32, i32, i32) {
    %c0_i32 = arith.constant 0 : i32
    %c0_i32_0 = arith.constant 0 : i32
    %c0_i32_1 = arith.constant 0 : i32
    %c0_i32_2 = arith.constant 0 : i32
    return %c0_i32, %c0_i32_0, %c0_i32_1 : i32, i32, i32
  }
  func.func @transform_35(%arg0: i32) -> (i32, i32, i32) {
    %c0_i32 = arith.constant 0 : i32
    %c0_i32_0 = arith.constant 0 : i32
    %c0_i32_1 = arith.constant 0 : i32
    %c0_i32_2 = arith.constant 0 : i32
    return %c0_i32, %c0_i32_0, %c0_i32_1 : i32, i32, i32
  }
  func.func @transform_36(%arg0: i32) -> (i32, i32, i32) {
    %c0_i32 = arith.constant 0 : i32
    %c0_i32_0 = arith.constant 0 : i32
    %c0_i32_1 = arith.constant 0 : i32
    %c0_i32_2 = arith.constant 0 : i32
    return %c0_i32, %c0_i32_0, %c0_i32_1 : i32, i32, i32
  }
  func.func @transform_37(%arg0: i32) -> (i32, i32, i32) {
    %c0_i32 = arith.constant 0 : i32
    %c0_i32_0 = arith.constant 0 : i32
    %c0_i32_1 = arith.constant 0 : i32
    %c0_i32_2 = arith.constant 0 : i32
    return %c0_i32, %c0_i32_0, %c0_i32_1 : i32, i32, i32
  }
  func.func @transform_38(%arg0: i32) -> (i32, i32, i32) {
    %c0_i32 = arith.constant 0 : i32
    %c0_i32_0 = arith.constant 0 : i32
    %c0_i32_1 = arith.constant 0 : i32
    %c0_i32_2 = arith.constant 0 : i32
    return %c0_i32, %c0_i32_0, %c0_i32_1 : i32, i32, i32
  }
  func.func @transform_39(%arg0: i32) -> (i32, i32) {
    %c0_i32 = arith.constant 0 : i32
    %c0_i32_0 = arith.constant 0 : i32
    %c0_i32_1 = arith.constant 0 : i32
    return %c0_i32, %c0_i32_0 : i32, i32
  }
  func.func @transform_40(%arg0: i32) -> (i32, i32) {
    %c0_i32 = arith.constant 0 : i32
    %c0_i32_0 = arith.constant 0 : i32
    %c0_i32_1 = arith.constant 0 : i32
    return %c0_i32, %c0_i32_0 : i32, i32
  }
  func.func @transform_41(%arg0: i32) -> (i32, i32) {
    %c0_i32 = arith.constant 0 : i32
    %c0_i32_0 = arith.constant 0 : i32
    %c0_i32_1 = arith.constant 0 : i32
    return %c0_i32, %c0_i32_0 : i32, i32
  }
  func.func @transform_42(%arg0: i32) -> (i32, i32) {
    %c0_i32 = arith.constant 0 : i32
    %c0_i32_0 = arith.constant 0 : i32
    %c0_i32_1 = arith.constant 0 : i32
    return %c0_i32, %c0_i32_0 : i32, i32
  }
  func.func @transform_43(%arg0: i32) -> (i32, i32, i32) {
    %c0_i32 = arith.constant 0 : i32
    %c0_i32_0 = arith.constant 0 : i32
    %c0_i32_1 = arith.constant 0 : i32
    return %arg0, %c0_i32, %c0_i32_0 : i32, i32, i32
  }
  func.func @transform_44(%arg0: i32) -> (i32, i32, i32) {
    %c0_i32 = arith.constant 0 : i32
    %c0_i32_0 = arith.constant 0 : i32
    %c0_i32_1 = arith.constant 0 : i32
    return %arg0, %c0_i32, %c0_i32_0 : i32, i32, i32
  }
  func.func @transform_45(%arg0: i32) -> (i32, i32, i32) {
    %c0_i32 = arith.constant 0 : i32
    %c0_i32_0 = arith.constant 0 : i32
    %c0_i32_1 = arith.constant 0 : i32
    return %arg0, %c0_i32, %c0_i32_0 : i32, i32, i32
  }
}

</mosaic_0001>

<bundles_post_ra>
// kernel: tpu_custom_call.1
= control target key start
LH: loop header
LB: loop body
LE: loop exit
PB: predicated region body
PF: predicated region fallthrough
CT: control target
= control target key end

     0   :  { %6 = vsyncpa [#allocation3], 0  ;;  %s161_s0 = inlined_call_operand.hbm [shape: f32[8,128], index: 0, kind: input, shape index: {}]   ;;  %s162_s1 = inlined_call_operand.hbm [shape: f32[8,128], index: 1, kind: output, shape index: {}]  }
   0x1   :  { %7 = vsyncpa [#allocation4], 0  ;;  %s13_s8 = sshll.u32 %s161_s0, 4  ;;  %s143_s9 = smov [#allocation2]   ;;  %s14_s8 = int_to_ptr.hbm [resolvable:$true] %s13_s8 }
   0x2   :  { %s15_s10 = sshll.u32 %s143_s9, 4  ;;  %s16_s10 = int_to_ptr.vmem [resolvable:$true] %s15_s10 }
   0x3   :  { %18 = dma.hbm_to_vmem [thread:$0]  %s14_s8, 128, %s16_s10, [#allocation3]  }
   0x4   :  { %139 = dma.done.wait [#allocation3], 128  }
   0x5   :  { %140 = vsyncadd [#allocation3], 4294967168  ;;  %v23_v0 = vld [vmem:[#allocation2] sm:$0xff]  ;;  %s144_s0 = smov [#allocation5]   ;;  %s76_s14 = sshll.u32 %s162_s1, 4  ;;  %s77_s14 = int_to_ptr.hbm [resolvable:$true] %s76_s14 }
   0x6   :  { %v25_v1 = vmul.f32 0.70710677, %v23_v0  ;;  %v24_v36 = vmul.f32 0.5, %v23_v0  ;;  %s74_s11 = sshll.u32 %s144_s0, 4  ;;  %s75_s11 = int_to_ptr.vmem [resolvable:$true] %s74_s11 }
   0x8   :  { %v26_v2 = vmul.f32 %v25_v1, %v25_v1 }
   0xa   :  { %v27_v3 = vmin.f32 %v26_v2, 16.0 }
   0xc   :  { %v28_v4 = vmul.f32 2.1237322e-06, %v27_v3  ;;  %v39_v5 = vmul.f32 3.8918573e-05, %v27_v3 }
   0xe   :  { %v29_v6 = vadd.f32 0.00028619796, %v28_v4  ;;  %v40_v7 = vadd.f32 0.001143296, %v39_v5 }
  0x10   :  { %v30_v8 = vmul.f32 %v29_v6, %v27_v3  ;;  %v41_v9 = vmul.f32 %v40_v7, %v27_v3 }
  0x12   :  { %v31_v10 = vadd.f32 0.0036580483, %v30_v8  ;;  %v42_v11 = vadd.f32 0.014752088, %v41_v9 }
  0x14   :  { %v32_v12 = vmul.f32 %v31_v10, %v27_v3  ;;  %v43_v13 = vmul.f32 %v42_v11, %v27_v3 }
  0x16   :  { %v44_v14 = vadd.f32 0.112945676, %v43_v13  ;;  %v33_v15 = vadd.f32 0.05243302, %v32_v12 }
  0x18   :  { %v45_v16 = vmul.f32 %v44_v14, %v27_v3  ;;  %v34_v18 = vmul.f32 %v33_v15, %v27_v3 }
  0x1a   :  { %v46_v17 = vadd.f32 0.4994258, %v45_v16  ;;  %v35_v21 = vadd.f32 0.18741608, %v34_v18 }
  0x1c   :  { %v47_v19 = vmul.f32 %v46_v17, %v27_v3  ;;  %v36_v22 = vmul.f32 %v35_v21, %v27_v3 }
  0x1e   :  { %v48_v20 = vadd.f32 1.0, %v47_v19  ;;  %v37_v25 = vadd.f32 1.1283791, %v36_v22 }
  0x20   :  { %89 = vrcp.f32 %v48_v20  ;;  %v60_v26 = vand.u32 2147483648, %v48_v20  ;;  %vm54_vm0 = vweird.f32 %v48_v20  ;;  %v58_v28 = vand.u32 2147483647, %v48_v20 }
  0x21   :  { %v38_v31 = vmul.f32 %v37_v25, %v25_v1 }
  0x22   :  { %v61_v30 = vor.u32 1.1754944e-38, %v60_v26  ;;  %vm59_vm3 = vcmp.eq.f32.partialorder %v58_v28, 8.507059e+37 }
  0x26   :  { %v90_v23 = vpop.eup %89 }
  0x27   :  { %v50_v24 = vmul.f32 %v90_v23, %v48_v20  ;;  %vm55_vm1 = vweird.f32 %v90_v23 }
  0x28   :  { %vm56_vm2 = vmor %vm54_vm0, %vm55_vm1 }
  0x29   :  { %v51_v27 = vsub.f32 1.0, %v50_v24 }
  0x2b   :  { %v52_v29 = vmul.f32 %v90_v23, %v51_v27 }
  0x2d   :  { %v53_v32 = vadd.f32 %v90_v23, %v52_v29 }
  0x2f   :  { %v57_v33 = vsel %vm56_vm2, %v90_v23, %v53_v32 }
  0x30   :  { %v62_v34 = vsel %vm59_vm3, %v61_v30, %v57_v33 }
  0x31   :  { %v63_v35 = vmul.f32 %v62_v34, %v38_v31 }
  0x33   :  { %v86_v37 = vclamps-f32 %v63_v35, 1.0 }
  0x35   :  { %v66_v38 = vadd.f32 1.0, %v86_v37 }
  0x37   :  { %v67_v39 = vmul.f32 %v66_v38, %v24_v36 }
  0x39   :  { %68 = vst [vmem:[#allocation5] sm:$0xff] %v67_v39 }
  0x3a   :  { %79 = dma.vmem_to_hbm [thread:$0]  %s75_s11, 128, %s77_s14, [#allocation4]  }
  0x3b   :  { %141 = dma.done.wait [#allocation4], 128  }
  0x3c   :  { %142 = vsyncadd [#allocation4], 4294967168 }
  0x3d   :  { %84 = vsyncpa [#allocation3], 1 }
  0x3e   :  { %85 = vsyncpa [#allocation4], 1 }

// kernel: mae_forward.1
= control target key start
LH: loop header
LB: loop body
LE: loop exit
PB: predicated region body
PF: predicated region fallthrough
CT: control target
= control target key end

     0   :  { %s5702_s6 = smov 1   ;;  %s5703_s10 = smov 2   ;;  %s7128_s0 = inlined_call_operand.smem [shape: u32[46], index: -1, kind: input, shape index: {}] }
   0x1   :  { %s5767_s5 = sld [smem:[%s7128_s0]]   ;;  %s5704_s14 = smov 3  }
   0x2   :  { %s5772_s9 = sld [smem:[%s7128_s0 + %s5702_s6]]   ;;  %s5705_s18 = smov 4  }
   0x3   :  { %s5777_s13 = sld [smem:[%s7128_s0 + %s5703_s10]]   ;;  %s5706_s22 = smov 5  }
   0x4   :  { %s5782_s17 = sld [smem:[%s7128_s0 + %s5704_s14]]   ;;  %s5707_s26 = smov 6  }
   0x5   :  { %s5787_s21 = sld [smem:[%s7128_s0 + %s5705_s18]]   ;;  %s5708_s30 = smov 7  }
   0x6   :  { %s5792_s25 = sld [smem:[%s7128_s0 + %s5706_s22]]   ;;  %s5709_s4 = smov 8  }
   0x7   :  { %7187 = sst [smem:[#allocation8_spill]] %s5767_s5  ;;  %s5710_s10 = smov 9  }
   0x8   :  { %7188 = sst [smem:[#allocation9_spill]] %s5772_s9  ;;  %s5711_s15 = smov 10  }
   0x9   :  { %7189 = sst [smem:[#allocation10_spill]] %s5777_s13  ;;  %s5712_s20 = smov 11  }
   0xa   :  { %7190 = sst [smem:[#allocation11_spill]] %s5782_s17  ;;  %s5714_s1 = smov 13  }
   0xb   :  { %7191 = sst [smem:[#allocation12_spill]] %s5787_s21  ;;  %s5715_s7 = smov 14  }
   0xc   :  { %7192 = sst [smem:[#allocation13_spill]] %s5792_s25  ;;  %s5717_s22 = smov 16  }
   0xd   :  { %s5797_s29 = sld [smem:[%s7128_s0 + %s5707_s26]]   ;;  %s5713_s26 = smov 12  }
   0xe   :  { %s5802_s3 = sld [smem:[%s7128_s0 + %s5708_s30]]   ;;  %s5718_s28 = smov 17  }
   0xf   :  { %s5807_s8 = sld [smem:[%s7128_s0 + %s5709_s4]]  }
  0x10   :  { %s5812_s14 = sld [smem:[%s7128_s0 + %s5710_s10]]  }
  0x11   :  { %s5817_s19 = sld [smem:[%s7128_s0 + %s5711_s15]]   ;;  %s5716_s15 = smov 15  }
  0x12   :  { %s5822_s24 = sld [smem:[%s7128_s0 + %s5712_s20]]  }
  0x13   :  { %7193 = sst [smem:[#allocation14_spill]] %s5797_s29 }
  0x14   :  { %7194 = sst [smem:[#allocation15_spill]] %s5802_s3 }
  0x15   :  { %7195 = sst [smem:[#allocation16_spill]] %s5807_s8 }
  0x16   :  { %7196 = sst [smem:[#allocation17_spill]] %s5812_s14 }
  0x17   :  { %7197 = sst [smem:[#allocation18_spill]] %s5817_s19 }
  0x18   :  { %7198 = sst [smem:[#allocation19_spill]] %s5822_s24 }
  0x19   :  { %s5827_s30 = sld [smem:[%s7128_s0 + %s5713_s26]]  }
  0x1a   :  { %s5832_s6 = sld [smem:[%s7128_s0 + %s5714_s1]]  }
  0x1b   :  { %s5837_s12 = sld [smem:[%s7128_s0 + %s5715_s7]]   ;;  %s5719_s7 = smov 18  }
  0x1c   :  { %s5842_s20 = sld [smem:[%s7128_s0 + %s5716_s15]]   ;;  %s5720_s15 = smov 19  }
  0x1d   :  { %s5847_s27 = sld [smem:[%s7128_s0 + %s5717_s22]]   ;;  %s5721_s22 = smov 20  }
  0x1e   :  { %s5852_s4 = sld [smem:[%s7128_s0 + %s5718_s28]]   ;;  %s5722_s28 = smov 21  }
  0x1f   :  { %s5857_s21 = sld [smem:[%s7128_s0 + %s5719_s7]]   ;;  %s5723_s7 = smov 22  }
  0x20   :  { %7199 = sst [smem:[#allocation20_spill]] %s5832_s6 }
  0x21   :  { %7200 = sst [smem:[#allocation21_spill]] %s5837_s12 }
  0x22   :  { %7201 = sst [smem:[#allocation22_spill]] %s5842_s20 }
  0x23   :  { %7202 = sst [smem:[#allocation23_spill]] %s5847_s27 }
  0x24   :  { %7203 = sst [smem:[#allocation24_spill]] %s5852_s4 }
  0x25   :  { %7204 = sst [smem:[#allocation25_spill]] %s5857_s21 }
  0x26   :  { %s5862_s17 = sld [smem:[%s7128_s0 + %s5720_s15]]   ;;  %s5724_s15 = smov 23  }
  0x27   :  { %s5867_s13 = sld [smem:[%s7128_s0 + %s5721_s22]]   ;;  %s5725_s22 = smov 24  }
  0x28   :  { %s5872_s27 = sld [smem:[%s7128_s0 + %s5722_s28]]   ;;  %s5726_s28 = smov 25  }
  0x29   :  { %s5877_s21 = sld [smem:[%s7128_s0 + %s5723_s7]]   ;;  %s5727_s7 = smov 26  }
  0x2a   :  { %s5882_s20 = sld [smem:[%s7128_s0 + %s5724_s15]]   ;;  %s5728_s15 = smov 27  }
  0x2c   :  { %7205 = sst [smem:[#allocation26_spill]] %s5862_s17 }
  0x2d   :  { %7206 = sst [smem:[#allocation27_spill]] %s5867_s13 }
  0x2e   :  { %7207 = sst [smem:[#allocation28_spill]] %s5872_s27 }
  0x2f   :  { %7208 = sst [smem:[#allocation29_spill]] %s5877_s21 }
  0x30   :  { %7209 = sst [smem:[#allocation30_spill]] %s5882_s20 }
  0x31   :  { %s5887_s13 = sld [smem:[%s7128_s0 + %s5725_s22]]   ;;  %s5729_s22 = smov 28  }
  0x32   :  { %s5892_s27 = sld [smem:[%s7128_s0 + %s5726_s28]]   ;;  %s5730_s28 = smov 29  }
  0x33   :  { %s5897_s21 = sld [smem:[%s7128_s0 + %s5727_s7]]   ;;  %s5731_s7 = smov 30  }
  0x34   :  { %s5902_s20 = sld [smem:[%s7128_s0 + %s5728_s15]]   ;;  %s5732_s15 = smov 31  }
  0x37   :  { %7210 = sst [smem:[#allocation31_spill]] %s5887_s13 }
  0x38   :  { %7211 = sst [smem:[#allocation32_spill]] %s5892_s27 }
  0x39   :  { %7212 = sst [smem:[#allocation33_spill]] %s5897_s21 }
  0x3a   :  { %7213 = sst [smem:[#allocation34_spill]] %s5902_s20 }
  0x3b   :  { %s5907_s13 = sld [smem:[%s7128_s0 + %s5729_s22]]   ;;  %s5733_s22 = smov 32  }
  0x3c   :  { %s5912_s27 = sld [smem:[%s7128_s0 + %s5730_s28]]   ;;  %s5734_s28 = smov 33  }
  0x3d   :  { %s5917_s21 = sld [smem:[%s7128_s0 + %s5731_s7]]   ;;  %s5735_s7 = smov 34  }
  0x3e   :  { %s5922_s20 = sld [smem:[%s7128_s0 + %s5732_s15]]   ;;  %s5736_s15 = smov 35  }
  0x41   :  { %7214 = sst [smem:[#allocation35_spill]] %s5907_s13 }
  0x42   :  { %7215 = sst [smem:[#allocation36_spill]] %s5912_s27 }
  0x43   :  { %7216 = sst [smem:[#allocation37_spill]] %s5917_s21 }
  0x44   :  { %7217 = sst [smem:[#allocation38_spill]] %s5922_s20 }
  0x45   :  { %s5927_s13 = sld [smem:[%s7128_s0 + %s5733_s22]]   ;;  %s5737_s22 = smov 36  }
  0x46   :  { %s5932_s27 = sld [smem:[%s7128_s0 + %s5734_s28]]   ;;  %s5738_s28 = smov 37  }
  0x47   :  { %s5937_s21 = sld [smem:[%s7128_s0 + %s5735_s7]]   ;;  %s5739_s7 = smov 38  }
  0x48   :  { %s5942_s20 = sld [smem:[%s7128_s0 + %s5736_s15]]   ;;  %s5740_s15 = smov 39  }
  0x4b   :  { %7218 = sst [smem:[#allocation39_spill]] %s5927_s13 }
  0x4c   :  { %7219 = sst [smem:[#allocation40_spill]] %s5932_s27 }
  0x4d   :  { %7220 = sst [smem:[#allocation41_spill]] %s5937_s21 }
  0x4e   :  { %7221 = sst [smem:[#allocation42_spill]] %s5942_s20 }
  0x4f   :  { %s5947_s13 = sld [smem:[%s7128_s0 + %s5737_s22]]   ;;  %s5741_s22 = smov 40  }
  0x50   :  { %s5952_s27 = sld [smem:[%s7128_s0 + %s5738_s28]]   ;;  %s5742_s28 = smov 41  }
  0x51   :  { %s5957_s21 = sld [smem:[%s7128_s0 + %s5739_s7]]   ;;  %s5743_s7 = smov 42  }
  0x52   :  { %s5962_s20 = sld [smem:[%s7128_s0 + %s5740_s15]]   ;;  %s5744_s15 = smov 43  }
  0x55   :  { %7222 = sst [smem:[#allocation43_spill]] %s5947_s13 }
  0x56   :  { %7223 = sst [smem:[#allocation44_spill]] %s5952_s27 }
  0x57   :  { %7224 = sst [smem:[#allocation45_spill]] %s5957_s21 }
  0x58   :  { %7225 = sst [smem:[#allocation46_spill]] %s5962_s20 }
  0x59   :  { %s5967_s13 = sld [smem:[%s7128_s0 + %s5741_s22]]   ;;  %s5745_s22 = smov 44  }
  0x5a   :  { %s5972_s27 = sld [smem:[%s7128_s0 + %s5742_s28]]   ;;  %s5746_s28 = smov 45  }
  0x5b   :  { %s5977_s21 = sld [smem:[%s7128_s0 + %s5743_s7]]  }
  0x5c   :  { %s5982_s20 = sld [smem:[%s7128_s0 + %s5744_s15]]  }
  0x5f   :  { %7226 = sst [smem:[#allocation47_spill]] %s5967_s13 }
  0x60   :  { %7227 = sst [smem:[#allocation48_spill]] %s5972_s27 }
  0x61   :  { %7228 = sst [smem:[#allocation49_spill]] %s5977_s21 }
  0x62   :  { %s5987_s13 = sld [smem:[%s7128_s0 + %s5745_s22]]  }
  0x63   :  { %s5992_s27 = sld [smem:[%s7128_s0 + %s5746_s28]]  }
  0x64   :  { %97 = vsyncpa [#allocation3], 0 }
  0x65   :  { %98 = vsyncpa [#allocation4], 0 }
  0x66   :  { %100 = vsyncpa [#allocation4 + $0x1], 0  ;;  %s5994_s7 = smov 0   ;;  %s5996_s10 = smov 0  }
  0x67   :  { %s5998_s11 = smov 0   ;;  %s6000_s15 = smov 0  }
  0x68 LB: > { %s7229_s25 = sld [smem:[#allocation13_spill]]  ;;  %s6015_s0 = sadd.s32 4294967295, %s5700_s15   ;;  %s5692_s10 = sphi %s5996_s10, %s7292_s10   ;;  %s5688_s7 = sphi %s5994_s7, %s7291_s7   ;;  %s5700_s15 = sphi %s6000_s15, %s7288_s15   ;;  %s5696_s11 = sphi %s5998_s11, %s7290_s11  }
  0x69   : > { %s7230_s24 = sld [smem:[#allocation19_spill]]  ;;  %s4980_s16 = sadd.s32 4294967294, %s5700_s15  }
  0x6a   : > { %s7231_s21 = sld [smem:[#allocation49_spill]]  ;;  %s6019_s18 = sadd.s32 1, %s5700_s15  }
  0x6b   : > { %s7232_s19 = sld [smem:[#allocation18_spill]]  ;;  %s1041_s22 = sadd.s32 1, %s5696_s11 }
  0x6c   : > { %s7233_s17 = sld [smem:[#allocation26_spill]]  ;;  %s1038_s23 = ssub.s32 %s5700_s15, %s6019_s18 }
  0x6d   : > { %s7234_s14 = sld [smem:[#allocation17_spill]]  ;;  %p1051_p0 = scmp.ne.s32.totalorder %s5696_s11, %s5692_s10 }
  0x6e   : > { %s7235_s12 = sld [smem:[#allocation21_spill]]  ;;  %p1039_p1 = scmp.eq.s32.totalorder %s1038_s23, 0 }
  0x6f   : > { %s7236_s6 = sld [smem:[#allocation20_spill]]  ;;  %p1052_p2 = scmp.eq.s32.totalorder %s6015_s0, 1 }
  0x70   : > { %s7237_s4 = sld [smem:[#allocation24_spill]]  ;;  %p1057_p3 = scmp.ne.s32.totalorder %s5692_s10, %s5688_s7 }
  0x71   : > { %s7238_s3 = sld [smem:[#allocation15_spill]]  ;;  %p1058_p4 = scmp.eq.s32.totalorder %s4980_s16, 1 }
  0x72   : > { %7239 = sst [smem:[#allocation50_spill]] %s5696_s11  ;;  %p6032_p5 = por %p1052_p2, %p1051_p0 }
  0x73   : > { %7240 = sst [smem:[#allocation51_spill]] %s6019_s18  ;;  %p6036_p6 = por %p1058_p4, %p1057_p3 }
  0x74   : > { %s6030_s26 = scalar_select %p1039_p1, %s5696_s11, %s1041_s22  }
  0x75   : > { %s7243_s1 = scalar_select %p6036_p6, 1, 0 }
  0x76   : > { %7241 = sst [smem:[#allocation52_spill]] %s6030_s26  ;;  %p4981_p7 = scmp.ge.s32.totalorder %s5700_s15, 1 }
  0x77   : > { %7244 = sst [smem:[#allocation53_spill]] %s7243_s1  ;;  %p1117_p8 = scmp.lt.s32.totalorder %s5700_s15, 3 }
  0x78   : > { %p5244_p9 = scmp.eq.s32.totalorder %s6015_s0, 0  ;;  %s1240_s16 = sshll.u32 %s7231_s21, 4  ;;  %s1241_s16 = int_to_ptr.hbm [resolvable:$true] %s1240_s16 }
  0x79   : > { %p6043_p10 = pnand %p4981_p7, %p1117_p8  ;;  %s5747_s22 = smov [#allocation2]  }
  0x7a   : > { %s1242_s23 = sshll.u32 %s5747_s22, 4  ;;  %s5604_s11 = sshra.s32 %s1241_s16, 4  ;;  %s1243_s23 = int_to_ptr.vmem [resolvable:$true] %s1242_s23  ;;  %s5605_s11 = int_to_ptr.hbm [resolvable:$true] %s5604_s11 }
  0x7b   : > { %p5236_p11 = pneg %p6043_p10  ;;  %s5606_s18 = scalar_lea.hbm %s5605_s11, 1 }
  0x7c   : > { %p5607_p13 = scmp.ne.s32.totalorder %s5605_s11, %s5606_s18  ;;  %s5611_s1 = scalar_lea.hbm %s7231_s21, 1 }
  0x7d   : > { %p6052_p12 = pnand %p5244_p9, %p5236_p11  ;;  %p5612_p3 = scmp.lt.s32.totalorder %s5605_s11, %s7231_s21 }
  0x7e   : > { %p5613_p4 = scmp.lt.s32.totalorder %s5611_s1, %s5606_s18 }
  0x7f   : > { %p5608_p0 = pneg %p6052_p12 }
  0x80   : > { %p5614_p7 = por %p5613_p4, %p5612_p3 }
  0x81   : > { %p5609_p1 = pnand %p5608_p0, %p5607_p13 }
  0x83   : > { %p5610_p2 = pneg %p5609_p1 }
  0x85   : > { %p5615_p8 = pnand %p5614_p7, %p5610_p2 }
  0x87   : > { %5618 = shalt.err (!%p5615_p8)
}
  0x88   : > { %5239 = dma.hbm_to_vmem [thread:$0]  (!%p6052_p12), %s1241_s16, 16, %s1243_s23, [#allocation3]  }
  0x89   : > { %1294 = sbr.rel (%p6043_p10) target bundleno = 9560 (0x2558), region = 192 }
  0x8e   : > { %5679 = dma.done.wait (%p5244_p9), [#allocation3], 16  }
  0x8f   : > { %5681 = vsyncadd (%p5244_p9), [#allocation3], 4294967280  ;;  %s7247_s5 = sld [smem:[#allocation8_spill]]  ;;  %p1428_p11 = scmp.lt.s32.totalorder %s6015_s0, 1  ;;  %v1465_v0 = vld [vmem:[%s7229_s25 + $0x28] sm:$0xff]  ;;  %v1464_v1 = vld [vmem:[%s7229_s25 + $0x20] sm:$0xff] }
  0x90   : > { %1487 = vmatpush.msra.mxu0 %v1465_v0  ;;  %v1463_v2 = vld [vmem:[%s7229_s25 + $0x18] sm:$0xff]  ;;  %s7248_s29 = sld [smem:[#allocation14_spill]]  ;;  %v1462_v3 = vld [vmem:[%s7229_s25 + $0x10] sm:$0xff]  ;;  %vm1470_vm0 = vcmask 392192   ;;  %v1461_v4 = vld [vmem:[%s7229_s25 + $0x8] sm:$0xff]  ;;  %vm1505_vm1 = vcmask 130048  }
  0x91   : > { %s6070_s11 = scalar_select %p1428_p11, %s6015_s0, 1  ;;  %v1460_v5 = vld [vmem:[%s7229_s25] sm:$0xff]  ;;  %v1501_v11 = vld [vmem:[%s7238_s3 + $0x8] sm:$0xff]  ;;  %vm1533_vm2 = vcmask 1040384   ;;  %vm1571_vm3 = vcmask 258048   ;;  %v5748_v23 = vmov 32.0  }
  0x92   : > { %1488 = vmatpush.msra.mxu0 %v1464_v1  ;;  %s7249_s9 = sld [smem:[#allocation9_spill]]  ;;  %v1500_v14 = vld [vmem:[%s7238_s3] sm:$0xff]  ;;  %5418 = vrcp.f32 %v5748_v23  ;;  %v1540_v35 = vld [vmem:[%s7230_s24 + $0x18] sm:$0xff]  ;;  %v1539_v36 = vld [vmem:[%s7230_s24 + $0x10] sm:$0xff]  ;;  %vm1612_vm8 = vcmask 261120   ;;  %s7167_s16 = smov 104  }
  0x93   : > { %s6075_s18 = sshll.u32 %s6070_s11, 4  ;;  %s7250_s8 = sld [smem:[#allocation16_spill]]  ;;  %1628 = vmatpush.msra.mxu2 %v1540_v35  ;;  %v1538_v37 = vld [vmem:[%s7230_s24 + $0x8] sm:$0xff]  ;;  %v1537_v38 = vld [vmem:[%s7230_s24] sm:$0xff]  ;;  %vm1645_vm9 = vcmask 64512   ;;  %vm1752_vm10 = vcmask 36864  }
  0x94   : > { %1489 = vmatpush.msra.mxu0 %v1463_v2  ;;  %s4989_s1 = sshll.u32 %s6070_s11, 2  ;;  %v5379_v48 = vld [vmem:[%s7234_s14] ss:$0 sm:$0xff]  ;;  %s7165_s22 = smov 112   ;;  %vm1803_vm11 = vcmask 1044480   ;;  %vm1799_vm12 = vcmask 39936  }
  0x95   : > { %s1432_s26 = scalar_lea.vmem %s7247_s5, %s6075_s18  ;;  %1629 = vmatpush.msra.mxu2 %v1539_v36  ;;  %v5380_v51 = vld [vmem:[%s7232_s19] ss:$0 sm:$0xff]  ;;  %s7154_s23 = smov 96   ;;  %vm1921_vm13 = vcmask 195584  }
  0x96   : > { %1490 = vmatpush.msra.mxu0 %v1462_v3  ;;  %v1458_v6 = vld [vmem:[%s1432_s26] sm:$0xff]  ;;  %v1459_v7 = vld [vmem:[%s1432_s26 + $0x8] sm:$0xff]  ;;  %s7162_s26 = smov 120   ;;  %s7255_s3 = smov 120  }
  0x97   : > { %v5378_v9 = vld [vmem:[%s7248_s29] ss:$0 sm:$0xff]  ;;  %1630 = vmatpush.msra.mxu2 %v1538_v37  ;;  %s7256_s5 = smov 96   ;;  %s7276_s21 = sld [smem:[#allocation42_spill]] }
  0x98   : > { %1491 = vmatpush.msra.mxu0 %v1461_v4  ;;  %s1436_s2 = scalar_lea.vmem %s7249_s9, %s4989_s1  ;;  %v5419_v24 = vpop.eup %5418  ;;  %v5381_v54 = vld [vmem:[%s5827_s30] ss:$0 sm:$0xff]  ;;  %s7152_s1 = smov 64  }
  0x99   : > { %v1504_v17 = vld [vmem:[%s1436_s2] sm:$0xf]  ;;  %v1576_v25 = vmul.f32 32.0, %v5419_v24  ;;  %vm1580_vm4 = vweird.f32 %v5419_v24  ;;  %1631 = vmatpush.msra.mxu2 %v1537_v38  ;;  %s7160_s2 = smov 16   ;;  %s7260_s9 = smov 24  }
  0x9a   : > { %1492 = vmatpush.msra.mxu0 %v1460_v5  ;;  %v1529_v19 = vld [vmem:[%s7250_s8] sm:$0x1]  ;;  %s7259_s8 = smov 8   ;;  %s7279_s25 = sld [smem:[#allocation41_spill]] }
  0x9b   : > { %4996 = vmatmul.msk.f32.vlgmr.msra.gmra.mxu0 %vm1470_vm0, %v1458_v6  ;;  %v1577_v26 = vsub.f32 1.0, %v1576_v25  ;;  %s7281_s29 = sld [smem:[#allocation45_spill]] }
  0x9d   : > { %v1578_v27 = vmul.f32 %v5419_v24, %v1577_v26 }
  0x9f   : > { %v1579_v28 = vadd.f32 %v5419_v24, %v1578_v27 }
  0xa1   : > { %v6097_v29 = vsel %vm1580_vm4, %v5419_v24, %v1579_v28 }
  0xa3   : > { %4997 = vmatmul.msk.f32.gmra.mxu0 %vm1470_vm0, %v1459_v7 }
 0x118   : > { %v1494_v8 = vpop.f32.mrf.mxu0 }
 0x119   : > { %v1495_v12 = vadd.f32 %v5378_v9, %v1494_v8 }
 0x11b   : > { %v1502_v16 = vadd.f32 %v1500_v14, %v1495_v12 }
 0x120   : > { %v1497_v10 = vpop.f32.mrf.mxu0 }
 0x121   : > { %v1498_v13 = vadd.f32 %v5378_v9, %v1497_v10 }
 0x123   : > { %v1503_v15 = vadd.f32 %v1501_v11, %v1498_v13 }
 0x125   : > { %1523 = vmatpush.msrb.mxu0 %v1503_v15 }
 0x127   : > { %1524 = vmatpush.msrb.mxu0 %v1502_v16 }
 0x128   : > { %4998 = vmatmul.msk.f32.vlgmr.msrb.gmra.mxu0 %vm1505_vm1, %v1504_v17 }
 0x1a5   : > { %v1526_v18 = vpop.f32.mrf.mxu0 }
 0x1a6   : > { %v1531_v20 = vrot.slane %v1526_v18, 7 }
 0x1a8   : > { %v6093_v21 = vsel %vm1533_vm2, %v1529_v19, %v1531_v20 }
 0x1a9   : > { %v1572_v22 = vsel %vm1571_vm3, %v6093_v21, 0.0 }
 0x1aa   : > { %1573 = vadd.xlane.f32.xlu0 %v1572_v22 }
 0x21d   : > { %v1574_v30 = vpop.xlane.xlu0 %1573 }
 0x21e   : > { %v1582_v31 = vmul.f32 %v6097_v29, %v1574_v30 }
 0x220   : > { %v1583_v32 = vsub.f32 %v6093_v21, %v1582_v31 }
 0x222   : > { %v1584_v33 = vmul.f32 %v1583_v32, %v1583_v32 }
 0x224   : > { %v1585_v34 = vsel %vm1571_vm3, %v1584_v33, 0.0 }
 0x225   : > { %1586 = vadd.xlane.f32.xlu0 %v1585_v34 }
 0x298   : > { %v1587_v39 = vpop.xlane.xlu0 %1586 }
 0x299   : > { %v1588_v40 = vmul.f32 %v1587_v39, %v6097_v29 }
 0x29b   : > { %v1589_v41 = vadd.f32 1e-05, %v1588_v40 }
 0x29d   : > { %5420 = vrsqrt.f32 %v1589_v41  ;;  %vm1596_vm6 = vweird.f32 %v1589_v41 }
 0x2a3   : > { %v5421_v42 = vpop.eup %5420 }
 0x2a4   : > { %v1591_v43 = vmul.f32 %v5421_v42, %v1589_v41  ;;  %vm1597_vm5 = vweird.f32 %v5421_v42 }
 0x2a5   : > { %vm1598_vm7 = vmor %vm1596_vm6, %vm1597_vm5 }
 0x2a6   : > { %v1592_v44 = vmul.f32 %v5421_v42, %v1591_v43 }
 0x2a8   : > { %v1593_v45 = vmul.f32 0.5, %v1592_v44 }
 0x2aa   : > { %v1594_v46 = vsub.f32 1.5, %v1593_v45 }
 0x2ac   : > { %v1595_v47 = vmul.f32 %v5421_v42, %v1594_v46 }
 0x2ae   : > { %v1599_v49 = vsel %vm1598_vm7, %v5421_v42, %v1595_v47 }
 0x2af   : > { %v1600_v50 = vmul.f32 %v1599_v49, %v1583_v32 }
 0x2b1   : > { %v1604_v52 = vmul.f32 %v5379_v48, %v1600_v50 }
 0x2b3   : > { %v1608_v53 = vadd.f32 %v5380_v51, %v1604_v52 }
 0x2b5   : > { %4999 = vmatmul.msk.f32.vlgmr.msra.gmra.mxu2 %vm1612_vm8, %v1608_v53  ;;  %v1545_v53 = vld [vmem:[%s7236_s6 + $0x18] sm:$0xff] }
 0x338   : > { %v1633_v55 = vpop.f32.mrf.mxu2 }
 0x339   : > { %v6111_v56 = vadd.f32 %v5381_v54, %v1633_v55  ;;  %v1544_v54 = vld [vmem:[%s7236_s6 + $0x10] sm:$0xff]  ;;  %v1543_v55 = vld [vmem:[%s7236_s6 + $0x8] sm:$0xff] }
 0x33b   : > { %1641 = vrot.lane.b32.xlu2 %v6111_v56, %s7167_s16  ;;  %1639 = vrot.lane.b32.xlu1 %v6111_v56, %s7165_s22 }
 0x343   : > { %1643 = vrot.lane.b32.xlu2 %v6111_v56, %s7154_s23  ;;  %1637 = vrot.lane.b32.xlu1 %v6111_v56, %s7162_s26  ;;  %s7254_s26 = sld [smem:[#allocation27_spill]] }
 0x395   : > { %v6121_v57 = vpop.permute.xlu2 %1641 }
 0x396   : > { %1722 = vrot.lane.b32.xlu2 %v6121_v57, %s7154_s23 }
 0x39d   : > { %v1644_v58 = vpop.permute.xlu2 %1643 }
 0x39e   : > { %5000 = vmatpush.xpose.msk.msra.mxu3 %vm1645_vm9, %v1644_v58 }
 0x3a1   : > { %5001 = vmatmul.msk.f32.vlgmr.msra.gmra.mxu3 %vm1645_vm9, %v6111_v56 }
 0x3ad   : > { %v1640_v59 = vpop.permute.xlu1 %1639 }
 0x3ae   : > { %1696 = vrot.lane.b32.xlu0 %v1640_v59, %s7154_s23 }
 0x3b5   : > { %v1638_v60 = vpop.permute.xlu1 %1637 }
 0x3b6   : > { %1670 = vrot.lane.b32.xlu1 %v1638_v60, %s7154_s23  ;;  %s7156_s23 = smov 24  }
 0x3f0   : > { %v1723_v61 = vpop.permute.xlu2 %1722 }
 0x3f1   : > { %5006 = vmatpush.xpose.msk.msrb.mxu2 %vm1645_vm9, %v1723_v61 }
 0x3f4   : > { %5007 = vmatmul.msk.f32.vlgmr.msrb.gmra.mxu2 %vm1645_vm9, %v6121_v57 }
 0x420   : > { %v1697_v62 = vpop.permute.xlu0 %1696 }
 0x421   : > { %5004 = vmatpush.xpose.msk.msrb.mxu3 %vm1645_vm9, %v1697_v62 }
 0x424   : > { %5005 = vmatmul.msk.f32.vlgmr.msrb.gmra.mxu3 %vm1645_vm9, %v1640_v59  ;;  %v1667_v3 = vpop.f32.mrf.mxu3 }
 0x425   : > { %v1748_v10 = vmul.f32 0.35355338, %v1667_v3 }
 0x427   : > { %v1753_v11 = vsel %vm1752_vm10, %v1748_v10, -inf }
 0x428   : > { %v1671_v63 = vpop.permute.xlu1 %1670 }
 0x429   : > { %5002 = vmatpush.xpose.msk.msra.mxu1 %vm1645_vm9, %v1671_v63 }
 0x42c   : > { %5003 = vmatmul.msk.f32.vlgmr.msra.gmra.mxu1 %vm1645_vm9, %v1638_v60 }
 0x477   : > { %v1745_v0 = vpop.f32.mrf.mxu2 }
 0x478   : > { %v1751_v1 = vmul.f32 0.35355338, %v1745_v0  ;;  %v5382_v0 = vld [vmem:[%s7235_s12] ss:$0 sm:$0xff] }
 0x47a   : > { %v1762_v2 = vsel %vm1752_vm10, %v1751_v1, -inf }
 0x47b   : > { %1763 = vmax.xlane.f32.xlu0 %v1762_v2 }
 0x48f   : > { %1826 = vrot.lane.b32.xlu0 %v1638_v60, %s7152_s1 }
 0x4a7   : > { %v1719_v4 = vpop.f32.mrf.mxu3 }
 0x4a8   : > { %v1750_v5 = vmul.f32 0.35355338, %v1719_v4 }
 0x4a9   : > { %v1693_v6 = vpop.f32.mrf.mxu1 }
 0x4aa   : > { %v1749_v7 = vmul.f32 0.35355338, %v1693_v6  ;;  %v1759_v8 = vsel %vm1752_vm10, %v1750_v5, -inf }
 0x4ab   : > { %1760 = vmax.xlane.f32.xlu2 %v1759_v8 }
 0x4ac   : > { %v1756_v9 = vsel %vm1752_vm10, %v1749_v7, -inf }
 0x4ad   : > { %1757 = vmax.xlane.f32.xlu1 %v1756_v9 }
 0x4b3   : > { %1754 = vmax.xlane.f32.xlu2 %v1753_v11  ;;  %v1550_v11 = vld [vmem:[%s7237_s4 + $0x8] sm:$0xff] }
 0x4ee   : > { %v1764_v12 = vpop.xlane.xlu0 %1763 }
 0x4ef   : > { %v1768_v19 = vsub.f32 %v1751_v1, %v1764_v12  ;;  %v1549_v12 = vld [vmem:[%s7237_s4] sm:$0xff] }
 0x4f1   : > { %v1775_v22 = vmul.f32 1.442695, %v1768_v19 }
 0x501   : > { %v1827_v13 = vpop.permute.xlu0 %1826 }
 0x502   : > { %5010 = vmatpush.msk.msra.mxu3 %vm1803_vm11, %v1827_v13  ;;  %v1569_v13 = vld [vmem:[%s7233_s17 + $0x78] sm:$0xff] }
 0x51e   : > { %v1761_v14 = vpop.xlane.xlu2 %1760 }
 0x51f   : > { %v1767_v15 = vsub.f32 %v1750_v5, %v1761_v14  ;;  %v1568_v14 = vld [vmem:[%s7233_s17 + $0x70] sm:$0xff] }
 0x520   : > { %v1758_v16 = vpop.xlane.xlu1 %1757 }
 0x521   : > { %v1773_v17 = vmul.f32 1.442695, %v1767_v15  ;;  %v1766_v18 = vsub.f32 %v1749_v7, %v1758_v16  ;;  %v1567_v15 = vld [vmem:[%s7233_s17 + $0x68] sm:$0xff] }
 0x523   : > { %5422 = vpow2.f32 %v1773_v17  ;;  %v1771_v20 = vmul.f32 1.442695, %v1766_v18 }
 0x525   : > { %5424 = vpow2.f32 %v1771_v20 }
 0x526   : > { %v1755_v23 = vpop.xlane.xlu2 %1754  ;;  %5426 = vpow2.f32 %v1775_v22 }
 0x527   : > { %v1765_v24 = vsub.f32 %v1748_v10, %v1755_v23  ;;  %v1552_v10 = vld [vmem:[%s7237_s4 + $0x18] sm:$0xff] }
 0x528   : > { %1998 = vmatpush.msrb.mxu3 %v1552_v10 }
 0x529   : > { %v5423_v25 = vpop.eup %5422  ;;  %v1769_v26 = vmul.f32 1.442695, %v1765_v24 }
 0x52a   : > { %v1783_v27 = vsel %vm1752_vm10, %v5423_v25, 0.0 }
 0x52b   : > { %v5425_v28 = vpop.eup %5424  ;;  %5428 = vpow2.f32 %v1769_v26  ;;  %1784 = vadd.xlane.f32.xlu2 %v1783_v27 }
 0x52c   : > { %v1780_v30 = vsel %vm1752_vm10, %v5425_v28, 0.0  ;;  %v5427_v31 = vpop.eup %5426 }
 0x52d   : > { %1781 = vadd.xlane.f32.xlu1 %v1780_v30  ;;  %v1786_v34 = vsel %vm1752_vm10, %v5427_v31, 0.0 }
 0x531   : > { %v5429_v32 = vpop.eup %5428 }
 0x532   : > { %v1777_v33 = vsel %vm1752_vm10, %v5429_v32, 0.0 }
 0x533   : > { %1778 = vadd.xlane.f32.xlu0 %v1777_v33  ;;  %v1566_v33 = vld [vmem:[%s7233_s17 + $0x60] sm:$0xff] }
 0x535   : > { %1787 = vadd.xlane.f32.xlu1 %v1786_v34  ;;  %v1565_v34 = vld [vmem:[%s7233_s17 + $0x58] sm:$0xff] }
 0x543   : > { %1853 = vrot.lane.b32.xlu2 %v1640_v59, %s7152_s1 }
 0x54b   : > { %1797 = vrot.lane.b32.xlu2 %v6111_v56, %s7152_s1  ;;  %v1542_v56 = vld [vmem:[%s7236_s6] sm:$0xff] }
 0x54e   : > { %1880 = vrot.lane.b32.xlu1 %v6121_v57, %s7152_s1  ;;  %s7158_s1 = smov 8  }
 0x59e   : > { %v1785_v35 = vpop.xlane.xlu2 %1784 }
 0x59f   : > { %5430 = vrcp.f32 %v1785_v35  ;;  %v1564_v35 = vld [vmem:[%s7233_s17 + $0x50] sm:$0xff] }
 0x5a0   : > { %v1782_v36 = vpop.xlane.xlu1 %1781 }
 0x5a1   : > { %5432 = vrcp.f32 %v1782_v36  ;;  %v1563_v36 = vld [vmem:[%s7233_s17 + $0x48] sm:$0xff] }
 0x5a5   : > { %v5431_v37 = vpop.eup %5430 }
 0x5a6   : > { %v1795_v38 = vmul.f32 %v5431_v37, %v5423_v25  ;;  %v1854_v39 = vpop.permute.xlu2 %1853  ;;  %v1779_v40 = vpop.xlane.xlu0 %1778  ;;  %v1562_v37 = vld [vmem:[%s7233_s17 + $0x40] sm:$0xff] }
 0x5a7   : > { %v5433_v41 = vpop.eup %5432  ;;  %5434 = vrcp.f32 %v1779_v40  ;;  %5012 = vmatpush.msk.msra.mxu2 %vm1803_vm11, %v1854_v39  ;;  %v1560_v39 = vld [vmem:[%s7233_s17 + $0x30] sm:$0xff]  ;;  %v1559_v40 = vld [vmem:[%s7233_s17 + $0x28] sm:$0xff] }
 0x5a8   : > { %v1794_v42 = vmul.f32 %v5433_v41, %v5425_v28  ;;  %5013 = vmatmul.msk.f32.vlgmr.msra.gmra.mxu2 %vm1799_vm12, %v1795_v38  ;;  %v1788_v46 = vpop.xlane.xlu1 %1787  ;;  %v1561_v38 = vld [vmem:[%s7233_s17 + $0x38] sm:$0xff]  ;;  %v1558_v41 = vld [vmem:[%s7233_s17 + $0x20] sm:$0xff] }
 0x5a9   : > { %5436 = vrcp.f32 %v1788_v46  ;;  %2018 = vmatpush.msrb.mxu2 %v1569_v13 }
 0x5aa   : > { %5011 = vmatmul.msk.f32.vlgmr.msra.gmra.mxu3 %vm1799_vm12, %v1794_v42  ;;  %v1557_v42 = vld [vmem:[%s7233_s17 + $0x18] sm:$0xff] }
 0x5ab   : > { %2019 = vmatpush.msrb.mxu2 %v1568_v14 }
 0x5ad   : > { %v5435_v43 = vpop.eup %5434  ;;  %2020 = vmatpush.msrb.mxu2 %v1567_v15 }
 0x5ae   : > { %v1798_v44 = vpop.permute.xlu2 %1797  ;;  %v1793_v45 = vmul.f32 %v5435_v43, %v5429_v32  ;;  %v1556_v43 = vld [vmem:[%s7233_s17 + $0x10] sm:$0xff] }
 0x5af   : > { %5008 = vmatpush.msk.msrb.mxu1 %vm1803_vm11, %v1798_v44  ;;  %v5437_v47 = vpop.eup %5436  ;;  %2021 = vmatpush.msrb.mxu2 %v1566_v33  ;;  %v1555_v44 = vld [vmem:[%s7233_s17 + $0x8] sm:$0xff] }
 0x5b0   : > { %5009 = vmatmul.msk.f32.vlgmr.msrb.gmra.mxu1 %vm1799_vm12, %v1793_v45  ;;  %v1796_v48 = vmul.f32 %v5437_v47, %v5427_v31  ;;  %v1554_v45 = vld [vmem:[%s7233_s17] sm:$0xff] }
 0x5b1   : > { %1941 = vmatpush.msra.mxu1 %v1545_v53  ;;  %2022 = vmatpush.msrb.mxu2 %v1565_v34 }
 0x5b3   : > { %1942 = vmatpush.msra.mxu1 %v1544_v54  ;;  %2023 = vmatpush.msrb.mxu2 %v1564_v35 }
 0x5b5   : > { %1943 = vmatpush.msra.mxu1 %v1543_v55  ;;  %2024 = vmatpush.msrb.mxu2 %v1563_v36 }
 0x5b7   : > { %1944 = vmatpush.msra.mxu1 %v1542_v56  ;;  %2025 = vmatpush.msrb.mxu2 %v1562_v37 }
 0x5b9   : > { %2026 = vmatpush.msrb.mxu2 %v1561_v38 }
 0x5bb   : > { %2027 = vmatpush.msrb.mxu2 %v1560_v39 }
 0x5bd   : > { %2028 = vmatpush.msrb.mxu2 %v1559_v40 }
 0x5bf   : > { %2029 = vmatpush.msrb.mxu2 %v1558_v41 }
 0x5c0   : > { %v1881_v49 = vpop.permute.xlu1 %1880 }
 0x5c1   : > { %5014 = vmatpush.msk.msra.mxu0 %vm1803_vm11, %v1881_v49  ;;  %2030 = vmatpush.msrb.mxu2 %v1557_v42 }
 0x5c2   : > { %5015 = vmatmul.msk.f32.vlgmr.msra.gmra.mxu0 %vm1799_vm12, %v1796_v48 }
 0x5c3   : > { %2031 = vmatpush.msrb.mxu2 %v1556_v43 }
 0x5c5   : > { %2032 = vmatpush.msrb.mxu2 %v1555_v44 }
 0x5c7   : > { %2033 = vmatpush.msrb.mxu2 %v1554_v45 }
 0x62b   : > { %v1877_v50 = vpop.f32.mrf.mxu2 }
 0x62c   : > { %1912 = vrot.lane.b32.xlu2 %v1877_v50, %s7160_s2  ;;  %s7253_s2 = sld [smem:[#allocation25_spill]] }
 0x62d   : > { %v1850_v51 = vpop.f32.mrf.mxu3  ;;  %v1823_v58 = vpop.f32.mrf.mxu1 }
 0x62e   : > { %1908 = vrot.lane.b32.xlu1 %v1850_v51, %s7158_s1  ;;  %s7252_s1 = sld [smem:[#allocation23_spill]] }
 0x632   : > { %v5385_v46 = vld [vmem:[%s7253_s2] ss:$0 sm:$0xff] }
 0x634   : > { %v5384_v30 = vld [vmem:[%s7252_s1] ss:$0 sm:$0xff] }
 0x63f   : > { %v1904_v52 = vpop.f32.mrf.mxu0 }
 0x640   : > { %1916 = vrot.lane.b32.xlu1 %v1904_v52, %s7156_s23  ;;  %s7251_s23 = sld [smem:[#allocation22_spill]] }
 0x646   : > { %v5383_v26 = vld [vmem:[%s7251_s23] ss:$0 sm:$0xff] }
 0x686   : > { %v1913_v60 = vpop.permute.xlu2 %1912 }
 0x6a0   : > { %v1909_v57 = vpop.permute.xlu1 %1908 }
 0x6a1   : > { %v1919_v59 = vsel %vm1645_vm9, %v1823_v58, %v1909_v57  ;;  %v5386_v58 = vld [vmem:[%s7254_s26] ss:$0 sm:$0xff] }
 0x6a2   : > { %v1920_v61 = vsel %vm1505_vm1, %v1919_v59, %v1913_v60 }
 0x6b2   : > { %v1917_v62 = vpop.permute.xlu1 %1916 }
 0x6b3   : > { %v1922_v63 = vsel %vm1921_vm13, %v1920_v61, %v1917_v62 }
 0x6b4   : > { %5016 = vmatmul.msk.f32.vlgmr.msra.gmra.mxu1 %vm1612_vm8, %v1922_v63 }
 0x731   : > { %v1946_v1 = vpop.f32.mrf.mxu1 }
 0x732   : > { %v1947_v2 = vadd.f32 %v5382_v0, %v1946_v1 }
 0x734   : > { %v6172_v3 = vadd.f32 %v1947_v2, %v6093_v21  ;;  %v1551_v21 = vld [vmem:[%s7237_s4 + $0x10] sm:$0xff] }
 0x735   : > { %1999 = vmatpush.msrb.mxu3 %v1551_v21 }
 0x736   : > { %v1950_v4 = vsel %vm1571_vm3, %v6172_v3, 0.0 }
 0x737   : > { %1951 = vadd.xlane.f32.xlu2 %v1950_v4  ;;  %2000 = vmatpush.msrb.mxu3 %v1550_v11 }
 0x739   : > { %2001 = vmatpush.msrb.mxu3 %v1549_v12 }
 0x7aa   : > { %v1952_v5 = vpop.xlane.xlu2 %1951 }
 0x7ab   : > { %v1953_v6 = vmul.f32 %v1952_v5, %v6097_v29  ;;  %v5023_v5 = vld [vmem:[%s7230_s24 + $0x38] sm:$0xff] }
 0x7ac   : > { %2135 = vmatpush.msrb.mxu0 %v5023_v5 }
 0x7ad   : > { %v1954_v7 = vsub.f32 %v6172_v3, %v1953_v6  ;;  %v5022_v6 = vld [vmem:[%s7230_s24 + $0x30] sm:$0xff] }
 0x7ae   : > { %2136 = vmatpush.msrb.mxu0 %v5022_v6 }
 0x7af   : > { %v1955_v8 = vmul.f32 %v1954_v7, %v1954_v7 }
 0x7b1   : > { %v1956_v9 = vsel %vm1571_vm3, %v1955_v8, 0.0 }
 0x7b2   : > { %1957 = vadd.xlane.f32.xlu1 %v1956_v9 }
 0x825   : > { %v1958_v16 = vpop.xlane.xlu1 %1957 }
 0x826   : > { %v1959_v17 = vmul.f32 %v1958_v16, %v6097_v29  ;;  %v5387_v16 = vld [vmem:[%s7234_s14 + $0x1] ss:$0 sm:$0xff]  ;;  %s7266_s14 = sld [smem:[#allocation10_spill]] }
 0x828   : > { %v1960_v18 = vadd.f32 1e-05, %v1959_v17 }
 0x82a   : > { %5438 = vrsqrt.f32 %v1960_v18  ;;  %vm1967_vm15 = vweird.f32 %v1960_v18 }
 0x830   : > { %v5439_v19 = vpop.eup %5438 }
 0x831   : > { %v1962_v20 = vmul.f32 %v5439_v19, %v1960_v18  ;;  %vm1968_vm14 = vweird.f32 %v5439_v19 }
 0x832   : > { %vm1969_vm4 = vmor %vm1967_vm15, %vm1968_vm14 }
 0x833   : > { %v1963_v22 = vmul.f32 %v5439_v19, %v1962_v20 }
 0x835   : > { %v1964_v23 = vmul.f32 0.5, %v1963_v22 }
 0x837   : > { %v1965_v24 = vsub.f32 1.5, %v1964_v23  ;;  %v5389_v23 = vld [vmem:[%s5827_s30 + $0x1] ss:$0 sm:$0xff] }
 0x839   : > { %v1966_v25 = vmul.f32 %v5439_v19, %v1965_v24 }
 0x83b   : > { %v1970_v27 = vsel %vm1969_vm4, %v5439_v19, %v1966_v25  ;;  %v5388_v19 = vld [vmem:[%s7232_s19 + $0x1] ss:$0 sm:$0xff]  ;;  %vm2611_vm4 = vcmask 1043456   ;;  %s7275_s19 = sld [smem:[#allocation39_spill]] }
 0x83c   : > { %v1971_v28 = vmul.f32 %v1970_v27, %v1954_v7  ;;  %v5021_v7 = vld [vmem:[%s7230_s24 + $0x28] sm:$0xff] }
 0x83d   : > { %2137 = vmatpush.msrb.mxu0 %v5021_v7 }
 0x83e   : > { %v1975_v31 = vmul.f32 %v5383_v26, %v1971_v28 }
 0x840   : > { %v1979_v32 = vadd.f32 %v5384_v30, %v1975_v31 }
 0x842   : > { %5017 = vmatmul.msk.f32.vlgmr.msrb.gmra.mxu3 %vm1612_vm8, %v1979_v32 }
 0x8c5   : > { %v2003_v47 = vpop.f32.mrf.mxu3 }
 0x8c6   : > { %v2004_v48 = vadd.f32 %v5385_v46, %v2003_v47 }
 0x8c8   : > { %v2006_v49 = vmul.f32 %v2004_v48, %v2004_v48 }
 0x8ca   : > { %v2007_v50 = vmul.f32 %v2006_v49, %v2004_v48 }
 0x8cc   : > { %v2008_v51 = vmul.f32 0.044715, %v2007_v50 }
 0x8ce   : > { %v2009_v52 = vadd.f32 %v2008_v51, %v2004_v48 }
 0x8d0   : > { %v2010_v53 = vmul.f32 0.7978846, %v2009_v52 }
 0x8d2   : > { %5440 = vtanh.f32 %v2010_v53 }
 0x8d8   : > { %v5441_v54 = vpop.eup %5440 }
 0x8d9   : > { %v2012_v55 = vadd.f32 1.0, %v5441_v54 }
 0x8db   : > { %v2013_v56 = vmul.f32 0.5, %v2012_v55 }
 0x8dd   : > { %v2014_v57 = vmul.f32 %v2013_v56, %v2004_v48 }
 0x8df   : > { %2034 = vmatmul.f32.vlgmr.msrb.gmra.mxu2 %v2014_v57 }
 0x962   : > { %v2035_v59 = vpop.f32.mrf.mxu2 }
 0x963   : > { %v2036_v60 = vadd.f32 %v5386_v58, %v2035_v59 }
 0x965   : > { %v6206_v61 = vadd.f32 %v2036_v60, %v6172_v3  ;;  %v5020_v3 = vld [vmem:[%s7230_s24 + $0x20] sm:$0xff]  ;;  %s7278_s24 = sld [smem:[#allocation40_spill]] }
 0x966   : > { %2138 = vmatpush.msrb.mxu0 %v5020_v3 }
 0x967   : > { %v2087_v62 = vsel %vm1571_vm3, %v6206_v61, 0.0 }
 0x968   : > { %2088 = vadd.xlane.f32.xlu0 %v2087_v62 }
 0x9db   : > { %v2089_v63 = vpop.xlane.xlu0 %2088 }
 0x9dc   : > { %v2090_v0 = vmul.f32 %v2089_v63, %v6097_v29 }
 0x9de   : > { %v2091_v1 = vsub.f32 %v6206_v61, %v2090_v0 }
 0x9e0   : > { %v2092_v2 = vmul.f32 %v2091_v1, %v2091_v1 }
 0x9e2   : > { %v2093_v4 = vsel %vm1571_vm3, %v2092_v2, 0.0 }
 0x9e3   : > { %2094 = vadd.xlane.f32.xlu0 %v2093_v4 }
 0xa56   : > { %v2095_v8 = vpop.xlane.xlu0 %2094 }
 0xa57   : > { %v2096_v9 = vmul.f32 %v2095_v8, %v6097_v29 }
 0xa59   : > { %v2097_v10 = vadd.f32 1e-05, %v2096_v9 }
 0xa5b   : > { %5442 = vrsqrt.f32 %v2097_v10  ;;  %vm2104_vm6 = vweird.f32 %v2097_v10 }
 0xa61   : > { %v5443_v21 = vpop.eup %5442 }
 0xa62   : > { %v2099_v11 = vmul.f32 %v5443_v21, %v2097_v10  ;;  %vm2105_vm5 = vweird.f32 %v5443_v21 }
 0xa63   : > { %vm2106_vm7 = vmor %vm2104_vm6, %vm2105_vm5  ;;  %vm2701_vm5 = vcmask 253952  }
 0xa64   : > { %v2100_v12 = vmul.f32 %v5443_v21, %v2099_v11 }
 0xa66   : > { %v2101_v13 = vmul.f32 0.5, %v2100_v12 }
 0xa68   : > { %v2102_v14 = vsub.f32 1.5, %v2101_v13 }
 0xa6a   : > { %v2103_v15 = vmul.f32 %v5443_v21, %v2102_v14 }
 0xa6c   : > { %v2107_v17 = vsel %vm2106_vm7, %v5443_v21, %v2103_v15 }
 0xa6d   : > { %v2108_v18 = vmul.f32 %v2107_v17, %v2091_v1 }
 0xa6f   : > { %v2112_v20 = vmul.f32 %v5387_v16, %v2108_v18 }
 0xa71   : > { %v2116_v22 = vadd.f32 %v5388_v19, %v2112_v20 }
 0xa73   : > { %5054 = vmatmul.msk.f32.vlgmr.msrb.gmra.mxu0 %vm1612_vm8, %v2116_v22 }
 0xaf0   : > { %v2140_v24 = vpop.f32.mrf.mxu0 }
 0xaf1   : > { %v2141_v25 = vadd.f32 %v5389_v23, %v2140_v24  ;;  %v5028_v23 = vld [vmem:[%s7236_s6 + $0x38] sm:$0xff]  ;;  %v5027_v24 = vld [vmem:[%s7236_s6 + $0x30] sm:$0xff] }
 0xaf3   : > { %2146 = vrot.lane.b32.xlu1 %v2141_v25, %s7165_s22  ;;  %2148 = vrot.lane.b32.xlu2 %v2141_v25, %s7167_s16  ;;  %s7257_s22 = smov 64   ;;  %s7258_s16 = smov 16  }
 0xaf4   : > { %2144 = vrot.lane.b32.xlu0 %v2141_v25, %s7255_s3 }
 0xafc   : > { %2150 = vrot.lane.b32.xlu0 %v2141_v25, %s7256_s5 }
 0xb4d   : > { %v6226_v26 = vpop.permute.xlu2 %2148 }
 0xb4e   : > { %2228 = vrot.lane.b32.xlu2 %v6226_v26, %s7256_s5 }
 0xb65   : > { %v2147_v27 = vpop.permute.xlu1 %2146 }
 0xb66   : > { %v6230_v28 = vpop.permute.xlu0 %2144  ;;  %2202 = vrot.lane.b32.xlu1 %v2147_v27, %s7256_s5 }
 0xb67   : > { %2176 = vrot.lane.b32.xlu0 %v6230_v28, %s7256_s5 }
 0xb6e   : > { %v2151_v30 = vpop.permute.xlu0 %2150 }
 0xb6f   : > { %5055 = vmatpush.xpose.msk.msrb.mxu1 %vm1645_vm9, %v2151_v30 }
 0xb72   : > { %5056 = vmatmul.msk.f32.vlgmr.msrb.gmra.mxu1 %vm1645_vm9, %v2141_v25 }
 0xba8   : > { %v2229_v31 = vpop.permute.xlu2 %2228 }
 0xba9   : > { %5061 = vmatpush.xpose.msk.msra.mxu1 %vm1645_vm9, %v2229_v31 }
 0xbac   : > { %5062 = vmatmul.msk.f32.vlgmr.msra.gmra.mxu1 %vm1645_vm9, %v6226_v26 }
 0xbd8   : > { %v2203_v32 = vpop.permute.xlu1 %2202 }
 0xbd9   : > { %v2177_v33 = vpop.permute.xlu0 %2176  ;;  %5059 = vmatpush.xpose.msk.msra.mxu0 %vm1645_vm9, %v2203_v32 }
 0xbda   : > { %5057 = vmatpush.xpose.msk.msra.mxu3 %vm1645_vm9, %v2177_v33 }
 0xbdc   : > { %5060 = vmatmul.msk.f32.vlgmr.msra.gmra.mxu0 %vm1645_vm9, %v2147_v27 }
 0xbdd   : > { %5058 = vmatmul.msk.f32.vlgmr.msra.gmra.mxu3 %vm1645_vm9, %v6230_v28 }
 0xbef   : > { %v2173_v34 = vpop.f32.mrf.mxu1 }
 0xbf0   : > { %v2254_v35 = vmul.f32 0.35355338, %v2173_v34  ;;  %v5390_v34 = vld [vmem:[%s7235_s12 + $0x1] ss:$0 sm:$0xff]  ;;  %s7265_s12 = sld [smem:[#allocation31_spill]] }
 0xbf2   : > { %v2258_v36 = vsel %vm1752_vm10, %v2254_v35, -inf }
 0xbf3   : > { %2259 = vmax.xlane.f32.xlu0 %v2258_v36 }
 0xc29   : > { %v2251_v37 = vpop.f32.mrf.mxu1 }
 0xc2a   : > { %v2257_v38 = vmul.f32 0.35355338, %v2251_v37 }
 0xc2c   : > { %v2267_v39 = vsel %vm1752_vm10, %v2257_v38, -inf }
 0xc2d   : > { %2268 = vmax.xlane.f32.xlu2 %v2267_v39 }
 0xc59   : > { %v2225_v40 = vpop.f32.mrf.mxu0 }
 0xc5a   : > { %v2256_v41 = vmul.f32 0.35355338, %v2225_v40 }
 0xc5c   : > { %v2264_v42 = vsel %vm1752_vm10, %v2256_v41, -inf }
 0xc5d   : > { %2265 = vmax.xlane.f32.xlu0 %v2264_v42 }
 0xc60   : > { %v2199_v43 = vpop.f32.mrf.mxu3 }
 0xc61   : > { %v2255_v44 = vmul.f32 0.35355338, %v2199_v43 }
 0xc63   : > { %v2261_v45 = vsel %vm1752_vm10, %v2255_v44, -inf }
 0xc64   : > { %2262 = vmax.xlane.f32.xlu1 %v2261_v45  ;;  %v5033_v45 = vld [vmem:[%s7237_s4 + $0x28] sm:$0xff] }
 0xc66   : > { %v2260_v46 = vpop.xlane.xlu0 %2259 }
 0xc67   : > { %v2270_v47 = vsub.f32 %v2254_v35, %v2260_v46  ;;  %v5032_v46 = vld [vmem:[%s7237_s4 + $0x20] sm:$0xff] }
 0xc69   : > { %v2274_v48 = vmul.f32 1.442695, %v2270_v47  ;;  %v5052_v47 = vld [vmem:[%s7233_s17 + $0xf8] sm:$0xff] }
 0xc6b   : > { %5444 = vpow2.f32 %v2274_v48  ;;  %v5051_v48 = vld [vmem:[%s7233_s17 + $0xf0] sm:$0xff] }
 0xc71   : > { %v5445_v49 = vpop.eup %5444  ;;  %2302 = vrot.lane.b32.xlu0 %v2141_v25, %s7257_s22  ;;  %v5026_v25 = vld [vmem:[%s7236_s6 + $0x28] sm:$0xff] }
 0xc72   : > { %v2282_v50 = vsel %vm1752_vm10, %v5445_v49, 0.0 }
 0xc73   : > { %2283 = vadd.xlane.f32.xlu2 %v2282_v50 }
 0xc79   : > { %2356 = vrot.lane.b32.xlu0 %v2147_v27, %s7257_s22 }
 0xca0   : > { %v2269_v51 = vpop.xlane.xlu2 %2268 }
 0xca1   : > { %v2273_v52 = vsub.f32 %v2257_v38, %v2269_v51 }
 0xca3   : > { %v2280_v53 = vmul.f32 1.442695, %v2273_v52 }
 0xca5   : > { %5446 = vpow2.f32 %v2280_v53 }
 0xcab   : > { %v5447_v54 = vpop.eup %5446 }
 0xcac   : > { %v2291_v55 = vsel %vm1752_vm10, %v5447_v54, 0.0 }
 0xcad   : > { %2292 = vadd.xlane.f32.xlu1 %v2291_v55 }
 0xcd0   : > { %v2266_v56 = vpop.xlane.xlu0 %2265 }
 0xcd1   : > { %v2272_v57 = vsub.f32 %v2256_v41, %v2266_v56 }
 0xcd3   : > { %v2278_v58 = vmul.f32 1.442695, %v2272_v57 }
 0xcd5   : > { %5448 = vpow2.f32 %v2278_v58 }
 0xcd7   : > { %v2263_v59 = vpop.xlane.xlu1 %2262 }
 0xcd8   : > { %v2271_v60 = vsub.f32 %v2255_v44, %v2263_v59  ;;  %v5035_v44 = vld [vmem:[%s7237_s4 + $0x38] sm:$0xff]  ;;  %v5391_v59 = vld [vmem:[%s7251_s23 + $0x1] ss:$0 sm:$0xff]  ;;  %s7277_s23 = sld [smem:[#allocation44_spill]] }
 0xcda   : > { %v2276_v62 = vmul.f32 1.442695, %v2271_v60 }
 0xcdb   : > { %v5449_v63 = vpop.eup %5448 }
 0xcdc   : > { %5450 = vpow2.f32 %v2276_v62  ;;  %v2288_v0 = vsel %vm1752_vm10, %v5449_v63, 0.0 }
 0xcdd   : > { %2289 = vadd.xlane.f32.xlu1 %v2288_v0 }
 0xce2   : > { %v5451_v1 = vpop.eup %5450 }
 0xce3   : > { %v2285_v2 = vsel %vm1752_vm10, %v5451_v1, 0.0  ;;  %v2303_v4 = vpop.permute.xlu0 %2302 }
 0xce4   : > { %2286 = vadd.xlane.f32.xlu2 %v2285_v2  ;;  %5063 = vmatpush.msk.msrb.mxu3 %vm1803_vm11, %v2303_v4  ;;  %v5049_v2 = vld [vmem:[%s7233_s17 + $0xe0] sm:$0xff]  ;;  %v5048_v4 = vld [vmem:[%s7233_s17 + $0xd8] sm:$0xff] }
 0xce6   : > { %v2284_v5 = vpop.xlane.xlu2 %2283 }
 0xce7   : > { %5452 = vrcp.f32 %v2284_v5  ;;  %v5047_v5 = vld [vmem:[%s7233_s17 + $0xd0] sm:$0xff] }
 0xceb   : > { %v2357_v6 = vpop.permute.xlu0 %2356 }
 0xcec   : > { %5067 = vmatpush.msk.msrb.mxu1 %vm1803_vm11, %v2357_v6  ;;  %v5046_v6 = vld [vmem:[%s7233_s17 + $0xc8] sm:$0xff] }
 0xced   : > { %v5453_v7 = vpop.eup %5452 }
 0xcee   : > { %v2298_v3 = vmul.f32 %v5453_v7, %v5445_v49  ;;  %2500 = vmatpush.msra.mxu1 %v5035_v44  ;;  %v5050_v49 = vld [vmem:[%s7233_s17 + $0xe8] sm:$0xff]  ;;  %v5045_v7 = vld [vmem:[%s7233_s17 + $0xc0] sm:$0xff] }
 0xcf0   : > { %5064 = vmatmul.msk.f32.vlgmr.msrb.gmra.mxu3 %vm1799_vm12, %v2298_v3  ;;  %v5044_v3 = vld [vmem:[%s7233_s17 + $0xb8] sm:$0xff] }
 0xcf6   : > { %2329 = vrot.lane.b32.xlu1 %v6230_v28, %s7257_s22 }
 0xcfc   : > { %2383 = vrot.lane.b32.xlu2 %v6226_v26, %s7257_s22  ;;  %v5025_v26 = vld [vmem:[%s7236_s6 + $0x20] sm:$0xff]  ;;  %s7264_s6 = sld [smem:[#allocation32_spill]] }
 0xd20   : > { %v2293_v8 = vpop.xlane.xlu1 %2292 }
 0xd50   : > { %v2290_v9 = vpop.xlane.xlu1 %2289 }
 0xd51   : > { %5454 = vrcp.f32 %v2290_v9  ;;  %v5042_v9 = vld [vmem:[%s7233_s17 + $0xa8] sm:$0xff] }
 0xd52   : > { %5456 = vrcp.f32 %v2293_v8  ;;  %v5043_v8 = vld [vmem:[%s7233_s17 + $0xb0] sm:$0xff] }
 0xd57   : > { %v5455_v10 = vpop.eup %5454  ;;  %v2287_v21 = vpop.xlane.xlu2 %2286 }
 0xd58   : > { %v2300_v11 = vmul.f32 %v5455_v10, %v5449_v63  ;;  %v5457_v12 = vpop.eup %5456  ;;  %5458 = vrcp.f32 %v2287_v21  ;;  %v5392_v63 = vld [vmem:[%s7252_s1 + $0x1] ss:$0 sm:$0xff]  ;;  %v5040_v21 = vld [vmem:[%s7233_s17 + $0x98] sm:$0xff]  ;;  %s7261_s1 = sld [smem:[#allocation30_spill]] }
 0xd59   : > { %v2301_v13 = vmul.f32 %v5457_v12, %v5447_v54  ;;  %v5041_v10 = vld [vmem:[%s7233_s17 + $0xa0] sm:$0xff]  ;;  %v5038_v12 = vld [vmem:[%s7233_s17 + $0x88] sm:$0xff] }
 0xd5a   : > { %5068 = vmatmul.msk.f32.vlgmr.msrb.gmra.mxu1 %vm1799_vm12, %v2300_v11  ;;  %v5039_v11 = vld [vmem:[%s7233_s17 + $0x90] sm:$0xff] }
 0xd5e   : > { %v5459_v15 = vpop.eup %5458 }
 0xd5f   : > { %v2384_v14 = vpop.permute.xlu2 %2383  ;;  %v2299_v16 = vmul.f32 %v5459_v15, %v5451_v1 }
 0xd60   : > { %5069 = vmatpush.msk.msra.mxu3 %vm1803_vm11, %v2384_v14  ;;  %v5393_v14 = vld [vmem:[%s7253_s2 + $0x1] ss:$0 sm:$0xff]  ;;  %s7262_s2 = sld [smem:[#allocation28_spill]] }
 0xd61   : > { %5070 = vmatmul.msk.f32.vlgmr.msra.gmra.mxu3 %vm1799_vm12, %v2301_v13  ;;  %v5037_v13 = vld [vmem:[%s7233_s17 + $0x80] sm:$0xff]  ;;  %s1441_s17 = scalar_lea.vmem %s7266_s14, %s6075_s18  ;;  %s7269_s14 = sld [smem:[#allocation34_spill]] }
 0xd62   : > { %2520 = vmatpush.msrb.mxu3 %v5052_v47 }
 0xd64   : > { %2521 = vmatpush.msrb.mxu3 %v5051_v48 }
 0xd66   : > { %2522 = vmatpush.msrb.mxu3 %v5050_v49 }
 0xd68   : > { %v2330_v17 = vpop.permute.xlu1 %2329  ;;  %2523 = vmatpush.msrb.mxu3 %v5049_v2 }
 0xd69   : > { %5065 = vmatpush.msk.msrb.mxu0 %vm1803_vm11, %v2330_v17 }
 0xd6a   : > { %5066 = vmatmul.msk.f32.vlgmr.msrb.gmra.mxu0 %vm1799_vm12, %v2299_v16  ;;  %2524 = vmatpush.msrb.mxu3 %v5048_v4 }
 0xd6b   : > { %2443 = vmatpush.msra.mxu0 %v5028_v23 }
 0xd6c   : > { %2525 = vmatpush.msrb.mxu3 %v5047_v5 }
 0xd6d   : > { %2444 = vmatpush.msra.mxu0 %v5027_v24 }
 0xd6e   : > { %2526 = vmatpush.msrb.mxu3 %v5046_v6 }
 0xd6f   : > { %2445 = vmatpush.msra.mxu0 %v5026_v25 }
 0xd70   : > { %2527 = vmatpush.msrb.mxu3 %v5045_v7 }
 0xd71   : > { %2446 = vmatpush.msra.mxu0 %v5025_v26 }
 0xd72   : > { %2528 = vmatpush.msrb.mxu3 %v5044_v3 }
 0xd73   : > { %v2326_v19 = vpop.f32.mrf.mxu3 }
 0xd74   : > { %2529 = vmatpush.msrb.mxu3 %v5043_v8 }
 0xd76   : > { %2530 = vmatpush.msrb.mxu3 %v5042_v9 }
 0xd78   : > { %2531 = vmatpush.msrb.mxu3 %v5041_v10 }
 0xd7a   : > { %2532 = vmatpush.msrb.mxu3 %v5040_v21 }
 0xd7c   : > { %2533 = vmatpush.msrb.mxu3 %v5039_v11 }
 0xd7e   : > { %2534 = vmatpush.msrb.mxu3 %v5038_v12 }
 0xd80   : > { %2535 = vmatpush.msrb.mxu3 %v5037_v13 }
 0xdd7   : > { %v2380_v18 = vpop.f32.mrf.mxu1 }
 0xdd8   : > { %2415 = vrot.lane.b32.xlu2 %v2380_v18, %s7258_s16 }
 0xde4   : > { %v2407_v22 = vpop.f32.mrf.mxu3 }
 0xde7   : > { %v2353_v20 = vpop.f32.mrf.mxu0 }
 0xde8   : > { %2411 = vrot.lane.b32.xlu0 %v2353_v20, %s7259_s8 }
 0xdf0   : > { %2419 = vrot.lane.b32.xlu0 %v2407_v22, %s7260_s9 }
 0xe32   : > { %v2416_v30 = vpop.permute.xlu2 %2415 }
 0xe5a   : > { %v2412_v27 = vpop.permute.xlu0 %2411 }
 0xe5b   : > { %v2422_v28 = vsel %vm1645_vm9, %v2326_v19, %v2412_v27  ;;  %v5394_v27 = vld [vmem:[%s7254_s26 + $0x1] ss:$0 sm:$0xff]  ;;  %s7280_s26 = sld [smem:[#allocation43_spill]] }
 0xe5c   : > { %v2423_v31 = vsel %vm1505_vm1, %v2422_v28, %v2416_v30 }
 0xe62   : > { %v2420_v32 = vpop.permute.xlu0 %2419 }
 0xe63   : > { %v2424_v33 = vsel %vm1921_vm13, %v2423_v31, %v2420_v32 }
 0xe64   : > { %5071 = vmatmul.msk.f32.vlgmr.msra.gmra.mxu0 %vm1612_vm8, %v2424_v33 }
 0xee1   : > { %v2448_v35 = vpop.f32.mrf.mxu0 }
 0xee2   : > { %v2449_v36 = vadd.f32 %v5390_v34, %v2448_v35 }
 0xee4   : > { %v6280_v37 = vadd.f32 %v2449_v36, %v6206_v61  ;;  %v5034_v61 = vld [vmem:[%s7237_s4 + $0x30] sm:$0xff]  ;;  %s7263_s4 = sld [smem:[#allocation29_spill]] }
 0xee5   : > { %2501 = vmatpush.msra.mxu1 %v5034_v61 }
 0xee6   : > { %v2452_v38 = vsel %vm1571_vm3, %v6280_v37, 0.0 }
 0xee7   : > { %2453 = vadd.xlane.f32.xlu1 %v2452_v38  ;;  %2502 = vmatpush.msra.mxu1 %v5033_v45 }
 0xee9   : > { %2503 = vmatpush.msra.mxu1 %v5032_v46 }
 0xf5a   : > { %v2454_v39 = vpop.xlane.xlu1 %2453 }
 0xf5b   : > { %v2455_v40 = vmul.f32 %v2454_v39, %v6097_v29  ;;  %v2576_v39 = vld [vmem:[%s7261_s1 + $0x18] sm:$0xff] }
 0xf5c   : > { %2596 = vmatpush.msra.mxu2 %v2576_v39 }
 0xf5d   : > { %v2456_v41 = vsub.f32 %v6280_v37, %v2455_v40  ;;  %v2575_v40 = vld [vmem:[%s7261_s1 + $0x10] sm:$0xff] }
 0xf5e   : > { %2597 = vmatpush.msra.mxu2 %v2575_v40 }
 0xf5f   : > { %v2457_v42 = vmul.f32 %v2456_v41, %v2456_v41 }
 0xf61   : > { %v2458_v43 = vsel %vm1571_vm3, %v2457_v42, 0.0  ;;  %v2573_v42 = vld [vmem:[%s7261_s1] sm:$0xff] }
 0xf62   : > { %2459 = vadd.xlane.f32.xlu2 %v2458_v43 }
 0xfd5   : > { %v2460_v50 = vpop.xlane.xlu2 %2459 }
 0xfd6   : > { %v2461_v51 = vmul.f32 %v2460_v50, %v6097_v29  ;;  %v5395_v50 = vld [vmem:[%s7262_s2] ss:$0 sm:$0xff]  ;;  %s7273_s2 = smov 112  }
 0xfd8   : > { %v2462_v52 = vadd.f32 1e-05, %v2461_v51 }
 0xfda   : > { %5460 = vrsqrt.f32 %v2462_v52  ;;  %vm2469_vm11 = vweird.f32 %v2462_v52 }
 0xfe0   : > { %v5461_v53 = vpop.eup %5460 }
 0xfe1   : > { %v2464_v54 = vmul.f32 %v5461_v53, %v2462_v52  ;;  %vm2470_vm10 = vweird.f32 %v5461_v53 }
 0xfe2   : > { %vm2471_vm12 = vmor %vm2469_vm11, %vm2470_vm10 }
 0xfe3   : > { %v2465_v55 = vmul.f32 %v5461_v53, %v2464_v54 }
 0xfe5   : > { %v2466_v56 = vmul.f32 0.5, %v2465_v55 }
 0xfe7   : > { %v2467_v57 = vsub.f32 1.5, %v2466_v56  ;;  %v5398_v56 = vld [vmem:[%s7264_s6] ss:$0 sm:$0xff]  ;;  %s7270_s6 = sld [smem:[#allocation35_spill]] }
 0xfe8   : > { %2635 = vmatpush.msrb.mxu0 %v5398_v56 }
 0xfe9   : > { %v2468_v58 = vmul.f32 %v5461_v53, %v2467_v57  ;;  %v5397_v57 = vld [vmem:[%s7265_s12] ss:$0 sm:$0xff]  ;;  %s7271_s12 = sld [smem:[#allocation37_spill]] }
 0xfeb   : > { %v2472_v60 = vsel %vm2471_vm12, %v5461_v53, %v2468_v58  ;;  %v5396_v53 = vld [vmem:[%s7263_s4] ss:$0 sm:$0xff]  ;;  %s7272_s4 = smov 104  }
 0xfec   : > { %v2473_v62 = vmul.f32 %v2472_v60, %v2456_v41  ;;  %v2574_v41 = vld [vmem:[%s7261_s1 + $0x8] sm:$0xff]  ;;  %s7267_s1 = sld [smem:[#allocation33_spill]] }
 0xfed   : > { %2598 = vmatpush.msra.mxu2 %v2574_v41 }
 0xfee   : > { %v2477_v0 = vmul.f32 %v5391_v59, %v2473_v62  ;;  %v2613_v62 = vld [vmem:[%s1441_s17] sm:$0xff] }
 0xfef   : > { %2599 = vmatpush.msra.mxu2 %v2573_v42 }
 0xff0   : > { %v2481_v1 = vadd.f32 %v5392_v63, %v2477_v0  ;;  %v2614_v0 = vld [vmem:[%s1441_s17 + $0x8] sm:$0xff]  ;;  %s7268_s17 = sld [smem:[#allocation36_spill]] }
 0xff2   : > { %5072 = vmatmul.msk.f32.vlgmr.msra.gmra.mxu1 %vm1612_vm8, %v2481_v1  ;;  %v2653_v4 = vld [vmem:[%s7267_s1] sm:$0xff]  ;;  %v2655_v8 = vld [vmem:[%s7267_s1 + $0x10] sm:$0x1]  ;;  %v2654_v10 = vld [vmem:[%s7267_s1 + $0x8] sm:$0xff]  ;;  %s7274_s1 = sld [smem:[#allocation38_spill]] }
0x106f   : > { %v2505_v15 = vpop.f32.mrf.mxu1 }
0x1070   : > { %v2506_v16 = vadd.f32 %v5393_v14, %v2505_v15 }
0x1072   : > { %v2508_v17 = vmul.f32 %v2506_v16, %v2506_v16 }
0x1074   : > { %v2509_v18 = vmul.f32 %v2508_v17, %v2506_v16 }
0x1076   : > { %v2510_v19 = vmul.f32 0.044715, %v2509_v18 }
0x1078   : > { %v2511_v20 = vadd.f32 %v2510_v19, %v2506_v16 }
0x107a   : > { %v2512_v22 = vmul.f32 0.7978846, %v2511_v20 }
0x107c   : > { %5462 = vtanh.f32 %v2512_v22 }
0x1082   : > { %v5463_v23 = vpop.eup %5462 }
0x1083   : > { %v2514_v24 = vadd.f32 1.0, %v5463_v23 }
0x1085   : > { %v2515_v25 = vmul.f32 0.5, %v2514_v24 }
0x1087   : > { %v2516_v26 = vmul.f32 %v2515_v25, %v2506_v16 }
0x1089   : > { %2536 = vmatmul.f32.vlgmr.msrb.gmra.mxu3 %v2516_v26 }
0x110c   : > { %v2537_v28 = vpop.f32.mrf.mxu3 }
0x110d   : > { %v2538_v30 = vadd.f32 %v5394_v27, %v2537_v28 }
0x110f   : > { %v2540_v31 = vadd.f32 %v2538_v30, %v6280_v37 }
0x1111   : > { %v2543_v32 = vsel %vm1571_vm3, %v2540_v31, 0.0 }
0x1112   : > { %2544 = vadd.xlane.f32.xlu0 %v2543_v32  ;;  %v2664_v32 = vld [vmem:[%s7268_s17 + $0x18] sm:$0xff] }
0x1113   : > { %2798 = vmatpush.msrb.mxu1 %v2664_v32 }
0x1185   : > { %v2545_v33 = vpop.xlane.xlu0 %2544 }
0x1186   : > { %v2546_v34 = vmul.f32 %v2545_v33, %v6097_v29  ;;  %v2663_v33 = vld [vmem:[%s7268_s17 + $0x10] sm:$0xff] }
0x1187   : > { %2799 = vmatpush.msrb.mxu1 %v2663_v33 }
0x1188   : > { %v2547_v35 = vsub.f32 %v2540_v31, %v2546_v34  ;;  %v2662_v34 = vld [vmem:[%s7268_s17 + $0x8] sm:$0xff] }
0x1189   : > { %2800 = vmatpush.msrb.mxu1 %v2662_v34 }
0x118a   : > { %v2548_v36 = vmul.f32 %v2547_v35, %v2547_v35 }
0x118c   : > { %v2549_v38 = vsel %vm1571_vm3, %v2548_v36, 0.0 }
0x118d   : > { %2550 = vadd.xlane.f32.xlu1 %v2549_v38 }
0x1200   : > { %v2551_v37 = vpop.xlane.xlu1 %2550 }
0x1201   : > { %v2552_v43 = vmul.f32 %v2551_v37, %v6097_v29 }
0x1203   : > { %v2553_v44 = vadd.f32 1e-05, %v2552_v43 }
0x1205   : > { %5464 = vrsqrt.f32 %v2553_v44  ;;  %vm2560_vm14 = vweird.f32 %v2553_v44 }
0x120b   : > { %v5465_v61 = vpop.eup %5464 }
0x120c   : > { %v2555_v45 = vmul.f32 %v5465_v61, %v2553_v44  ;;  %vm2561_vm3 = vweird.f32 %v5465_v61 }
0x120d   : > { %vm2562_vm15 = vmor %vm2560_vm14, %vm2561_vm3 }
0x120e   : > { %v2556_v46 = vmul.f32 %v5465_v61, %v2555_v45 }
0x1210   : > { %v2557_v47 = vmul.f32 0.5, %v2556_v46 }
0x1212   : > { %v2558_v48 = vsub.f32 1.5, %v2557_v47 }
0x1214   : > { %v2559_v49 = vmul.f32 %v5465_v61, %v2558_v48 }
0x1216   : > { %v2563_v51 = vsel %vm2562_vm15, %v5465_v61, %v2559_v49 }
0x1217   : > { %v2564_v52 = vmul.f32 %v2563_v51, %v2547_v35  ;;  %v2661_v35 = vld [vmem:[%s7268_s17] sm:$0xff] }
0x1218   : > { %2801 = vmatpush.msrb.mxu1 %v2661_v35 }
0x1219   : > { %v2568_v54 = vmul.f32 %v5395_v50, %v2564_v52 }
0x121b   : > { %v2572_v55 = vadd.f32 %v5396_v53, %v2568_v54  ;;  %v5399_v54 = vld [vmem:[%s7269_s14] ss:$0 sm:$0xff] }
0x121d   : > { %5073 = vmatmul.msk.f32.vlgmr.msra.gmra.mxu2 %vm1612_vm8, %v2572_v55 }
0x12a0   : > { %v2601_v58 = vpop.f32.mrf.mxu2 }
0x12a1   : > { %v2602_v59 = vadd.f32 %v5397_v57, %v2601_v58 }
0x12a3   : > { %v2609_v60 = vrot.slane %v2602_v59, 1 }
0x12a5   : > { %v2612_v63 = vsel %vm2611_vm4, %v2609_v60, %v5398_v56  ;;  %v5400_v60 = vld [vmem:[%s7270_s6] ss:$0 sm:$0xff] }
0x12a6   : > { %2636 = vmatpush.msrb.mxu0 %v2612_v63 }
0x12a7   : > { %5074 = vmatmul.msk.f32.vlgmr.msrb.gmra.mxu0 %vm1505_vm1, %v2613_v62 }
0x12af   : > { %5075 = vmatmul.msk.f32.gmra.mxu0 %vm1505_vm1, %v2614_v0 }
0x1324   : > { %v2638_v1 = vpop.f32.mrf.mxu0 }
0x1325   : > { %v2646_v2 = vrot.slane %v2638_v1, 7 }
0x1327   : > { %v2652_v5 = vsel %vm1533_vm2, %v2602_v59, %v2646_v2 }
0x1328   : > { %v6333_v6 = vadd.f32 %v2653_v4, %v2652_v5 }
0x132a   : > { %v2695_v7 = vsel %vm1612_vm8, %v6333_v6, 0.0 }
0x132b   : > { %2696 = vadd.xlane.f32.xlu2 %v2695_v7 }
0x132c   : > { %v2641_v3 = vpop.f32.mrf.mxu0 }
0x132d   : > { %v2647_v9 = vrot.slane %v2641_v3, 7 }
0x132f   : > { %v2648_v21 = vsel %vm1533_vm2, %v2646_v2, %v2647_v9  ;;  %v6340_v11 = vadd.f32 %v2655_v8, %v2647_v9 }
0x1330   : > { %v6342_v12 = vadd.f32 %v2654_v10, %v2648_v21 }
0x1331   : > { %v2702_v13 = vsel %vm2701_vm5, %v6340_v11, 0.0 }
0x1332   : > { %2703 = vadd.xlane.f32.xlu1 %v2702_v13  ;;  %v2698_v14 = vsel %vm1612_vm8, %v6342_v12, 0.0 }
0x1333   : > { %2699 = vadd.xlane.f32.xlu0 %v2698_v14 }
0x139e   : > { %v2697_v15 = vpop.xlane.xlu2 %2696 }
0x139f   : > { %v2705_v16 = vmul.f32 %v2697_v15, %v6097_v29  ;;  %v5401_v15 = vld [vmem:[%s7271_s12] ss:$0 sm:$0xff] }
0x13a1   : > { %v2708_v17 = vsub.f32 %v6333_v6, %v2705_v16 }
0x13a3   : > { %v2711_v18 = vmul.f32 %v2708_v17, %v2708_v17 }
0x13a5   : > { %v2704_v19 = vpop.xlane.xlu1 %2703  ;;  %v2714_v20 = vsel %vm1612_vm8, %v2711_v18, 0.0 }
0x13a6   : > { %v2707_v22 = vmul.f32 %v2704_v19, %v6097_v29  ;;  %2715 = vadd.xlane.f32.xlu2 %v2714_v20  ;;  %v2700_v23 = vpop.xlane.xlu0 %2699 }
0x13a7   : > { %v2706_v24 = vmul.f32 %v2700_v23, %v6097_v29 }
0x13a8   : > { %v6354_v25 = vsub.f32 %v6340_v11, %v2707_v22 }
0x13a9   : > { %v2709_v26 = vsub.f32 %v6342_v12, %v2706_v24 }
0x13aa   : > { %v2713_v27 = vmul.f32 %v6354_v25, %v6354_v25 }
0x13ab   : > { %v2712_v28 = vmul.f32 %v2709_v26, %v2709_v26 }
0x13ac   : > { %v2720_v30 = vsel %vm2701_vm5, %v2713_v27, 0.0 }
0x13ad   : > { %2721 = vadd.xlane.f32.xlu1 %v2720_v30  ;;  %v2717_v31 = vsel %vm1612_vm8, %v2712_v28, 0.0 }
0x13ae   : > { %2718 = vadd.xlane.f32.xlu0 %v2717_v31 }
0x1419   : > { %v2716_v36 = vpop.xlane.xlu2 %2715 }
0x141a   : > { %v2723_v38 = vmul.f32 %v2716_v36, %v6097_v29 }
0x141c   : > { %v2726_v39 = vadd.f32 1e-05, %v2723_v38 }
0x141e   : > { %5466 = vrsqrt.f32 %v2726_v39  ;;  %vm2735_vm7 = vweird.f32 %v2726_v39 }
0x1420   : > { %v2722_v40 = vpop.xlane.xlu1 %2721 }
0x1421   : > { %v2725_v41 = vmul.f32 %v2722_v40, %v6097_v29  ;;  %v2719_v42 = vpop.xlane.xlu0 %2718 }
0x1422   : > { %v2724_v37 = vmul.f32 %v2719_v42, %v6097_v29 }
0x1423   : > { %v2728_v43 = vadd.f32 1e-05, %v2725_v41 }
0x1424   : > { %v5467_v44 = vpop.eup %5466  ;;  %v2727_v61 = vadd.f32 1e-05, %v2724_v37 }
0x1425   : > { %v2730_v45 = vmul.f32 %v5467_v44, %v2726_v39  ;;  %5468 = vrsqrt.f32 %v2728_v43  ;;  %vm2736_vm6 = vweird.f32 %v5467_v44  ;;  %vm2755_vm15 = vweird.f32 %v2728_v43 }
0x1426   : > { %5470 = vrsqrt.f32 %v2727_v61  ;;  %vm2737_vm10 = vmor %vm2735_vm7, %vm2736_vm6  ;;  %vm2745_vm3 = vweird.f32 %v2727_v61  ;;  %vm3021_vm6 = vcmask 138240   ;;  %vm3028_vm7 = vcmask 131072  }
0x1427   : > { %v2731_v46 = vmul.f32 %v5467_v44, %v2730_v45 }
0x1429   : > { %v2732_v47 = vmul.f32 0.5, %v2731_v46 }
0x142b   : > { %v5469_v48 = vpop.eup %5468  ;;  %v2733_v49 = vsub.f32 1.5, %v2732_v47 }
0x142c   : > { %v5471_v50 = vpop.eup %5470  ;;  %v2750_v51 = vmul.f32 %v5469_v48, %v2728_v43  ;;  %vm2756_vm12 = vweird.f32 %v5469_v48 }
0x142d   : > { %v2734_v52 = vmul.f32 %v5467_v44, %v2733_v49  ;;  %v2740_v53 = vmul.f32 %v5471_v50, %v2727_v61  ;;  %vm2746_vm11 = vweird.f32 %v5471_v50  ;;  %vm2757_vm4 = vmor %vm2755_vm15, %vm2756_vm12 }
0x142e   : > { %v2751_v55 = vmul.f32 %v5469_v48, %v2750_v51  ;;  %vm2747_vm14 = vmor %vm2745_vm3, %vm2746_vm11 }
0x142f   : > { %v2738_v56 = vsel %vm2737_vm10, %v5467_v44, %v2734_v52  ;;  %v2741_v57 = vmul.f32 %v5471_v50, %v2740_v53 }
0x1430   : > { %v2759_v58 = vmul.f32 %v2738_v56, %v2708_v17  ;;  %v2752_v59 = vmul.f32 0.5, %v2751_v55 }
0x1431   : > { %v2742_v62 = vmul.f32 0.5, %v2741_v57 }
0x1432   : > { %v2765_v63 = vmul.f32 %v5399_v54, %v2759_v58  ;;  %v2753_v0 = vsub.f32 1.5, %v2752_v59 }
0x1433   : > { %v2743_v1 = vsub.f32 1.5, %v2742_v62 }
0x1434   : > { %v2771_v2 = vadd.f32 %v5400_v60, %v2765_v63  ;;  %v2754_v4 = vmul.f32 %v5469_v48, %v2753_v0 }
0x1435   : > { %v2744_v5 = vmul.f32 %v5471_v50, %v2743_v1 }
0x1436   : > { %5076 = vmatmul.msk.f32.vlgmr.msrb.gmra.mxu1 %vm1612_vm8, %v2771_v2  ;;  %v2758_v8 = vsel %vm2757_vm4, %v5469_v48, %v2754_v4 }
0x1437   : > { %v2748_v7 = vsel %vm2747_vm14, %v5471_v50, %v2744_v5  ;;  %v2761_v21 = vmul.f32 %v2758_v8, %v6354_v25 }
0x1438   : > { %v2760_v3 = vmul.f32 %v2748_v7, %v2709_v26 }
0x1439   : > { %v2767_v13 = vmul.f32 %v5399_v54, %v2761_v21 }
0x143a   : > { %v2766_v9 = vmul.f32 %v5399_v54, %v2760_v3 }
0x143b   : > { %v2773_v14 = vadd.f32 %v5400_v60, %v2767_v13 }
0x143c   : > { %v2772_v10 = vadd.f32 %v5400_v60, %v2766_v9 }
0x143e   : > { %5077 = vmatmul.msk.f32.gmra.mxu1 %vm1612_vm8, %v2772_v10 }
0x1446   : > { %5078 = vmatmul.msk.f32.gmra.mxu1 %vm1612_vm8, %v2773_v14 }
0x14b3   : > { %v2803_v16 = vpop.f32.mrf.mxu1 }
0x14b4   : > { %v6375_v17 = vadd.f32 %v5401_v15, %v2803_v16 }
0x14b6   : > { %2827 = vrot.lane.b32.xlu1 %v6375_v17, %s7272_s4 }
0x14bb   : > { %v2806_v18 = vpop.f32.mrf.mxu1 }
0x14bc   : > { %v6379_v19 = vadd.f32 %v5401_v15, %v2806_v18 }
0x14be   : > { %2823 = vrot.lane.b32.xlu1 %v6379_v19, %s7273_s2  ;;  %2829 = vrot.lane.b32.xlu0 %v6379_v19, %s7272_s4 }
0x14c3   : > { %v2809_v20 = vpop.f32.mrf.mxu1 }
0x14c4   : > { %v6385_v22 = vadd.f32 %v5401_v15, %v2809_v20 }
0x14c6   : > { %2831 = vrot.lane.b32.xlu2 %v6385_v22, %s7272_s4  ;;  %2821 = vrot.lane.b32.xlu1 %v6375_v17, %s7273_s2 }
0x14c7   : > { %2817 = vrot.lane.b32.xlu0 %v6379_v19, %s7255_s3 }
0x14ce   : > { %2825 = vrot.lane.b32.xlu2 %v6385_v22, %s7273_s2 }
0x14cf   : > { %2819 = vrot.lane.b32.xlu0 %v6385_v22, %s7255_s3 }
0x14d6   : > { %2837 = vrot.lane.b32.xlu2 %v6385_v22, %s7256_s5 }
0x14d7   : > { %2815 = vrot.lane.b32.xlu0 %v6375_v17, %s7255_s3 }
0x14de   : > { %2835 = vrot.lane.b32.xlu2 %v6379_v19, %s7256_s5 }
0x14df   : > { %2833 = vrot.lane.b32.xlu0 %v6375_v17, %s7256_s5 }
0x1520   : > { %v2832_v23 = vpop.permute.xlu2 %2831 }
0x1521   : > { %2969 = vrot.lane.b32.xlu1 %v2832_v23, %s7256_s5 }
0x1528   : > { %v2828_v24 = vpop.permute.xlu1 %2827  ;;  %v6406_v25 = vpop.permute.xlu2 %2825 }
0x1529   : > { %2965 = vrot.lane.b32.xlu0 %v2828_v24, %s7256_s5 }
0x1530   : > { %v2838_v26 = vpop.permute.xlu2 %2837  ;;  %v2830_v27 = vpop.permute.xlu0 %2829 }
0x1531   : > { %5079 = vmatpush.xpose.msk.msrb.mxu2 %vm1645_vm9, %v2838_v26  ;;  %2967 = vrot.lane.b32.xlu2 %v2830_v27, %s7256_s5  ;;  %v6411_v28 = vpop.permute.xlu1 %2823  ;;  %v5336_v35 = vpack.i.bf16 %v2828_v24, %v2830_v27 }
0x1538   : > { %v2836_v30 = vpop.permute.xlu2 %2835 }
0x1539   : > { %v6413_v31 = vpop.permute.xlu0 %2817  ;;  %5080 = vmatpush.xpose.msk.msrb.mxu2 %vm1645_vm9, %v2836_v30  ;;  %2925 = vrot.lane.b32.xlu2 %v6406_v25, %s7256_s5  ;;  %v6420_v32 = vpop.permute.xlu1 %2821 }
0x153a   : > { %2879 = vrot.lane.b32.xlu0 %v6413_v31, %s7256_s5 }
0x1541   : > { %v2820_v33 = vpop.permute.xlu0 %2819 }
0x1542   : > { %2921 = vrot.lane.b32.xlu0 %v6420_v32, %s7256_s5  ;;  %2881 = vrot.lane.b32.xlu1 %v2820_v33, %s7256_s5 }
0x1549   : > { %v6425_v34 = vpop.permute.xlu0 %2815 }
0x154a   : > { %3294 = vrot.lane.b32.xlu0 %v2832_v23, %s7257_s22  ;;  %2923 = vrot.lane.b32.xlu1 %v6411_v28, %s7256_s5 }
0x154b   : > { %2877 = vrot.lane.b32.xlu2 %v6425_v34, %s7256_s5 }
0x1551   : > { %v2834_v36 = vpop.permute.xlu0 %2833 }
0x1552   : > { %5337 = vrot.lane.b32.xlu1 %v5336_v35, %s7257_s22  ;;  %5081 = vmatpush.xpose.msk.msrb.mxu2 %vm1645_vm9, %v2834_v36  ;;  %v5341_v35 = vpack.i.bf16 %v6411_v28, %v6413_v31  ;;  %v5346_v36 = vpack.i.bf16 %v6420_v32, %v6425_v34 }
0x1553   : > { %3204 = vrot.lane.b32.xlu2 %v2820_v33, %s7257_s22 }
0x1555   : > { %5082 = vmatmul.msk.f32.vlgmr.msrb.gmra.mxu2 %vm1645_vm9, %v6375_v17 }
0x155d   : > { %5083 = vmatmul.msk.f32.gmra.mxu2 %vm1645_vm9, %v6379_v19 }
0x1565   : > { %5084 = vmatmul.msk.f32.gmra.mxu2 %vm1645_vm9, %v6385_v22 }
0x158b   : > { %v2968_v38 = vpop.permute.xlu2 %2967 }
0x1593   : > { %v2970_v39 = vpop.permute.xlu1 %2969  ;;  %v2926_v40 = vpop.permute.xlu2 %2925 }
0x1594   : > { %5097 = vmatpush.xpose.msk.msra.mxu2 %vm1645_vm9, %v2970_v39  ;;  %5223 = vmatpush.xpose.msk.msra.mxu3 %vm1645_vm9, %v2970_v39 }
0x1595   : > { %5091 = vmatpush.xpose.msk.msra.mxu1 %vm1645_vm9, %v2926_v40 }
0x1598   : > { %5098 = vmatpush.xpose.msk.msra.mxu2 %vm1645_vm9, %v2968_v38  ;;  %5224 = vmatpush.xpose.msk.msra.mxu3 %vm1645_vm9, %v2968_v38 }
0x159b   : > { %v2966_v41 = vpop.permute.xlu0 %2965 }
0x159c   : > { %5099 = vmatpush.xpose.msk.msra.mxu2 %vm1645_vm9, %v2966_v41  ;;  %5225 = vmatpush.xpose.msk.msra.mxu3 %vm1645_vm9, %v2966_v41 }
0x159f   : > { %5100 = vmatmul.msk.f32.vlgmr.msra.gmra.mxu2 %vm1645_vm9, %v2828_v24  ;;  %5102 = vmatmul.msk.f32.vlgmr.msra.gmra.mxu3 %vm1645_vm9, %v2832_v23 }
0x15a5   : > { %v2878_v37 = vpop.permute.xlu2 %2877 }
0x15a7   : > { %5101 = vmatmul.msk.f32.gmra.mxu2 %vm1645_vm9, %v2830_v27 }
0x15ac   : > { %v2880_v42 = vpop.permute.xlu0 %2879 }
0x15ad   : > { %v3205_v46 = vpop.permute.xlu2 %3204 }
0x15b4   : > { %v2882_v43 = vpop.permute.xlu1 %2881  ;;  %v2922_v44 = vpop.permute.xlu0 %2921 }
0x15b5   : > { %5085 = vmatpush.xpose.msk.msra.mxu0 %vm1645_vm9, %v2882_v43 }
0x15b9   : > { %5086 = vmatpush.xpose.msk.msra.mxu0 %vm1645_vm9, %v2880_v42 }
0x15bc   : > { %v2924_v61 = vpop.permute.xlu1 %2923  ;;  %v3295_v45 = vpop.permute.xlu0 %3294 }
0x15bd   : > { %5087 = vmatpush.xpose.msk.msra.mxu0 %vm1645_vm9, %v2878_v37  ;;  %5092 = vmatpush.xpose.msk.msra.mxu1 %vm1645_vm9, %v2924_v61 }
0x15be   : > { %5115 = vmatpush.msk.msrb.mxu3 %vm1533_vm2, %v3295_v45 }
0x15c0   : > { %5088 = vmatmul.msk.f32.vlgmr.msra.gmra.mxu0 %vm1645_vm9, %v6425_v34 }
0x15c1   : > { %5107 = vmatpush.msk.msrb.mxu0 %vm1533_vm2, %v3205_v46  ;;  %5093 = vmatpush.xpose.msk.msra.mxu1 %vm1645_vm9, %v2922_v44 }
0x15c4   : > { %v5338_v47 = vpop.permute.xlu1 %5337  ;;  %5094 = vmatmul.msk.f32.vlgmr.msra.gmra.mxu1 %vm1645_vm9, %v6420_v32 }
0x15c5   : > { %v5339_v48 = vunpack.i.l.bf16 %v5338_v47  ;;  %v5340_v49 = vunpack.i.h.bf16 %v5338_v47 }
0x15c7   : > { %3323 = vmatpush.msrb.mxu3 %v5339_v48 }
0x15c8   : > { %5089 = vmatmul.msk.f32.gmra.mxu0 %vm1645_vm9, %v6413_v31 }
0x15c9   : > { %3324 = vmatpush.msrb.mxu3 %v5340_v49 }
0x15cc   : > { %5095 = vmatmul.msk.f32.gmra.mxu1 %vm1645_vm9, %v6411_v28 }
0x15d0   : > { %5090 = vmatmul.msk.f32.gmra.mxu0 %vm1645_vm9, %v2820_v33 }
0x15d4   : > { %5096 = vmatmul.msk.f32.gmra.mxu1 %vm1645_vm9, %v6406_v25 }
0x15d8   : > { %v2868_v50 = vpop.f32.mrf.mxu2 }
0x15d9   : > { %v6469_v51 = vmul.f32 0.35355338, %v2868_v50 }
0x15db   : > { %v3022_v52 = vsel %vm3021_vm6, %v6469_v51, -inf }
0x15dc   : > { %3023 = vmax.xlane.f32.xlu0 %v3022_v52 }
0x15e0   : > { %v2871_v53 = vpop.f32.mrf.mxu2 }
0x15e1   : > { %v6473_v54 = vmul.f32 0.35355338, %v2871_v53 }
0x15e3   : > { %v3025_v55 = vsel %vm3021_vm6, %v6473_v54, -inf }
0x15e4   : > { %3026 = vmax.xlane.f32.xlu1 %v3025_v55 }
0x15e8   : > { %v2874_v56 = vpop.f32.mrf.mxu2 }
0x15e9   : > { %v6477_v57 = vmul.f32 0.35355338, %v2874_v56 }
0x15eb   : > { %v3029_v58 = vsel %vm3028_vm7, %v6477_v57, -inf }
0x15ec   : > { %3030 = vmax.xlane.f32.xlu0 %v3029_v58 }
0x1622   : > { %v3000_v59 = vpop.f32.mrf.mxu2  ;;  %v3006_v7 = vpop.f32.mrf.mxu3 }
0x1623   : > { %v3018_v60 = vmul.f32 0.35355338, %v3000_v59  ;;  %v6484_v9 = vmul.f32 0.35355338, %v3006_v7 }
0x1625   : > { %v3050_v62 = vsel %vm3021_vm6, %v3018_v60, -inf  ;;  %v3056_v14 = vsel %vm3028_vm7, %v6484_v9, -inf }
0x1626   : > { %3051 = vmax.xlane.f32.xlu1 %v3050_v62 }
0x162a   : > { %v3003_v16 = vpop.f32.mrf.mxu2 }
0x162b   : > { %v3019_v23 = vmul.f32 0.35355338, %v3003_v16 }
0x162d   : > { %v3053_v26 = vsel %vm3021_vm6, %v3019_v23, -inf }
0x163d   : > { %v2912_v63 = vpop.f32.mrf.mxu0 }
0x163e   : > { %v3012_v0 = vmul.f32 0.35355338, %v2912_v63 }
0x1640   : > { %v3032_v1 = vsel %vm3021_vm6, %v3012_v0, -inf }
0x1641   : > { %3033 = vmax.xlane.f32.xlu2 %v3032_v1  ;;  %v2956_v2 = vpop.f32.mrf.mxu1 }
0x1642   : > { %v3015_v4 = vmul.f32 0.35355338, %v2956_v2 }
0x1644   : > { %v3041_v5 = vsel %vm3021_vm6, %v3015_v4, -inf }
0x1645   : > { %v2915_v3 = vpop.f32.mrf.mxu0  ;;  %3042 = vmax.xlane.f32.xlu0 %v3041_v5 }
0x1646   : > { %v3013_v8 = vmul.f32 0.35355338, %v2915_v3 }
0x1648   : > { %v3035_v10 = vsel %vm3021_vm6, %v3013_v8, -inf }
0x1649   : > { %3036 = vmax.xlane.f32.xlu1 %v3035_v10  ;;  %v2959_v21 = vpop.f32.mrf.mxu1 }
0x164a   : > { %v3016_v13 = vmul.f32 0.35355338, %v2959_v21 }
0x164c   : > { %v3044_v15 = vsel %vm3021_vm6, %v3016_v13, -inf }
0x164d   : > { %v2918_v18 = vpop.f32.mrf.mxu0  ;;  %3057 = vmax.xlane.f32.xlu0 %v3056_v14  ;;  %3045 = vmax.xlane.f32.xlu2 %v3044_v15 }
0x164e   : > { %v3014_v20 = vmul.f32 0.35355338, %v2918_v18 }
0x164f   : > { %v3024_v38 = vpop.xlane.xlu0 %3023 }
0x1650   : > { %v3038_v24 = vsel %vm3028_vm7, %v3014_v20, -inf  ;;  %v3059_v34 = vsub.f32 %v6469_v51, %v3024_v38 }
0x1651   : > { %3039 = vmax.xlane.f32.xlu1 %v3038_v24  ;;  %v2962_v27 = vpop.f32.mrf.mxu1 }
0x1652   : > { %v6492_v30 = vmul.f32 0.35355338, %v2962_v27  ;;  %v3071_v53 = vmul.f32 1.442695, %v3059_v34 }
0x1654   : > { %v3047_v33 = vsel %vm3028_vm7, %v6492_v30, -inf }
0x1655   : > { %3054 = vmax.xlane.f32.xlu2 %v3053_v26 }
0x1657   : > { %v6504_v39 = vpop.xlane.xlu1 %3026 }
0x1658   : > { %v3060_v16 = vsub.f32 %v6473_v54, %v6504_v39 }
0x165a   : > { %v3073_v26 = vmul.f32 1.442695, %v3060_v16 }
0x165d   : > { %3048 = vmax.xlane.f32.xlu2 %v3047_v33 }
0x165f   : > { %v6506_v40 = vpop.xlane.xlu0 %3030 }
0x1660   : > { %v3061_v33 = vsub.f32 %v6477_v57, %v6506_v40 }
0x1661   : > { %3249 = vrot.lane.b32.xlu0 %v6406_v25, %s7257_s22 }
0x166a   : > { %5342 = vrot.lane.b32.xlu1 %v5341_v35, %s7257_s22 }
0x1675   : > { %5347 = vrot.lane.b32.xlu2 %v5346_v36, %s7257_s22 }
0x1699   : > { %v3052_v41 = vpop.xlane.xlu1 %3051 }
0x169a   : > { %v3068_v28 = vsub.f32 %v3018_v60, %v3052_v41 }
0x169c   : > { %v3089_v46 = vmul.f32 1.442695, %v3068_v28  ;;  %v5351_v28 = vpack.i.bf16 %v6375_v17, %v6379_v19 }
0x16b4   : > { %v3034_v42 = vpop.xlane.xlu2 %3033 }
0x16b5   : > { %v3062_v37 = vsub.f32 %v3012_v0, %v3034_v42 }
0x16b7   : > { %v3077_v43 = vmul.f32 1.442695, %v3062_v37  ;;  %v3075_v37 = vmul.f32 1.442695, %v3061_v33 }
0x16b8   : > { %v3043_v25 = vpop.xlane.xlu0 %3042 }
0x16b9   : > { %5472 = vpow2.f32 %v3077_v43  ;;  %v3065_v44 = vsub.f32 %v3015_v4, %v3043_v25 }
0x16bb   : > { %v3083_v31 = vmul.f32 1.442695, %v3065_v44 }
0x16bc   : > { %v3037_v61 = vpop.xlane.xlu1 %3036 }
0x16bd   : > { %5474 = vpow2.f32 %v3083_v31  ;;  %v3063_v45 = vsub.f32 %v3013_v8, %v3037_v61 }
0x16bf   : > { %v6508_v32 = vpop.eup %5472  ;;  %v3079_v47 = vmul.f32 1.442695, %v3063_v45 }
0x16c0   : > { %v3046_v48 = vpop.xlane.xlu2 %3045  ;;  %v3104_v49 = vsel %vm3021_vm6, %v6508_v32, 0.0  ;;  %v3058_v60 = vpop.xlane.xlu0 %3057 }
0x16c1   : > { %5476 = vpow2.f32 %v3079_v47  ;;  %v3066_v50 = vsub.f32 %v3016_v13, %v3046_v48  ;;  %3105 = vadd.xlane.f32.xlu1 %v3104_v49  ;;  %v3070_v4 = vsub.f32 %v6484_v9, %v3058_v60 }
0x16c2   : > { %5478 = vpow2.f32 %v3089_v46 }
0x16c3   : > { %v6513_v52 = vpop.eup %5474  ;;  %v3085_v55 = vmul.f32 1.442695, %v3066_v50  ;;  %v3093_v21 = vmul.f32 1.442695, %v3070_v4 }
0x16c4   : > { %v3040_v56 = vpop.xlane.xlu1 %3039  ;;  %v3113_v58 = vsel %vm3021_vm6, %v6513_v52, 0.0 }
0x16c5   : > { %5480 = vpow2.f32 %v3085_v55  ;;  %3114 = vadd.xlane.f32.xlu2 %v3113_v58  ;;  %v3064_v59 = vsub.f32 %v3014_v20, %v3040_v56 }
0x16c6   : > { %5482 = vpow2.f32 %v3071_v53 }
0x16c7   : > { %v6517_v51 = vpop.eup %5476  ;;  %v3081_v5 = vmul.f32 1.442695, %v3064_v59 }
0x16c8   : > { %v3055_v62 = vpop.xlane.xlu2 %3054  ;;  %v3107_v63 = vsel %vm3021_vm6, %v6517_v51, 0.0  ;;  %v6521_v0 = vpop.eup %5478 }
0x16c9   : > { %v3069_v1 = vsub.f32 %v3019_v23, %v3055_v62  ;;  %3108 = vadd.xlane.f32.xlu0 %v3107_v63  ;;  %v3122_v8 = vsel %vm3021_vm6, %v6521_v0, 0.0 }
0x16cb   : > { %v6523_v2 = vpop.eup %5480  ;;  %v3091_v7 = vmul.f32 1.442695, %v3069_v1 }
0x16cc   : > { %v3116_v3 = vsel %vm3021_vm6, %v6523_v2, 0.0  ;;  %v6530_v10 = vpop.eup %5482 }
0x16cd   : > { %5484 = vpow2.f32 %v3091_v7  ;;  %3117 = vadd.xlane.f32.xlu1 %v3116_v3  ;;  %3123 = vadd.xlane.f32.xlu2 %v3122_v8  ;;  %v3095_v14 = vsel %vm3021_vm6, %v6530_v10, 0.0 }
0x16ce   : > { %5486 = vpow2.f32 %v3081_v5 }
0x16cf   : > { %5488 = vpow2.f32 %v3093_v21 }
0x16d0   : > { %v3049_v13 = vpop.xlane.xlu2 %3048 }
0x16d1   : > { %v3067_v9 = vsub.f32 %v6492_v30, %v3049_v13  ;;  %3096 = vadd.xlane.f32.xlu0 %v3095_v14 }
0x16d3   : > { %v6535_v15 = vpop.eup %5484  ;;  %v3087_v18 = vmul.f32 1.442695, %v3067_v9  ;;  %v3250_v20 = vpop.permute.xlu0 %3249 }
0x16d4   : > { %5111 = vmatpush.msk.msrb.mxu1 %vm1533_vm2, %v3250_v20  ;;  %v3125_v23 = vsel %vm3021_vm6, %v6535_v15, 0.0  ;;  %v6542_v24 = vpop.eup %5486 }
0x16d5   : > { %5490 = vpow2.f32 %v3087_v18  ;;  %3126 = vadd.xlane.f32.xlu2 %v3125_v23  ;;  %v3110_v27 = vsel %vm3028_vm7, %v6542_v24, 0.0  ;;  %v6546_v30 = vpop.eup %5488 }
0x16d6   : > { %5492 = vpow2.f32 %v3073_v26  ;;  %v3128_v39 = vsel %vm3028_vm7, %v6546_v30, 0.0 }
0x16d7   : > { %5494 = vpow2.f32 %v3075_v37  ;;  %v2666_v37 = vld [vmem:[%s7274_s1] sm:$0xff] }
0x16d8   : > { %v5348_v35 = vpop.permute.xlu2 %5347 }
0x16d9   : > { %3111 = vadd.xlane.f32.xlu0 %v3110_v27  ;;  %v5350_v43 = vunpack.i.h.bf16 %v5348_v35  ;;  %v5349_v25 = vunpack.i.l.bf16 %v5348_v35 }
0x16db   : > { %v6548_v54 = vpop.eup %5490 }
0x16dc   : > { %v5343_v36 = vpop.permute.xlu1 %5342  ;;  %v3119_v38 = vsel %vm3028_vm7, %v6548_v54, 0.0  ;;  %v6556_v44 = vpop.eup %5492 }
0x16dd   : > { %v5345_v41 = vunpack.i.h.bf16 %v5343_v36  ;;  %v5344_v42 = vunpack.i.l.bf16 %v5343_v36  ;;  %3120 = vadd.xlane.f32.xlu1 %v3119_v38  ;;  %3129 = vadd.xlane.f32.xlu2 %v3128_v39  ;;  %v3098_v57 = vsel %vm3021_vm6, %v6556_v44, 0.0  ;;  %v6560_v40 = vpop.eup %5494  ;;  %v2669_v39 = vld [vmem:[%s7274_s1 + $0x18] sm:$0xff] }
0x16de   : > { %v3101_v31 = vsel %vm3028_vm7, %v6560_v40, 0.0 }
0x16df   : > { %3233 = vmatpush.msrb.mxu0 %v5344_v42  ;;  %3278 = vmatpush.msrb.mxu1 %v5345_v41  ;;  %v2668_v41 = vld [vmem:[%s7274_s1 + $0x10] sm:$0xff]  ;;  %v2667_v42 = vld [vmem:[%s7274_s1 + $0x8] sm:$0xff] }
0x16e1   : > { %3234 = vmatpush.msrb.mxu0 %v5349_v25  ;;  %3279 = vmatpush.msrb.mxu1 %v5350_v43 }
0x16e5   : > { %3099 = vadd.xlane.f32.xlu2 %v3098_v57 }
0x16ed   : > { %5352 = vrot.lane.b32.xlu0 %v5351_v28, %s7257_s22  ;;  %3102 = vadd.xlane.f32.xlu2 %v3101_v31 }
0x16f6   : > { %3159 = vrot.lane.b32.xlu1 %v6385_v22, %s7257_s22 }
0x1734   : > { %v3106_v61 = vpop.xlane.xlu1 %3105 }
0x1735   : > { %5496 = vrcp.f32 %v3106_v61 }
0x1738   : > { %v3115_v45 = vpop.xlane.xlu2 %3114 }
0x1739   : > { %5498 = vrcp.f32 %v3115_v45 }
0x173b   : > { %v5497_v34 = vpop.eup %5496 }
0x173c   : > { %v3146_v46 = vmul.f32 %v5497_v34, %v6508_v32  ;;  %v3109_v47 = vpop.xlane.xlu0 %3108 }
0x173d   : > { %5500 = vrcp.f32 %v3109_v47 }
0x173e   : > { %5108 = vmatmul.msk.f32.vlgmr.msrb.gmra.mxu0 %vm3021_vm6, %v3146_v46 }
0x173f   : > { %v5499_v17 = vpop.eup %5498 }
0x1740   : > { %v3149_v19 = vmul.f32 %v5499_v17, %v6513_v52  ;;  %v3118_v48 = vpop.xlane.xlu1 %3117  ;;  %v3124_v49 = vpop.xlane.xlu2 %3123 }
0x1741   : > { %5502 = vrcp.f32 %v3118_v48 }
0x1742   : > { %5504 = vrcp.f32 %v3124_v49  ;;  %5112 = vmatmul.msk.f32.vlgmr.msrb.gmra.mxu1 %vm3021_vm6, %v3149_v19 }
0x1743   : > { %v5501_v22 = vpop.eup %5500 }
0x1744   : > { %v3097_v50 = vpop.xlane.xlu0 %3096  ;;  %v3147_v53 = vmul.f32 %v5501_v22, %v6517_v51 }
0x1746   : > { %5109 = vmatmul.msk.f32.gmra.mxu0 %vm3021_vm6, %v3147_v53 }
0x1747   : > { %v5503_v32 = vpop.eup %5502 }
0x1748   : > { %v5505_v55 = vpop.eup %5504  ;;  %v3127_v56 = vpop.xlane.xlu2 %3126  ;;  %v3150_v58 = vmul.f32 %v5503_v32, %v6523_v2 }
0x1749   : > { %v3152_v59 = vmul.f32 %v5505_v55, %v6521_v0  ;;  %5506 = vrcp.f32 %v3127_v56  ;;  %v5402_v56 = vld [vmem:[%s7275_s19] ss:$0 sm:$0xff] }
0x174a   : > { %5113 = vmatmul.msk.f32.gmra.mxu1 %vm3021_vm6, %v3150_v58 }
0x174b   : > { %5116 = vmatmul.msk.f32.vlgmr.msrb.gmra.mxu3 %vm3021_vm6, %v3152_v59 }
0x174c   : > { %v3112_v52 = vpop.xlane.xlu0 %3111 }
0x174d   : > { %5508 = vrcp.f32 %v3112_v52 }
0x174f   : > { %v5507_v60 = vpop.eup %5506 }
0x1750   : > { %v3121_v62 = vpop.xlane.xlu1 %3120  ;;  %v3130_v63 = vpop.xlane.xlu2 %3129  ;;  %v3153_v51 = vmul.f32 %v5507_v60, %v6535_v15 }
0x1751   : > { %5510 = vrcp.f32 %v3121_v62 }
0x1752   : > { %5512 = vrcp.f32 %v3130_v63 }
0x1753   : > { %v5509_v1 = vpop.eup %5508  ;;  %5117 = vmatmul.msk.f32.gmra.mxu3 %vm3021_vm6, %v3153_v51  ;;  %5514 = vrcp.f32 %v3097_v50 }
0x1754   : > { %v3148_v2 = vmul.f32 %v5509_v1, %v6542_v24 }
0x1756   : > { %5110 = vmatmul.msk.f32.gmra.mxu0 %vm3021_vm6, %v3148_v2 }
0x1757   : > { %v5511_v0 = vpop.eup %5510 }
0x1758   : > { %v5513_v4 = vpop.eup %5512  ;;  %v3151_v5 = vmul.f32 %v5511_v0, %v6548_v54  ;;  %v3100_v3 = vpop.xlane.xlu2 %3099 }
0x1759   : > { %v3154_v7 = vmul.f32 %v5513_v4, %v6546_v30  ;;  %v5515_v13 = vpop.eup %5514  ;;  %5516 = vrcp.f32 %v3100_v3 }
0x175a   : > { %5114 = vmatmul.msk.f32.gmra.mxu1 %vm3021_vm6, %v3151_v5  ;;  %v3143_v15 = vmul.f32 %v5515_v13, %v6530_v10 }
0x175b   : > { %5118 = vmatmul.msk.f32.gmra.mxu3 %vm3021_vm6, %v3154_v7 }
0x175f   : > { %v5353_v8 = vpop.permute.xlu0 %5352  ;;  %v5517_v18 = vpop.eup %5516 }
0x1760   : > { %v5354_v14 = vunpack.i.l.bf16 %v5353_v8  ;;  %v5355_v9 = vunpack.i.h.bf16 %v5353_v8  ;;  %v3103_v16 = vpop.xlane.xlu2 %3102  ;;  %v3144_v20 = vmul.f32 %v5517_v18, %v6556_v44 }
0x1761   : > { %5518 = vrcp.f32 %v3103_v16 }
0x1767   : > { %v5519_v23 = vpop.eup %5518 }
0x1768   : > { %v3160_v21 = vpop.permute.xlu1 %3159  ;;  %v3145_v24 = vmul.f32 %v5519_v23, %v6560_v40 }
0x1769   : > { %5103 = vmatpush.msk.msrb.mxu2 %vm1533_vm2, %v3160_v21 }
0x176b   : > { %3188 = vmatpush.msrb.mxu2 %v5354_v14 }
0x176d   : > { %3189 = vmatpush.msrb.mxu2 %v5355_v9 }
0x176e   : > { %5104 = vmatmul.msk.f32.vlgmr.msrb.gmra.mxu2 %vm3021_vm6, %v3143_v15 }
0x176f   : > { %3404 = vmatpush.msra.mxu2 %v2669_v39 }
0x1771   : > { %3405 = vmatpush.msra.mxu2 %v2668_v41 }
0x1773   : > { %3406 = vmatpush.msra.mxu2 %v2667_v42 }
0x1775   : > { %3407 = vmatpush.msra.mxu2 %v2666_v37  ;;  %v2693_v37 = vld [vmem:[%s7277_s23 + $0x78] sm:$0xff] }
0x1776   : > { %5105 = vmatmul.msk.f32.gmra.mxu2 %vm3021_vm6, %v3144_v20  ;;  %3567 = vmatpush.msra.mxu1 %v2693_v37 }
0x177e   : > { %5106 = vmatmul.msk.f32.gmra.mxu2 %vm3021_vm6, %v3145_v24  ;;  %v2676_v24 = vld [vmem:[%s7276_s21 + $0x18] sm:$0xff] }
0x177f   : > { %3523 = vmatpush.msra.mxu0 %v2676_v24  ;;  %v2678_v24 = vld [vmem:[%s7277_s23] sm:$0xff] }
0x17bb   : > { %v3236_v26 = vpop.f32.mrf.mxu0 }
0x17bc   : > { %3338 = vrot.lane.b32.xlu2 %v3236_v26, %s7259_s8  ;;  %v2675_v26 = vld [vmem:[%s7276_s21 + $0x10] sm:$0xff] }
0x17bd   : > { %3524 = vmatpush.msra.mxu0 %v2675_v26  ;;  %v5405_v26 = vld [vmem:[%s7280_s26] ss:$0 sm:$0xff] }
0x17bf   : > { %v3281_v27 = vpop.f32.mrf.mxu1 }
0x17c0   : > { %3350 = vrot.lane.b32.xlu0 %v3281_v27, %s7258_s16  ;;  %v2674_v27 = vld [vmem:[%s7276_s21 + $0x8] sm:$0xff] }
0x17c1   : > { %3525 = vmatpush.msra.mxu0 %v2674_v27 }
0x17c3   : > { %v3239_v10 = vpop.f32.mrf.mxu0 }
0x17c7   : > { %v3284_v54 = vpop.f32.mrf.mxu1 }
0x17c8   : > { %3340 = vrot.lane.b32.xlu0 %v3239_v10, %s7259_s8  ;;  %v2673_v10 = vld [vmem:[%s7276_s21] sm:$0xff] }
0x17c9   : > { %3526 = vmatpush.msra.mxu0 %v2673_v10 }
0x17ce   : > { %v3326_v30 = vpop.f32.mrf.mxu3 }
0x17cf   : > { %3362 = vrot.lane.b32.xlu1 %v3326_v30, %s7260_s9 }
0x17d3   : > { %v3242_v36 = vpop.f32.mrf.mxu0 }
0x17d6   : > { %v3329_v33 = vpop.f32.mrf.mxu3 }
0x17d7   : > { %3352 = vrot.lane.b32.xlu1 %v3284_v54, %s7258_s16  ;;  %3364 = vrot.lane.b32.xlu0 %v3329_v33, %s7260_s9  ;;  %v3287_v35 = vpop.f32.mrf.mxu1 }
0x17d8   : > { %3354 = vrot.lane.b32.xlu2 %v3287_v35, %s7258_s16 }
0x17de   : > { %v3332_v38 = vpop.f32.mrf.mxu3 }
0x17df   : > { %3366 = vrot.lane.b32.xlu0 %v3332_v38, %s7260_s9  ;;  %3342 = vrot.lane.b32.xlu1 %v3242_v36, %s7259_s8 }
0x17f1   : > { %v3191_v25 = vpop.f32.mrf.mxu2 }
0x17f9   : > { %v3194_v45 = vpop.f32.mrf.mxu2 }
0x1801   : > { %v3197_v48 = vpop.f32.mrf.mxu2 }
0x1816   : > { %v3339_v44 = vpop.permute.xlu2 %3338 }
0x1817   : > { %v3371_v57 = vsel %vm1645_vm9, %v3191_v25, %v3339_v44  ;;  %v2691_v44 = vld [vmem:[%s7277_s23 + $0x68] sm:$0xff] }
0x1832   : > { %v3351_v43 = vpop.permute.xlu0 %3350  ;;  %v3355_v22 = vpop.permute.xlu2 %3354 }
0x1833   : > { %v3374_v40 = vsel %vm1505_vm1, %v3371_v57, %v3351_v43  ;;  %v2692_v43 = vld [vmem:[%s7277_s23 + $0x70] sm:$0xff] }
0x1834   : > { %3568 = vmatpush.msra.mxu1 %v2692_v43 }
0x1836   : > { %3569 = vmatpush.msra.mxu1 %v2691_v44 }
0x183a   : > { %v3341_v28 = vpop.permute.xlu0 %3340 }
0x183b   : > { %v3372_v34 = vsel %vm1645_vm9, %v3194_v45, %v3341_v28  ;;  %v5403_v45 = vld [vmem:[%s7278_s24] ss:$0 sm:$0xff] }
0x1841   : > { %v3363_v31 = vpop.permute.xlu1 %3362 }
0x1842   : > { %v3377_v61 = vsel %vm1921_vm13, %v3374_v40, %v3363_v31 }
0x1843   : > { %5119 = vmatmul.msk.f32.vlgmr.msra.gmra.mxu2 %vm1612_vm8, %v3377_v61 }
0x1849   : > { %v3353_v46 = vpop.permute.xlu1 %3352  ;;  %v3365_v47 = vpop.permute.xlu0 %3364 }
0x184a   : > { %v3375_v17 = vsel %vm1505_vm1, %v3372_v34, %v3353_v46 }
0x184b   : > { %v3378_v19 = vsel %vm1921_vm13, %v3375_v17, %v3365_v47 }
0x184c   : > { %5120 = vmatmul.msk.f32.gmra.mxu2 %vm1612_vm8, %v3378_v19 }
0x1851   : > { %v3343_v49 = vpop.permute.xlu1 %3342  ;;  %v3367_v53 = vpop.permute.xlu0 %3366 }
0x1852   : > { %v3373_v50 = vsel %vm1645_vm9, %v3197_v48, %v3343_v49  ;;  %v5404_v48 = vld [vmem:[%s7279_s25] ss:$0 sm:$0xff] }
0x1853   : > { %v3376_v32 = vsel %vm1505_vm1, %v3373_v50, %v3355_v22 }
0x1854   : > { %v3379_v55 = vsel %vm1921_vm13, %v3376_v32, %v3367_v53 }
0x1855   : > { %5121 = vmatmul.msk.f32.gmra.mxu2 %vm1612_vm8, %v3379_v55 }
0x18c6   : > { %v3409_v58 = vpop.f32.mrf.mxu2 }
0x18c7   : > { %v3410_v59 = vadd.f32 %v5402_v56, %v3409_v58 }
0x18c9   : > { %v6621_v52 = vadd.f32 %v3410_v59, %v6333_v6 }
0x18cb   : > { %v3421_v60 = vsel %vm1612_vm8, %v6621_v52, 0.0 }
0x18cc   : > { %3422 = vadd.xlane.f32.xlu1 %v3421_v60 }
0x18cf   : > { %v3412_v62 = vpop.f32.mrf.mxu2 }
0x18d0   : > { %v3413_v63 = vadd.f32 %v5402_v56, %v3412_v62 }
0x18d2   : > { %v6626_v51 = vadd.f32 %v3413_v63, %v6342_v12 }
0x18d4   : > { %v3424_v1 = vsel %vm1612_vm8, %v6626_v51, 0.0 }
0x18d5   : > { %3425 = vadd.xlane.f32.xlu2 %v3424_v1 }
0x18d8   : > { %v3415_v2 = vpop.f32.mrf.mxu2 }
0x18d9   : > { %v3416_v0 = vadd.f32 %v5402_v56, %v3415_v2 }
0x18db   : > { %v6631_v4 = vadd.f32 %v3416_v0, %v6340_v11 }
0x18dd   : > { %v3427_v6 = vsel %vm2701_vm5, %v6631_v4, 0.0 }
0x18de   : > { %3428 = vadd.xlane.f32.xlu0 %v3427_v6 }
0x193f   : > { %v3423_v5 = vpop.xlane.xlu1 %3422 }
0x1940   : > { %v3430_v7 = vmul.f32 %v3423_v5, %v6097_v29 }
0x1942   : > { %v3433_v3 = vsub.f32 %v6621_v52, %v3430_v7 }
0x1944   : > { %v3436_v12 = vmul.f32 %v3433_v3, %v3433_v3 }
0x1946   : > { %v3439_v8 = vsel %vm1612_vm8, %v3436_v12, 0.0  ;;  %v2690_v12 = vld [vmem:[%s7277_s23 + $0x60] sm:$0xff] }
0x1947   : > { %3440 = vadd.xlane.f32.xlu1 %v3439_v8  ;;  %3570 = vmatpush.msra.mxu1 %v2690_v12  ;;  %v2689_v8 = vld [vmem:[%s7277_s23 + $0x58] sm:$0xff] }
0x1948   : > { %v3426_v21 = vpop.xlane.xlu2 %3425 }
0x1949   : > { %v3431_v11 = vmul.f32 %v3426_v21, %v6097_v29  ;;  %3571 = vmatpush.msra.mxu1 %v2689_v8  ;;  %v2688_v21 = vld [vmem:[%s7277_s23 + $0x50] sm:$0xff] }
0x194b   : > { %v6640_v13 = vsub.f32 %v6626_v51, %v3431_v11  ;;  %3572 = vmatpush.msra.mxu1 %v2688_v21  ;;  %v2687_v11 = vld [vmem:[%s7277_s23 + $0x48] sm:$0xff] }
0x194d   : > { %v3437_v14 = vmul.f32 %v6640_v13, %v6640_v13  ;;  %3573 = vmatpush.msra.mxu1 %v2687_v11 }
0x194f   : > { %v3442_v9 = vsel %vm1612_vm8, %v3437_v14, 0.0  ;;  %v2685_v14 = vld [vmem:[%s7277_s23 + $0x38] sm:$0xff] }
0x1950   : > { %3443 = vadd.xlane.f32.xlu2 %v3442_v9  ;;  %v2684_v9 = vld [vmem:[%s7277_s23 + $0x30] sm:$0xff] }
0x1951   : > { %v3429_v15 = vpop.xlane.xlu0 %3428 }
0x1952   : > { %v3432_v16 = vmul.f32 %v3429_v15, %v6097_v29  ;;  %v2683_v15 = vld [vmem:[%s7277_s23 + $0x28] sm:$0xff] }
0x1954   : > { %v6647_v18 = vsub.f32 %v6631_v4, %v3432_v16  ;;  %v2682_v16 = vld [vmem:[%s7277_s23 + $0x20] sm:$0xff] }
0x1956   : > { %v3438_v20 = vmul.f32 %v6647_v18, %v6647_v18 }
0x1958   : > { %v3445_v23 = vsel %vm2701_vm5, %v3438_v20, 0.0  ;;  %v2680_v20 = vld [vmem:[%s7277_s23 + $0x10] sm:$0xff] }
0x1959   : > { %3446 = vadd.xlane.f32.xlu0 %v3445_v23  ;;  %v2679_v23 = vld [vmem:[%s7277_s23 + $0x8] sm:$0xff] }
0x19ba   : > { %v3441_v30 = vpop.xlane.xlu1 %3440 }
0x19bb   : > { %v3448_v54 = vmul.f32 %v3441_v30, %v6097_v29 }
0x19bd   : > { %v3451_v33 = vadd.f32 1e-05, %v3448_v54 }
0x19bf   : > { %5520 = vrsqrt.f32 %v3451_v33  ;;  %vm3460_vm11 = vweird.f32 %v3451_v33 }
0x19c3   : > { %v3444_v35 = vpop.xlane.xlu2 %3443 }
0x19c4   : > { %v3449_v36 = vmul.f32 %v3444_v35, %v6097_v29 }
0x19c5   : > { %v5521_v38 = vpop.eup %5520 }
0x19c6   : > { %v3455_v39 = vmul.f32 %v5521_v38, %v3451_v33  ;;  %v3452_v41 = vadd.f32 1e-05, %v3449_v36  ;;  %vm3461_vm10 = vweird.f32 %v5521_v38 }
0x19c7   : > { %vm3462_vm12 = vmor %vm3460_vm11, %vm3461_vm10 }
0x19c8   : > { %v3456_v42 = vmul.f32 %v5521_v38, %v3455_v39  ;;  %5522 = vrsqrt.f32 %v3452_v41  ;;  %vm3470_vm14 = vweird.f32 %v3452_v41 }
0x19ca   : > { %v3457_v25 = vmul.f32 0.5, %v3456_v42 }
0x19cc   : > { %v3458_v57 = vsub.f32 1.5, %v3457_v25  ;;  %v3447_v40 = vpop.xlane.xlu0 %3446 }
0x19cd   : > { %v3450_v28 = vmul.f32 %v3447_v40, %v6097_v29 }
0x19ce   : > { %v5523_v31 = vpop.eup %5522  ;;  %v3459_v61 = vmul.f32 %v5521_v38, %v3458_v57 }
0x19cf   : > { %v3465_v34 = vmul.f32 %v5523_v31, %v3452_v41  ;;  %v3453_v46 = vadd.f32 1e-05, %v3450_v28  ;;  %vm3471_vm3 = vweird.f32 %v5523_v31 }
0x19d0   : > { %v3463_v47 = vsel %vm3462_vm12, %v5521_v38, %v3459_v61  ;;  %vm3472_vm15 = vmor %vm3470_vm14, %vm3471_vm3 }
0x19d1   : > { %v3484_v17 = vmul.f32 %v3463_v47, %v3433_v3  ;;  %v3466_v19 = vmul.f32 %v5523_v31, %v3465_v34  ;;  %5524 = vrsqrt.f32 %v3453_v46  ;;  %vm3480_vm10 = vweird.f32 %v3453_v46 }
0x19d3   : > { %v3490_v49 = vmul.f32 %v5403_v45, %v3484_v17  ;;  %v3467_v22 = vmul.f32 0.5, %v3466_v19 }
0x19d5   : > { %v3468_v50 = vsub.f32 1.5, %v3467_v22  ;;  %v3496_v53 = vadd.f32 %v5404_v48, %v3490_v49 }
0x19d7   : > { %v5525_v32 = vpop.eup %5524  ;;  %v3469_v55 = vmul.f32 %v5523_v31, %v3468_v50  ;;  %5122 = vmatmul.msk.f32.vlgmr.msra.gmra.mxu0 %vm1612_vm8, %v3496_v53 }
0x19d8   : > { %v3475_v56 = vmul.f32 %v5525_v32, %v3453_v46  ;;  %vm3481_vm4 = vweird.f32 %v5525_v32 }
0x19d9   : > { %v3473_v58 = vsel %vm3472_vm15, %v5523_v31, %v3469_v55  ;;  %vm3482_vm11 = vmor %vm3480_vm10, %vm3481_vm4 }
0x19da   : > { %v3476_v59 = vmul.f32 %v5525_v32, %v3475_v56  ;;  %v3485_v60 = vmul.f32 %v3473_v58, %v6640_v13  ;;  %v2686_v13 = vld [vmem:[%s7277_s23 + $0x40] sm:$0xff] }
0x19db   : > { %3574 = vmatpush.msra.mxu1 %v2686_v13  ;;  %v5406_v56 = vld [vmem:[%s7281_s29] ss:$0 sm:$0xff] }
0x19dc   : > { %v3477_v62 = vmul.f32 0.5, %v3476_v59  ;;  %v3491_v63 = vmul.f32 %v5403_v45, %v3485_v60 }
0x19dd   : > { %3575 = vmatpush.msra.mxu1 %v2685_v14 }
0x19de   : > { %v3478_v1 = vsub.f32 1.5, %v3477_v62  ;;  %v3497_v2 = vadd.f32 %v5404_v48, %v3491_v63 }
0x19df   : > { %3576 = vmatpush.msra.mxu1 %v2684_v9 }
0x19e0   : > { %v3479_v0 = vmul.f32 %v5525_v32, %v3478_v1  ;;  %5123 = vmatmul.msk.f32.gmra.mxu0 %vm1612_vm8, %v3497_v2 }
0x19e1   : > { %3577 = vmatpush.msra.mxu1 %v2683_v15 }
0x19e2   : > { %v3483_v6 = vsel %vm3482_vm11, %v5525_v32, %v3479_v0 }
0x19e3   : > { %v3486_v5 = vmul.f32 %v3483_v6, %v6647_v18  ;;  %3578 = vmatpush.msra.mxu1 %v2682_v16  ;;  %v2681_v18 = vld [vmem:[%s7277_s23 + $0x18] sm:$0xff] }
0x19e5   : > { %v3492_v7 = vmul.f32 %v5403_v45, %v3486_v5  ;;  %3579 = vmatpush.msra.mxu1 %v2681_v18 }
0x19e7   : > { %v3498_v3 = vadd.f32 %v5404_v48, %v3492_v7  ;;  %3580 = vmatpush.msra.mxu1 %v2680_v20 }
0x19e9   : > { %5124 = vmatmul.msk.f32.gmra.mxu0 %vm1612_vm8, %v3498_v3  ;;  %3581 = vmatpush.msra.mxu1 %v2679_v23 }
0x19eb   : > { %3582 = vmatpush.msra.mxu1 %v2678_v24  ;;  %v5130_v24 = vld [vmem:[%s7268_s17 + $0x38] sm:$0xff] }
0x19ec   : > { %3746 = vmatpush.msra.mxu3 %v5130_v24 }
0x1a54   : > { %v3528_v27 = vpop.f32.mrf.mxu0 }
0x1a55   : > { %v3529_v10 = vadd.f32 %v5405_v26, %v3528_v27  ;;  %v5128_v27 = vld [vmem:[%s7268_s17 + $0x28] sm:$0xff] }
0x1a57   : > { %v3537_v30 = vmul.f32 %v3529_v10, %v3529_v10 }
0x1a59   : > { %v3540_v54 = vmul.f32 %v3537_v30, %v3529_v10 }
0x1a5b   : > { %v3543_v33 = vmul.f32 0.044715, %v3540_v54 }
0x1a5d   : > { %v3546_v35 = vadd.f32 %v3543_v33, %v3529_v10  ;;  %v3531_v36 = vpop.f32.mrf.mxu0 }
0x1a5e   : > { %v3532_v38 = vadd.f32 %v5405_v26, %v3531_v36 }
0x1a5f   : > { %v3549_v39 = vmul.f32 0.7978846, %v3546_v35 }
0x1a60   : > { %v3538_v41 = vmul.f32 %v3532_v38, %v3532_v38 }
0x1a61   : > { %5526 = vtanh.f32 %v3549_v39 }
0x1a62   : > { %v3541_v42 = vmul.f32 %v3538_v41, %v3532_v38 }
0x1a64   : > { %v3544_v37 = vmul.f32 0.044715, %v3541_v42 }
0x1a66   : > { %v3534_v43 = vpop.f32.mrf.mxu0  ;;  %v3547_v25 = vadd.f32 %v3544_v37, %v3532_v38 }
0x1a67   : > { %v5527_v44 = vpop.eup %5526  ;;  %v3535_v57 = vadd.f32 %v5405_v26, %v3534_v43  ;;  %v5129_v26 = vld [vmem:[%s7268_s17 + $0x30] sm:$0xff] }
0x1a68   : > { %v3555_v40 = vadd.f32 1.0, %v5527_v44  ;;  %v3550_v28 = vmul.f32 0.7978846, %v3547_v25  ;;  %3747 = vmatpush.msra.mxu3 %v5129_v26 }
0x1a69   : > { %v3539_v31 = vmul.f32 %v3535_v57, %v3535_v57 }
0x1a6a   : > { %v3558_v61 = vmul.f32 0.5, %v3555_v40  ;;  %5528 = vtanh.f32 %v3550_v28  ;;  %3748 = vmatpush.msra.mxu3 %v5128_v27  ;;  %v5407_v28 = vld [vmem:[%s7269_s14 + $0x1] ss:$0 sm:$0xff] }
0x1a6b   : > { %v3542_v45 = vmul.f32 %v3539_v31, %v3535_v57 }
0x1a6c   : > { %v3561_v34 = vmul.f32 %v3558_v61, %v3529_v10  ;;  %v5127_v10 = vld [vmem:[%s7268_s17 + $0x20] sm:$0xff] }
0x1a6d   : > { %v3545_v46 = vmul.f32 0.044715, %v3542_v45  ;;  %3749 = vmatpush.msra.mxu3 %v5127_v10 }
0x1a6e   : > { %3583 = vmatmul.f32.vlgmr.msra.gmra.mxu1 %v3561_v34 }
0x1a6f   : > { %v3548_v47 = vadd.f32 %v3545_v46, %v3535_v57 }
0x1a70   : > { %v5529_v17 = vpop.eup %5528 }
0x1a71   : > { %v3556_v19 = vadd.f32 1.0, %v5529_v17  ;;  %v3551_v48 = vmul.f32 0.7978846, %v3548_v47  ;;  %v5408_v47 = vld [vmem:[%s7270_s6 + $0x1] ss:$0 sm:$0xff]  ;;  %s5654_s6 = scalar_lea.hbm %s5982_s20, 32 }
0x1a73   : > { %v3559_v49 = vmul.f32 0.5, %v3556_v19  ;;  %5530 = vtanh.f32 %v3551_v48 }
0x1a75   : > { %v3562_v22 = vmul.f32 %v3559_v49, %v3532_v38 }
0x1a77   : > { %3586 = vmatmul.f32.gmra.mxu1 %v3562_v22 }
0x1a79   : > { %v5531_v50 = vpop.eup %5530 }
0x1a7a   : > { %v3557_v53 = vadd.f32 1.0, %v5531_v50 }
0x1a7c   : > { %v3560_v32 = vmul.f32 0.5, %v3557_v53 }
0x1a7e   : > { %v3563_v55 = vmul.f32 %v3560_v32, %v3535_v57 }
0x1a80   : > { %3589 = vmatmul.f32.gmra.mxu1 %v3563_v55 }
0x1aeb   : > { %v3584_v58 = vpop.f32.mrf.mxu1 }
0x1aec   : > { %v3585_v59 = vadd.f32 %v5406_v56, %v3584_v58 }
0x1aee   : > { %v6685_v60 = vadd.f32 %v3585_v59, %v6621_v52 }
0x1af0   : > { %v3644_v62 = vsel %vm1612_vm8, %v6685_v60, 0.0 }
0x1af1   : > { %3645 = vadd.xlane.f32.xlu1 %v3644_v62 }
0x1af4   : > { %v3587_v63 = vpop.f32.mrf.mxu1 }
0x1af5   : > { %v3588_v1 = vadd.f32 %v5406_v56, %v3587_v63 }
0x1af7   : > { %v6690_v2 = vadd.f32 %v3588_v1, %v6626_v51 }
0x1af9   : > { %v3647_v0 = vsel %vm1612_vm8, %v6690_v2, 0.0 }
0x1afa   : > { %3648 = vadd.xlane.f32.xlu2 %v3647_v0 }
0x1afd   : > { %v3590_v6 = vpop.f32.mrf.mxu1 }
0x1afe   : > { %v3591_v5 = vadd.f32 %v5406_v56, %v3590_v6 }
0x1b00   : > { %v6695_v7 = vadd.f32 %v3591_v5, %v6631_v4 }
0x1b02   : > { %v3650_v52 = vsel %vm2701_vm5, %v6695_v7, 0.0 }
0x1b03   : > { %3651 = vadd.xlane.f32.xlu0 %v3650_v52 }
0x1b64   : > { %v3646_v3 = vpop.xlane.xlu1 %3645 }
0x1b65   : > { %v3653_v12 = vmul.f32 %v3646_v3, %v6097_v29  ;;  %v5409_v3 = vld [vmem:[%s7271_s12 + $0x1] ss:$0 sm:$0xff] }
0x1b67   : > { %v3656_v8 = vsub.f32 %v6685_v60, %v3653_v12 }
0x1b69   : > { %v3659_v51 = vmul.f32 %v3656_v8, %v3656_v8 }
0x1b6b   : > { %v3662_v21 = vsel %vm1612_vm8, %v3659_v51, 0.0 }
0x1b6c   : > { %3663 = vadd.xlane.f32.xlu1 %v3662_v21 }
0x1b6d   : > { %v3649_v11 = vpop.xlane.xlu2 %3648 }
0x1b6e   : > { %v3654_v4 = vmul.f32 %v3649_v11, %v6097_v29 }
0x1b70   : > { %v3657_v13 = vsub.f32 %v6690_v2, %v3654_v4 }
0x1b72   : > { %v3660_v14 = vmul.f32 %v3657_v13, %v3657_v13 }
0x1b74   : > { %v3665_v9 = vsel %vm1612_vm8, %v3660_v14, 0.0 }
0x1b75   : > { %3666 = vadd.xlane.f32.xlu2 %v3665_v9 }
0x1b76   : > { %v3652_v15 = vpop.xlane.xlu0 %3651 }
0x1b77   : > { %v3655_v16 = vmul.f32 %v3652_v15, %v6097_v29 }
0x1b79   : > { %v6707_v18 = vsub.f32 %v6695_v7, %v3655_v16 }
0x1b7b   : > { %v3661_v20 = vmul.f32 %v6707_v18, %v6707_v18 }
0x1b7d   : > { %v3668_v23 = vsel %vm2701_vm5, %v3661_v20, 0.0 }
0x1b7e   : > { %3669 = vadd.xlane.f32.xlu0 %v3668_v23 }
0x1bdf   : > { %v3664_v30 = vpop.xlane.xlu1 %3663 }
0x1be0   : > { %v3671_v54 = vmul.f32 %v3664_v30, %v6097_v29 }
0x1be2   : > { %v3674_v33 = vadd.f32 1e-05, %v3671_v54 }
0x1be4   : > { %5532 = vrsqrt.f32 %v3674_v33  ;;  %vm3683_vm3 = vweird.f32 %v3674_v33 }
0x1be8   : > { %v3667_v35 = vpop.xlane.xlu2 %3666 }
0x1be9   : > { %v3672_v36 = vmul.f32 %v3667_v35, %v6097_v29 }
0x1bea   : > { %v5533_v38 = vpop.eup %5532 }
0x1beb   : > { %v3678_v39 = vmul.f32 %v5533_v38, %v3674_v33  ;;  %v3675_v41 = vadd.f32 1e-05, %v3672_v36  ;;  %vm3684_vm12 = vweird.f32 %v5533_v38 }
0x1bec   : > { %vm3685_vm14 = vmor %vm3683_vm3, %vm3684_vm12 }
0x1bed   : > { %v3679_v42 = vmul.f32 %v5533_v38, %v3678_v39  ;;  %5534 = vrsqrt.f32 %v3675_v41  ;;  %vm3693_vm4 = vweird.f32 %v3675_v41 }
0x1bef   : > { %v3680_v37 = vmul.f32 0.5, %v3679_v42 }
0x1bf1   : > { %v3681_v43 = vsub.f32 1.5, %v3680_v37  ;;  %v3670_v25 = vpop.xlane.xlu0 %3669 }
0x1bf2   : > { %v3673_v44 = vmul.f32 %v3670_v25, %v6097_v29 }
0x1bf3   : > { %v5535_v57 = vpop.eup %5534  ;;  %v3682_v40 = vmul.f32 %v5533_v38, %v3681_v43 }
0x1bf4   : > { %v3688_v31 = vmul.f32 %v5535_v57, %v3675_v41  ;;  %v3676_v61 = vadd.f32 1e-05, %v3673_v44  ;;  %vm3694_vm15 = vweird.f32 %v5535_v57 }
0x1bf5   : > { %v3686_v45 = vsel %vm3685_vm14, %v5533_v38, %v3682_v40  ;;  %vm3695_vm10 = vmor %vm3693_vm4, %vm3694_vm15 }
0x1bf6   : > { %v3707_v34 = vmul.f32 %v3686_v45, %v3656_v8  ;;  %v3689_v46 = vmul.f32 %v5535_v57, %v3688_v31  ;;  %5536 = vrsqrt.f32 %v3676_v61  ;;  %vm3703_vm12 = vweird.f32 %v3676_v61 }
0x1bf8   : > { %v3713_v17 = vmul.f32 %v5407_v28, %v3707_v34  ;;  %v3690_v19 = vmul.f32 0.5, %v3689_v46 }
0x1bfa   : > { %v3691_v48 = vsub.f32 1.5, %v3690_v19  ;;  %v3719_v49 = vadd.f32 %v5408_v47, %v3713_v17 }
0x1bfc   : > { %v5537_v22 = vpop.eup %5536  ;;  %v3692_v50 = vmul.f32 %v5535_v57, %v3691_v48  ;;  %5161 = vmatmul.msk.f32.vlgmr.msra.gmra.mxu3 %vm1612_vm8, %v3719_v49 }
0x1bfd   : > { %v3698_v53 = vmul.f32 %v5537_v22, %v3676_v61  ;;  %vm3704_vm11 = vweird.f32 %v5537_v22 }
0x1bfe   : > { %v3696_v32 = vsel %vm3695_vm10, %v5535_v57, %v3692_v50  ;;  %vm3705_vm3 = vmor %vm3703_vm12, %vm3704_vm11 }
0x1bff   : > { %v3699_v55 = vmul.f32 %v5537_v22, %v3698_v53  ;;  %v3708_v56 = vmul.f32 %v3696_v32, %v3657_v13 }
0x1c01   : > { %v3700_v58 = vmul.f32 0.5, %v3699_v55  ;;  %v3714_v59 = vmul.f32 %v5407_v28, %v3708_v56 }
0x1c03   : > { %v3701_v62 = vsub.f32 1.5, %v3700_v58  ;;  %v3720_v63 = vadd.f32 %v5408_v47, %v3714_v59 }
0x1c05   : > { %v3702_v1 = vmul.f32 %v5537_v22, %v3701_v62  ;;  %5162 = vmatmul.msk.f32.gmra.mxu3 %vm1612_vm8, %v3720_v63 }
0x1c07   : > { %v3706_v0 = vsel %vm3705_vm3, %v5537_v22, %v3702_v1 }
0x1c08   : > { %v3709_v6 = vmul.f32 %v3706_v0, %v6707_v18 }
0x1c0a   : > { %v3715_v5 = vmul.f32 %v5407_v28, %v3709_v6 }
0x1c0c   : > { %v3721_v52 = vadd.f32 %v5408_v47, %v3715_v5 }
0x1c0e   : > { %5163 = vmatmul.msk.f32.gmra.mxu3 %vm1612_vm8, %v3721_v52 }
0x1c7f   : > { %v3751_v12 = vpop.f32.mrf.mxu3 }
0x1c80   : > { %v6726_v8 = vadd.f32 %v5409_v3, %v3751_v12 }
0x1c82   : > { %3769 = vrot.lane.b32.xlu0 %v6726_v8, %s7273_s2 }
0x1c88   : > { %v3754_v51 = vpop.f32.mrf.mxu3 }
0x1c89   : > { %v6730_v21 = vadd.f32 %v5409_v3, %v3754_v51 }
0x1c8b   : > { %3771 = vrot.lane.b32.xlu2 %v6730_v21, %s7273_s2 }
0x1c91   : > { %v3757_v11 = vpop.f32.mrf.mxu3 }
0x1c92   : > { %v6734_v4 = vadd.f32 %v5409_v3, %v3757_v11 }
0x1c93   : > { %3765 = vrot.lane.b32.xlu2 %v6730_v21, %s7255_s3 }
0x1c94   : > { %3779 = vrot.lane.b32.xlu0 %v6734_v4, %s7272_s4  ;;  %3773 = vrot.lane.b32.xlu1 %v6734_v4, %s7273_s2  ;;  %s1415_s2 = sand.u32 1, %s5692_s10  }
0x1c9b   : > { %3775 = vrot.lane.b32.xlu2 %v6726_v8, %s7272_s4 }
0x1c9c   : > { %3763 = vrot.lane.b32.xlu0 %v6726_v8, %s7255_s3  ;;  %3767 = vrot.lane.b32.xlu1 %v6734_v4, %s7255_s3  ;;  %s7284_s3 = sld [smem:[#allocation46_spill]] }
0x1ca4   : > { %3777 = vrot.lane.b32.xlu1 %v6730_v21, %s7272_s4  ;;  %s7286_s4 = sld [smem:[#allocation12_spill]] }
0x1ce5   : > { %v3772_v13 = vpop.permute.xlu2 %3771 }
0x1ce6   : > { %3871 = vrot.lane.b32.xlu0 %v3772_v13, %s7256_s5 }
0x1ced   : > { %v6752_v9 = vpop.permute.xlu2 %3765 }
0x1cf4   : > { %v3770_v14 = vpop.permute.xlu0 %3769 }
0x1cf5   : > { %3869 = vrot.lane.b32.xlu2 %v3770_v14, %s7256_s5  ;;  %v6756_v15 = vpop.permute.xlu2 %3775  ;;  %v5356_v26 = vpack.i.bf16 %v3770_v14, %v3772_v13 }
0x1cfd   : > { %3827 = vrot.lane.b32.xlu2 %v6752_v9, %s7256_s5 }
0x1d05   : > { %3913 = vrot.lane.b32.xlu2 %v6756_v15, %s7256_s5 }
0x1d06   : > { %v3774_v16 = vpop.permute.xlu1 %3773  ;;  %v6760_v18 = vpop.permute.xlu0 %3779 }
0x1d07   : > { %3873 = vrot.lane.b32.xlu1 %v3774_v16, %s7256_s5  ;;  %3917 = vrot.lane.b32.xlu0 %v6760_v18, %s7256_s5 }
0x1d0d   : > { %3781 = vrot.lane.b32.xlu2 %v6726_v8, %s7256_s5 }
0x1d0e   : > { %v6767_v20 = vpop.permute.xlu1 %3767  ;;  %v6769_v23 = vpop.permute.xlu0 %3763 }
0x1d0f   : > { %3829 = vrot.lane.b32.xlu1 %v6767_v20, %s7256_s5  ;;  %3825 = vrot.lane.b32.xlu0 %v6769_v23, %s7256_s5  ;;  %v5361_v5 = vpack.i.bf16 %v6769_v23, %v6752_v9 }
0x1d15   : > { %4195 = vrot.lane.b32.xlu2 %v3774_v16, %s7257_s22 }
0x1d16   : > { %v6776_v24 = vpop.permute.xlu1 %3777 }
0x1d17   : > { %3915 = vrot.lane.b32.xlu1 %v6776_v24, %s7256_s5  ;;  %3783 = vrot.lane.b32.xlu0 %v6730_v21, %s7256_s5 }
0x1d1f   : > { %3785 = vrot.lane.b32.xlu1 %v6734_v4, %s7256_s5  ;;  %5357 = vrot.lane.b32.xlu0 %v5356_v26, %s7257_s22  ;;  %s7282_s5 = sld [smem:[#allocation48_spill]] }
0x1d4f   : > { %v3870_v27 = vpop.permute.xlu2 %3869 }
0x1d57   : > { %v3828_v10 = vpop.permute.xlu2 %3827 }
0x1d58   : > { %v3872_v54 = vpop.permute.xlu0 %3871 }
0x1d5f   : > { %v3914_v30 = vpop.permute.xlu2 %3913 }
0x1d67   : > { %v3782_v33 = vpop.permute.xlu2 %3781 }
0x1d6f   : > { %v4196_v41 = vpop.permute.xlu2 %4195 }
0x1d79   : > { %v3874_v35 = vpop.permute.xlu1 %3873  ;;  %v3918_v36 = vpop.permute.xlu0 %3917 }
0x1d7a   : > { %5176 = vmatpush.xpose.msk.msrb.mxu3 %vm1645_vm9, %v3874_v35  ;;  %5182 = vmatpush.xpose.msk.msrb.mxu1 %vm1645_vm9, %v3918_v36 }
0x1d7e   : > { %5177 = vmatpush.xpose.msk.msrb.mxu3 %vm1645_vm9, %v3872_v54 }
0x1d81   : > { %v3830_v38 = vpop.permute.xlu1 %3829  ;;  %v3826_v39 = vpop.permute.xlu0 %3825 }
0x1d82   : > { %5170 = vmatpush.xpose.msk.msrb.mxu0 %vm1645_vm9, %v3830_v38  ;;  %5178 = vmatpush.xpose.msk.msrb.mxu3 %vm1645_vm9, %v3870_v27 }
0x1d85   : > { %5179 = vmatmul.msk.f32.vlgmr.msrb.gmra.mxu3 %vm1645_vm9, %v3770_v14 }
0x1d86   : > { %5196 = vmatpush.msk.msra.mxu3 %vm1533_vm2, %v4196_v41  ;;  %5171 = vmatpush.xpose.msk.msrb.mxu0 %vm1645_vm9, %v3828_v10 }
0x1d89   : > { %v3916_v42 = vpop.permute.xlu1 %3915  ;;  %v3784_v37 = vpop.permute.xlu0 %3783 }
0x1d8a   : > { %5172 = vmatpush.xpose.msk.msrb.mxu0 %vm1645_vm9, %v3826_v39  ;;  %5183 = vmatpush.xpose.msk.msrb.mxu1 %vm1645_vm9, %v3916_v42 }
0x1d8d   : > { %5173 = vmatmul.msk.f32.vlgmr.msrb.gmra.mxu0 %vm1645_vm9, %v6769_v23  ;;  %5180 = vmatmul.msk.f32.gmra.mxu3 %vm1645_vm9, %v3772_v13 }
0x1d8e   : > { %5184 = vmatpush.xpose.msk.msrb.mxu1 %vm1645_vm9, %v3914_v30 }
0x1d91   : > { %v3786_v43 = vpop.permute.xlu1 %3785  ;;  %5185 = vmatmul.msk.f32.vlgmr.msrb.gmra.mxu1 %vm1645_vm9, %v6756_v15  ;;  %v5358_v25 = vpop.permute.xlu0 %5357 }
0x1d92   : > { %v5359_v44 = vunpack.i.l.bf16 %v5358_v25  ;;  %5164 = vmatpush.xpose.msk.msrb.mxu2 %vm1645_vm9, %v3786_v43  ;;  %v5360_v57 = vunpack.i.h.bf16 %v5358_v25 }
0x1d94   : > { %4224 = vmatpush.msra.mxu3 %v5359_v44 }
0x1d95   : > { %5174 = vmatmul.msk.f32.gmra.mxu0 %vm1645_vm9, %v6752_v9  ;;  %5181 = vmatmul.msk.f32.gmra.mxu3 %vm1645_vm9, %v3774_v16 }
0x1d96   : > { %5165 = vmatpush.xpose.msk.msrb.mxu2 %vm1645_vm9, %v3784_v37  ;;  %4225 = vmatpush.msra.mxu3 %v5360_v57 }
0x1d99   : > { %5186 = vmatmul.msk.f32.gmra.mxu1 %vm1645_vm9, %v6776_v24 }
0x1d9a   : > { %5166 = vmatpush.xpose.msk.msrb.mxu2 %vm1645_vm9, %v3782_v33 }
0x1d9d   : > { %5167 = vmatmul.msk.f32.vlgmr.msrb.gmra.mxu2 %vm1645_vm9, %v6726_v8  ;;  %5175 = vmatmul.msk.f32.gmra.mxu0 %vm1645_vm9, %v6767_v20 }
0x1da1   : > { %5187 = vmatmul.msk.f32.gmra.mxu1 %vm1645_vm9, %v6760_v18 }
0x1da5   : > { %5168 = vmatmul.msk.f32.gmra.mxu2 %vm1645_vm9, %v6730_v21 }
0x1dad   : > { %5169 = vmatmul.msk.f32.gmra.mxu2 %vm1645_vm9, %v6734_v4 }
0x1e08   : > { %v3904_v56 = vpop.f32.mrf.mxu3 }
0x1e09   : > { %v3963_v0 = vmul.f32 0.35355338, %v3904_v56 }
0x1e0a   : > { %v3860_v22 = vpop.f32.mrf.mxu0 }
0x1e0b   : > { %v3960_v55 = vmul.f32 0.35355338, %v3860_v22  ;;  %v3987_v12 = vsel %vm3021_vm6, %v3963_v0, -inf }
0x1e0d   : > { %v3978_v63 = vsel %vm3021_vm6, %v3960_v55, -inf }
0x1e0e   : > { %v3948_v40 = vpop.f32.mrf.mxu1 }
0x1e0f   : > { %v3966_v28 = vmul.f32 0.35355338, %v3948_v40 }
0x1e10   : > { %v3907_v52 = vpop.f32.mrf.mxu3 }
0x1e11   : > { %v3996_v31 = vsel %vm3021_vm6, %v3966_v28, -inf  ;;  %v3964_v11 = vmul.f32 0.35355338, %v3907_v52 }
0x1e12   : > { %3997 = vmax.xlane.f32.xlu2 %v3996_v31  ;;  %v3863_v62 = vpop.f32.mrf.mxu0 }
0x1e13   : > { %v3961_v6 = vmul.f32 0.35355338, %v3863_v62  ;;  %v3990_v16 = vsel %vm3021_vm6, %v3964_v11, -inf }
0x1e15   : > { %v3981_v3 = vsel %vm3021_vm6, %v3961_v6, -inf }
0x1e16   : > { %v3951_v61 = vpop.f32.mrf.mxu1 }
0x1e17   : > { %v6820_v45 = vmul.f32 0.35355338, %v3951_v61 }
0x1e18   : > { %v3910_v26 = vpop.f32.mrf.mxu3 }
0x1e19   : > { %v3999_v34 = vsel %vm3021_vm6, %v6820_v45, -inf  ;;  %v3965_v9 = vmul.f32 0.35355338, %v3910_v26 }
0x1e1a   : > { %4000 = vmax.xlane.f32.xlu2 %v3999_v34  ;;  %v3866_v51 = vpop.f32.mrf.mxu0 }
0x1e1b   : > { %v3962_v13 = vmul.f32 0.35355338, %v3866_v51  ;;  %v3993_v23 = vsel %vm3028_vm7, %v3965_v9, -inf }
0x1e1d   : > { %v3984_v14 = vsel %vm3028_vm7, %v3962_v13, -inf }
0x1e1e   : > { %v3954_v46 = vpop.f32.mrf.mxu1 }
0x1e1f   : > { %v6824_v47 = vmul.f32 0.35355338, %v3954_v46 }
0x1e20   : > { %v3816_v17 = vpop.f32.mrf.mxu2 }
0x1e21   : > { %v6826_v19 = vmul.f32 0.35355338, %v3816_v17  ;;  %v4002_v48 = vsel %vm3028_vm7, %v6824_v47, -inf }
0x1e22   : > { %4003 = vmax.xlane.f32.xlu2 %v4002_v48 }
0x1e23   : > { %v3969_v49 = vsel %vm3021_vm6, %v6826_v19, -inf }
0x1e24   : > { %3970 = vmax.xlane.f32.xlu1 %v3969_v49 }
0x1e28   : > { %v3819_v50 = vpop.f32.mrf.mxu2 }
0x1e29   : > { %v6832_v53 = vmul.f32 0.35355338, %v3819_v50 }
0x1e2b   : > { %v3972_v32 = vsel %vm3021_vm6, %v6832_v53, -inf }
0x1e2c   : > { %3973 = vmax.xlane.f32.xlu0 %v3972_v32 }
0x1e30   : > { %v3822_v58 = vpop.f32.mrf.mxu2 }
0x1e31   : > { %v6836_v59 = vmul.f32 0.35355338, %v3822_v58 }
0x1e33   : > { %v3975_v1 = vsel %vm3028_vm7, %v6836_v59, -inf }
0x1e34   : > { %3979 = vmax.xlane.f32.xlu0 %v3978_v63  ;;  %3976 = vmax.xlane.f32.xlu1 %v3975_v1 }
0x1e3a   : > { %5362 = vrot.lane.b32.xlu2 %v5361_v5, %s7257_s22  ;;  %v5366_v5 = vpack.i.bf16 %v6756_v15, %v6776_v24 }
0x1e3c   : > { %3982 = vmax.xlane.f32.xlu0 %v3981_v3  ;;  %3988 = vmax.xlane.f32.xlu1 %v3987_v12 }
0x1e44   : > { %3985 = vmax.xlane.f32.xlu0 %v3984_v14  ;;  %3991 = vmax.xlane.f32.xlu1 %v3990_v16 }
0x1e4c   : > { %3994 = vmax.xlane.f32.xlu1 %v3993_v23 }
0x1e58   : > { %4240 = vrot.lane.b32.xlu0 %v6760_v18, %s7257_s22 }
0x1e65   : > { %4150 = vrot.lane.b32.xlu1 %v6767_v20, %s7257_s22 }
0x1e85   : > { %v3998_v27 = vpop.xlane.xlu2 %3997 }
0x1e86   : > { %v4014_v10 = vsub.f32 %v3966_v28, %v3998_v27 }
0x1e88   : > { %v4035_v30 = vmul.f32 1.442695, %v4014_v10 }
0x1e8a   : > { %5538 = vpow2.f32 %v4035_v30 }
0x1e8d   : > { %v4001_v40 = vpop.xlane.xlu2 %4000 }
0x1e8e   : > { %v4015_v26 = vsub.f32 %v6820_v45, %v4001_v40 }
0x1e90   : > { %v6853_v54 = vpop.eup %5538  ;;  %v4037_v23 = vmul.f32 1.442695, %v4015_v26 }
0x1e91   : > { %v4068_v33 = vsel %vm3021_vm6, %v6853_v54, 0.0 }
0x1e92   : > { %4069 = vadd.xlane.f32.xlu1 %v4068_v33 }
0x1e95   : > { %v4004_v50 = vpop.xlane.xlu2 %4003 }
0x1e96   : > { %v4016_v62 = vsub.f32 %v6824_v47, %v4004_v50 }
0x1e97   : > { %v6857_v35 = vpop.xlane.xlu1 %3970 }
0x1e98   : > { %v4005_v27 = vsub.f32 %v6826_v19, %v6857_v35 }
0x1e9a   : > { %v4017_v10 = vmul.f32 1.442695, %v4005_v27 }
0x1e9d   : > { %v5363_v24 = vpop.permute.xlu2 %5362 }
0x1e9e   : > { %v5364_v14 = vunpack.i.l.bf16 %v5363_v24  ;;  %v5365_v16 = vunpack.i.h.bf16 %v5363_v24 }
0x1e9f   : > { %v6859_v36 = vpop.xlane.xlu0 %3973 }
0x1ea0   : > { %v4006_v45 = vsub.f32 %v6832_v53, %v6859_v36 }
0x1ea7   : > { %v6861_v38 = vpop.xlane.xlu1 %3976  ;;  %v3980_v18 = vpop.xlane.xlu0 %3979 }
0x1ea8   : > { %v4008_v39 = vsub.f32 %v3960_v55, %v3980_v18  ;;  %v4007_v19 = vsub.f32 %v6836_v59, %v6861_v38 }
0x1eaa   : > { %v4023_v41 = vmul.f32 1.442695, %v4008_v39  ;;  %v4021_v35 = vmul.f32 1.442695, %v4007_v19  ;;  %v5134_v19 = vld [vmem:[%s7274_s1 + $0x30] sm:$0xff] }
0x1eac   : > { %5540 = vpow2.f32 %v4023_v41 }
0x1eaf   : > { %v3989_v20 = vpop.xlane.xlu1 %3988  ;;  %v3983_v42 = vpop.xlane.xlu0 %3982 }
0x1eb0   : > { %v4011_v37 = vsub.f32 %v3963_v0, %v3989_v20  ;;  %v4009_v25 = vsub.f32 %v3961_v6, %v3983_v42  ;;  %v4039_v6 = vmul.f32 1.442695, %v4016_v62 }
0x1eb2   : > { %v4029_v43 = vmul.f32 1.442695, %v4011_v37  ;;  %v6863_v44 = vpop.eup %5540  ;;  %v4025_v28 = vmul.f32 1.442695, %v4009_v25 }
0x1eb3   : > { %v4050_v57 = vsel %vm3021_vm6, %v6863_v44, 0.0 }
0x1eb4   : > { %5542 = vpow2.f32 %v4029_v43  ;;  %4051 = vadd.xlane.f32.xlu0 %v4050_v57 }
0x1eb5   : > { %5544 = vpow2.f32 %v4025_v28 }
0x1eb7   : > { %v3992_v31 = vpop.xlane.xlu1 %3991  ;;  %v3986_v61 = vpop.xlane.xlu0 %3985 }
0x1eb8   : > { %v4012_v34 = vsub.f32 %v3964_v11, %v3992_v31  ;;  %v4010_v48 = vsub.f32 %v3962_v13, %v3986_v61 }
0x1eba   : > { %v6867_v46 = vpop.eup %5542  ;;  %v4031_v17 = vmul.f32 1.442695, %v4012_v34  ;;  %v4027_v22 = vmul.f32 1.442695, %v4010_v48 }
0x1ebb   : > { %v4059_v49 = vsel %vm3021_vm6, %v6867_v46, 0.0  ;;  %v6871_v55 = vpop.eup %5544 }
0x1ebc   : > { %5546 = vpow2.f32 %v4031_v17  ;;  %4060 = vadd.xlane.f32.xlu2 %v4059_v49  ;;  %v4053_v0 = vsel %vm3021_vm6, %v6871_v55, 0.0 }
0x1ebd   : > { %5548 = vpow2.f32 %v4027_v22 }
0x1ebf   : > { %v3995_v32 = vpop.xlane.xlu1 %3994 }
0x1ec0   : > { %v4013_v56 = vsub.f32 %v3965_v9, %v3995_v32  ;;  %v5371_v9 = vpack.i.bf16 %v6726_v8, %v6730_v21  ;;  %v4019_v21 = vmul.f32 1.442695, %v4006_v45 }
0x1ec2   : > { %v6873_v58 = vpop.eup %5546  ;;  %v4033_v63 = vmul.f32 1.442695, %v4013_v56 }
0x1ec3   : > { %v4062_v1 = vsel %vm3021_vm6, %v6873_v58, 0.0  ;;  %v6882_v52 = vpop.eup %5548 }
0x1ec4   : > { %5550 = vpow2.f32 %v4033_v63  ;;  %4063 = vadd.xlane.f32.xlu1 %v4062_v1  ;;  %4054 = vadd.xlane.f32.xlu2 %v4053_v0  ;;  %v4056_v51 = vsel %vm3028_vm7, %v6882_v52, 0.0 }
0x1ec5   : > { %5552 = vpow2.f32 %v4039_v6 }
0x1ec6   : > { %5554 = vpow2.f32 %v4037_v23 }
0x1ec7   : > { %5556 = vpow2.f32 %v4017_v10 }
0x1ec8   : > { %5367 = vrot.lane.b32.xlu0 %v5366_v5, %s7257_s22  ;;  %5558 = vpow2.f32 %v4019_v21 }
0x1ec9   : > { %5560 = vpow2.f32 %v4021_v35  ;;  %v5132_v35 = vld [vmem:[%s7274_s1 + $0x20] sm:$0xff] }
0x1eca   : > { %v6885_v47 = vpop.eup %5550  ;;  %v4241_v3 = vpop.permute.xlu0 %4240 }
0x1ecb   : > { %5200 = vmatpush.msk.msra.mxu1 %vm1533_vm2, %v4241_v3  ;;  %v4065_v12 = vsel %vm3028_vm7, %v6885_v47, 0.0  ;;  %v6892_v11 = vpop.eup %5552 }
0x1ecc   : > { %4066 = vadd.xlane.f32.xlu1 %v4065_v12  ;;  %4057 = vadd.xlane.f32.xlu2 %v4056_v51  ;;  %v4074_v15 = vsel %vm3028_vm7, %v6892_v11, 0.0  ;;  %v6905_v30 = vpop.eup %5554 }
0x1ecd   : > { %v4071_v8 = vsel %vm3021_vm6, %v6905_v30, 0.0  ;;  %v6911_v33 = vpop.eup %5556 }
0x1ece   : > { %v6917_v18 = vpop.eup %5558 }
0x1ecf   : > { %v4044_v53 = vsel %vm3021_vm6, %v6917_v18, 0.0  ;;  %v6921_v36 = vpop.eup %5560 }
0x1ed0   : > { %v4047_v39 = vsel %vm3028_vm7, %v6921_v36, 0.0 }
0x1ed4   : > { %4075 = vadd.xlane.f32.xlu2 %v4074_v15 }
0x1ed7   : > { %v4151_v13 = vpop.permute.xlu1 %4150 }
0x1ed8   : > { %5192 = vmatpush.msk.msra.mxu0 %vm1533_vm2, %v4151_v13 }
0x1eda   : > { %4179 = vmatpush.msra.mxu0 %v5364_v14 }
0x1edc   : > { %4180 = vmatpush.msra.mxu0 %v5365_v16 }
0x1ee5   : > { %5372 = vrot.lane.b32.xlu1 %v5371_v9, %s7257_s22 }
0x1eec   : > { %4105 = vrot.lane.b32.xlu2 %v6734_v4, %s7257_s22  ;;  %v4041_v4 = vsel %vm3021_vm6, %v6911_v33, 0.0  ;;  %s7285_s22 = sld [smem:[#allocation47_spill]] }
0x1ef2   : > { %4072 = vadd.xlane.f32.xlu0 %v4071_v8 }
0x1efa   : > { %4042 = vadd.xlane.f32.xlu0 %v4041_v4  ;;  %v5133_v4 = vld [vmem:[%s7274_s1 + $0x28] sm:$0xff] }
0x1f02   : > { %4045 = vadd.xlane.f32.xlu0 %v4044_v53 }
0x1f05   : > { %v4070_v38 = vpop.xlane.xlu1 %4069 }
0x1f0a   : > { %4048 = vadd.xlane.f32.xlu0 %v4047_v39 }
0x1f27   : > { %v4052_v41 = vpop.xlane.xlu0 %4051 }
0x1f28   : > { %5562 = vrcp.f32 %v4052_v41 }
0x1f2e   : > { %v5563_v59 = vpop.eup %5562 }
0x1f2f   : > { %v4061_v20 = vpop.xlane.xlu2 %4060  ;;  %v4092_v42 = vmul.f32 %v5563_v59, %v6863_v44 }
0x1f30   : > { %5564 = vrcp.f32 %v4061_v20 }
0x1f31   : > { %5193 = vmatmul.msk.f32.vlgmr.msra.gmra.mxu0 %vm3021_vm6, %v4092_v42  ;;  %5566 = vrcp.f32 %v4070_v38 }
0x1f36   : > { %v5565_v37 = vpop.eup %5564 }
0x1f37   : > { %v4095_v43 = vmul.f32 %v5565_v37, %v6867_v46  ;;  %v4064_v25 = vpop.xlane.xlu1 %4063  ;;  %v4055_v57 = vpop.xlane.xlu2 %4054 }
0x1f38   : > { %5568 = vrcp.f32 %v4064_v25  ;;  %v5567_v28 = vpop.eup %5566 }
0x1f39   : > { %5570 = vrcp.f32 %v4055_v57  ;;  %5197 = vmatmul.msk.f32.vlgmr.msra.gmra.mxu3 %vm3021_vm6, %v4095_v43  ;;  %v4098_v17 = vmul.f32 %v5567_v28, %v6853_v54 }
0x1f3a   : > { %v5368_v40 = vpop.permute.xlu0 %5367 }
0x1f3b   : > { %v5369_v31 = vunpack.i.l.bf16 %v5368_v40  ;;  %v5370_v34 = vunpack.i.h.bf16 %v5368_v40 }
0x1f3d   : > { %4269 = vmatpush.msra.mxu1 %v5369_v31 }
0x1f3e   : > { %v5569_v61 = vpop.eup %5568 }
0x1f3f   : > { %v5571_v44 = vpop.eup %5570  ;;  %v4067_v48 = vpop.xlane.xlu1 %4066  ;;  %v4096_v22 = vmul.f32 %v5569_v61, %v6873_v58  ;;  %4270 = vmatpush.msra.mxu1 %v5370_v34 }
0x1f40   : > { %v4058_v49 = vpop.xlane.xlu2 %4057  ;;  %5572 = vrcp.f32 %v4067_v48  ;;  %v4093_v46 = vmul.f32 %v5571_v44, %v6871_v55  ;;  %5201 = vmatmul.msk.f32.vlgmr.msra.gmra.mxu1 %vm3021_vm6, %v4098_v17 }
0x1f41   : > { %5574 = vrcp.f32 %v4058_v49  ;;  %5198 = vmatmul.msk.f32.gmra.mxu3 %vm3021_vm6, %v4096_v22  ;;  %v5410_v49 = vld [vmem:[%s7275_s19 + $0x1] ss:$0 sm:$0xff] }
0x1f42   : > { %5194 = vmatmul.msk.f32.gmra.mxu0 %vm3021_vm6, %v4093_v46 }
0x1f46   : > { %v5573_v50 = vpop.eup %5572 }
0x1f47   : > { %v5575_v32 = vpop.eup %5574  ;;  %v4097_v54 = vmul.f32 %v5573_v50, %v6885_v47 }
0x1f48   : > { %v4076_v56 = vpop.xlane.xlu2 %4075  ;;  %v4094_v62 = vmul.f32 %v5575_v32, %v6882_v52 }
0x1f49   : > { %5199 = vmatmul.msk.f32.gmra.mxu3 %vm3021_vm6, %v4097_v54 }
0x1f4a   : > { %5195 = vmatmul.msk.f32.gmra.mxu0 %vm3021_vm6, %v4094_v62 }
0x1f50   : > { %v4106_v58 = vpop.permute.xlu2 %4105 }
0x1f51   : > { %5188 = vmatpush.msk.msra.mxu2 %vm1533_vm2, %v4106_v58 }
0x1f57   : > { %v5373_v55 = vpop.permute.xlu1 %5372 }
0x1f58   : > { %v5374_v63 = vunpack.i.l.bf16 %v5373_v55  ;;  %v5375_v1 = vunpack.i.h.bf16 %v5373_v55 }
0x1f5a   : > { %4134 = vmatpush.msra.mxu2 %v5374_v63 }
0x1f5c   : > { %4135 = vmatpush.msra.mxu2 %v5375_v1 }
0x1f65   : > { %v4073_v0 = vpop.xlane.xlu0 %4072 }
0x1f66   : > { %5576 = vrcp.f32 %v4073_v0 }
0x1f67   : > { %5578 = vrcp.f32 %v4076_v56 }
0x1f6c   : > { %v5577_v6 = vpop.eup %5576 }
0x1f6d   : > { %v4043_v5 = vpop.xlane.xlu0 %4042  ;;  %v4099_v47 = vmul.f32 %v5577_v6, %v6905_v30  ;;  %v5579_v52 = vpop.eup %5578 }
0x1f6e   : > { %5580 = vrcp.f32 %v4043_v5  ;;  %v4100_v15 = vmul.f32 %v5579_v52, %v6892_v11 }
0x1f6f   : > { %5202 = vmatmul.msk.f32.gmra.mxu1 %vm3021_vm6, %v4099_v47 }
0x1f74   : > { %v5581_v3 = vpop.eup %5580 }
0x1f75   : > { %v4089_v12 = vmul.f32 %v5581_v3, %v6911_v33  ;;  %v4046_v51 = vpop.xlane.xlu0 %4045  ;;  %v5135_v33 = vld [vmem:[%s7274_s1 + $0x38] sm:$0xff] }
0x1f76   : > { %5582 = vrcp.f32 %v4046_v51  ;;  %4350 = vmatpush.msrb.mxu2 %v5135_v33 }
0x1f77   : > { %5189 = vmatmul.msk.f32.vlgmr.msra.gmra.mxu2 %vm3021_vm6, %v4089_v12  ;;  %5203 = vmatmul.msk.f32.gmra.mxu1 %vm3021_vm6, %v4100_v15 }
0x1f78   : > { %4351 = vmatpush.msrb.mxu2 %v5134_v19 }
0x1f7a   : > { %4352 = vmatpush.msrb.mxu2 %v5133_v4 }
0x1f7c   : > { %v5583_v24 = vpop.eup %5582  ;;  %4353 = vmatpush.msrb.mxu2 %v5132_v35  ;;  %v5411_v35 = vld [vmem:[%s7278_s24 + $0x1] ss:$0 sm:$0xff] }
0x1f7d   : > { %v4049_v13 = vpop.xlane.xlu0 %4048  ;;  %v4090_v14 = vmul.f32 %v5583_v24, %v6917_v18 }
0x1f7e   : > { %5584 = vrcp.f32 %v4049_v13 }
0x1f7f   : > { %5190 = vmatmul.msk.f32.gmra.mxu2 %vm3021_vm6, %v4090_v14 }
0x1f84   : > { %v5585_v16 = vpop.eup %5584 }
0x1f85   : > { %v4091_v26 = vmul.f32 %v5585_v16, %v6921_v36 }
0x1f87   : > { %5191 = vmatmul.msk.f32.gmra.mxu2 %vm3021_vm6, %v4091_v26  ;;  %v5142_v26 = vld [vmem:[%s7276_s21 + $0x38] sm:$0xff] }
0x1f88   : > { %4469 = vmatpush.msrb.mxu0 %v5142_v26  ;;  %v5144_v26 = vld [vmem:[%s7277_s23 + $0x80] sm:$0xff] }
0x1fae   : > { %v4182_v9 = vpop.f32.mrf.mxu0 }
0x1faf   : > { %4284 = vrot.lane.b32.xlu0 %v4182_v9, %s7259_s8  ;;  %v5141_v9 = vld [vmem:[%s7276_s21 + $0x30] sm:$0xff] }
0x1fb0   : > { %4470 = vmatpush.msrb.mxu0 %v5141_v9  ;;  %v5413_v9 = vld [vmem:[%s7280_s26 + $0x1] ss:$0 sm:$0xff] }
0x1fbc   : > { %v4227_v11 = vpop.f32.mrf.mxu3 }
0x1fbd   : > { %4296 = vrot.lane.b32.xlu2 %v4227_v11, %s7258_s16  ;;  %v4272_v23 = vpop.f32.mrf.mxu1  ;;  %v5140_v11 = vld [vmem:[%s7276_s21 + $0x28] sm:$0xff] }
0x1fbe   : > { %4308 = vrot.lane.b32.xlu1 %v4272_v23, %s7260_s9  ;;  %4471 = vmatpush.msrb.mxu0 %v5140_v11  ;;  %v5139_v23 = vld [vmem:[%s7276_s21 + $0x20] sm:$0xff] }
0x1fbf   : > { %v4185_v27 = vpop.f32.mrf.mxu0 }
0x1fc0   : > { %4472 = vmatpush.msrb.mxu0 %v5139_v23 }
0x1fc4   : > { %v4230_v10 = vpop.f32.mrf.mxu3 }
0x1fc5   : > { %4286 = vrot.lane.b32.xlu2 %v4185_v27, %s7259_s8 }
0x1fc6   : > { %4298 = vrot.lane.b32.xlu1 %v4230_v10, %s7258_s16 }
0x1fc7   : > { %v4188_v30 = vpop.f32.mrf.mxu0 }
0x1fc8   : > { %4288 = vrot.lane.b32.xlu0 %v4188_v30, %s7259_s8 }
0x1fcc   : > { %v4233_v45 = vpop.f32.mrf.mxu3 }
0x1fce   : > { %4300 = vrot.lane.b32.xlu1 %v4233_v45, %s7258_s16 }
0x1fec   : > { %v4275_v8 = vpop.f32.mrf.mxu1 }
0x1fed   : > { %4310 = vrot.lane.b32.xlu2 %v4275_v8, %s7260_s9 }
0x1ff4   : > { %v4278_v21 = vpop.f32.mrf.mxu1 }
0x1ff5   : > { %4312 = vrot.lane.b32.xlu2 %v4278_v21, %s7260_s9  ;;  %s7283_s9 = sld [smem:[#allocation11_spill]] }
0x1ffa   : > { %v4137_v53 = vpop.f32.mrf.mxu2 }
0x1ffb   : > { %s1446_s16 = scalar_lea.vmem %s7283_s9, %s6075_s18  ;;  %s4986_s9 = sshll.u32 %s1415_s2, 4 }
0x2002   : > { %v4140_v37 = vpop.f32.mrf.mxu2 }
0x200a   : > { %v4143_v61 = vpop.f32.mrf.mxu2 }
0x2017   : > { %v4297_v39 = vpop.permute.xlu2 %4296 }
0x201f   : > { %v4287_v20 = vpop.permute.xlu2 %4286 }
0x2020   : > { %v4318_v43 = vsel %vm1645_vm9, %v4140_v37, %v4287_v20  ;;  %v5158_v37 = vld [vmem:[%s7277_s23 + $0xf0] sm:$0xff] }
0x2021   : > { %v4285_v18 = vpop.permute.xlu0 %4284 }
0x2022   : > { %v4317_v36 = vsel %vm1645_vm9, %v4137_v53, %v4285_v18  ;;  %v5412_v53 = vld [vmem:[%s7279_s25 + $0x1] ss:$0 sm:$0xff] }
0x2023   : > { %v4320_v59 = vsel %vm1505_vm1, %v4317_v36, %v4297_v39 }
0x2030   : > { %v4309_v41 = vpop.permute.xlu1 %4308 }
0x2031   : > { %v4323_v38 = vsel %vm1921_vm13, %v4320_v59, %v4309_v41 }
0x2032   : > { %5204 = vmatmul.msk.f32.vlgmr.msrb.gmra.mxu2 %vm1612_vm8, %v4323_v38 }
0x2038   : > { %v4299_v42 = vpop.permute.xlu1 %4298 }
0x2039   : > { %v4321_v25 = vsel %vm1505_vm1, %v4318_v43, %v4299_v42  ;;  %v5159_v42 = vld [vmem:[%s7277_s23 + $0xf8] sm:$0xff]  ;;  %v5157_v43 = vld [vmem:[%s7277_s23 + $0xe8] sm:$0xff] }
0x203a   : > { %v4289_v28 = vpop.permute.xlu0 %4288  ;;  %4513 = vmatpush.msrb.mxu3 %v5159_v42 }
0x203b   : > { %v4319_v34 = vsel %vm1645_vm9, %v4143_v61, %v4289_v28 }
0x203c   : > { %4514 = vmatpush.msrb.mxu3 %v5158_v37 }
0x203e   : > { %4515 = vmatpush.msrb.mxu3 %v5157_v43 }
0x2040   : > { %v4301_v31 = vpop.permute.xlu1 %4300 }
0x2041   : > { %v4322_v44 = vsel %vm1505_vm1, %v4319_v34, %v4301_v31 }
0x2047   : > { %v4311_v57 = vpop.permute.xlu2 %4310 }
0x2048   : > { %v4324_v40 = vsel %vm1921_vm13, %v4321_v25, %v4311_v57 }
0x2049   : > { %5205 = vmatmul.msk.f32.gmra.mxu2 %vm1612_vm8, %v4324_v40 }
0x204f   : > { %v4313_v17 = vpop.permute.xlu2 %4312 }
0x2050   : > { %v4325_v48 = vsel %vm1921_vm13, %v4322_v44, %v4313_v17 }
0x2051   : > { %5206 = vmatmul.msk.f32.gmra.mxu2 %vm1612_vm8, %v4325_v48 }
0x20b5   : > { %v4355_v22 = vpop.f32.mrf.mxu2 }
0x20b6   : > { %v4356_v46 = vadd.f32 %v5410_v49, %v4355_v22 }
0x20b8   : > { %v6977_v50 = vadd.f32 %v4356_v46, %v6685_v60 }
0x20ba   : > { %v4367_v32 = vsel %vm1612_vm8, %v6977_v50, 0.0 }
0x20bb   : > { %4368 = vadd.xlane.f32.xlu0 %v4367_v32 }
0x20cc   : > { %v4358_v56 = vpop.f32.mrf.mxu2 }
0x20cd   : > { %v4359_v54 = vadd.f32 %v5410_v49, %v4358_v56 }
0x20cf   : > { %v6982_v62 = vadd.f32 %v4359_v54, %v6690_v2 }
0x20d1   : > { %v4370_v58 = vsel %vm1612_vm8, %v6982_v62, 0.0 }
0x20d2   : > { %4371 = vadd.xlane.f32.xlu1 %v4370_v58 }
0x20d4   : > { %v4361_v55 = vpop.f32.mrf.mxu2 }
0x20d5   : > { %v4362_v63 = vadd.f32 %v5410_v49, %v4361_v55 }
0x20d7   : > { %v6987_v1 = vadd.f32 %v4362_v63, %v6695_v7 }
0x20d9   : > { %v4373_v60 = vsel %vm2701_vm5, %v6987_v1, 0.0 }
0x20da   : > { %4374 = vadd.xlane.f32.xlu2 %v4373_v60 }
0x212e   : > { %v4369_v0 = vpop.xlane.xlu0 %4368 }
0x212f   : > { %v4376_v6 = vmul.f32 %v4369_v0, %v6097_v29 }
0x2131   : > { %v4379_v5 = vsub.f32 %v6977_v50, %v4376_v6 }
0x2133   : > { %v4382_v2 = vmul.f32 %v4379_v5, %v4379_v5 }
0x2135   : > { %v4385_v47 = vsel %vm1612_vm8, %v4382_v2, 0.0  ;;  %v5156_v2 = vld [vmem:[%s7277_s23 + $0xe0] sm:$0xff] }
0x2136   : > { %4386 = vadd.xlane.f32.xlu0 %v4385_v47  ;;  %4516 = vmatpush.msrb.mxu3 %v5156_v2  ;;  %v5155_v47 = vld [vmem:[%s7277_s23 + $0xd8] sm:$0xff] }
0x2138   : > { %4517 = vmatpush.msrb.mxu3 %v5155_v47 }
0x2145   : > { %v4372_v52 = vpop.xlane.xlu1 %4371 }
0x2146   : > { %v4377_v7 = vmul.f32 %v4372_v52, %v6097_v29  ;;  %v5154_v52 = vld [vmem:[%s7277_s23 + $0xd0] sm:$0xff] }
0x2147   : > { %4518 = vmatpush.msrb.mxu3 %v5154_v52 }
0x2148   : > { %v6996_v3 = vsub.f32 %v6982_v62, %v4377_v7  ;;  %v5153_v7 = vld [vmem:[%s7277_s23 + $0xc8] sm:$0xff] }
0x2149   : > { %4519 = vmatpush.msrb.mxu3 %v5153_v7 }
0x214a   : > { %v4383_v12 = vmul.f32 %v6996_v3, %v6996_v3 }
0x214c   : > { %v4388_v51 = vsel %vm1612_vm8, %v4383_v12, 0.0  ;;  %v5151_v12 = vld [vmem:[%s7277_s23 + $0xb8] sm:$0xff] }
0x214d   : > { %v4375_v15 = vpop.xlane.xlu2 %4374  ;;  %4389 = vadd.xlane.f32.xlu1 %v4388_v51  ;;  %v5150_v51 = vld [vmem:[%s7277_s23 + $0xb0] sm:$0xff] }
0x214e   : > { %v4378_v24 = vmul.f32 %v4375_v15, %v6097_v29  ;;  %v5149_v15 = vld [vmem:[%s7277_s23 + $0xa8] sm:$0xff] }
0x2150   : > { %v7003_v13 = vsub.f32 %v6987_v1, %v4378_v24  ;;  %v5148_v24 = vld [vmem:[%s7277_s23 + $0xa0] sm:$0xff] }
0x2152   : > { %v4384_v14 = vmul.f32 %v7003_v13, %v7003_v13 }
0x2154   : > { %v4391_v16 = vsel %vm2701_vm5, %v4384_v14, 0.0  ;;  %v5146_v14 = vld [vmem:[%s7277_s23 + $0x90] sm:$0xff] }
0x2155   : > { %4392 = vadd.xlane.f32.xlu2 %v4391_v16  ;;  %v5145_v16 = vld [vmem:[%s7277_s23 + $0x88] sm:$0xff] }
0x21a9   : > { %v4387_v27 = vpop.xlane.xlu0 %4386 }
0x21aa   : > { %v4394_v10 = vmul.f32 %v4387_v27, %v6097_v29 }
0x21ac   : > { %v4397_v30 = vadd.f32 1e-05, %v4394_v10 }
0x21ae   : > { %5586 = vrsqrt.f32 %v4397_v30  ;;  %vm4406_vm9 = vweird.f32 %v4397_v30 }
0x21b4   : > { %v5587_v45 = vpop.eup %5586 }
0x21b5   : > { %v4401_v8 = vmul.f32 %v5587_v45, %v4397_v30  ;;  %vm4407_vm1 = vweird.f32 %v5587_v45 }
0x21b6   : > { %vm4408_vm13 = vmor %vm4406_vm9, %vm4407_vm1 }
0x21b7   : > { %v4402_v21 = vmul.f32 %v5587_v45, %v4401_v8 }
0x21b9   : > { %v4403_v33 = vmul.f32 0.5, %v4402_v21 }
0x21bb   : > { %v4404_v19 = vsub.f32 1.5, %v4403_v33 }
0x21bd   : > { %v4405_v4 = vmul.f32 %v5587_v45, %v4404_v19 }
0x21bf   : > { %v4409_v18 = vsel %vm4408_vm13, %v5587_v45, %v4405_v4 }
0x21c0   : > { %v4430_v36 = vmul.f32 %v4409_v18, %v4379_v5  ;;  %v4390_v39 = vpop.xlane.xlu1 %4389 }
0x21c1   : > { %v4395_v41 = vmul.f32 %v4390_v39, %v6097_v29 }
0x21c2   : > { %v4436_v59 = vmul.f32 %v5411_v35, %v4430_v36 }
0x21c3   : > { %v4398_v38 = vadd.f32 1e-05, %v4395_v41 }
0x21c4   : > { %v4442_v20 = vadd.f32 %v5412_v53, %v4436_v59 }
0x21c5   : > { %5588 = vrsqrt.f32 %v4398_v38  ;;  %vm4416_vm7 = vweird.f32 %v4398_v38 }
0x21c6   : > { %5207 = vmatmul.msk.f32.vlgmr.msrb.gmra.mxu0 %vm1612_vm8, %v4442_v20 }
0x21c8   : > { %v4393_v25 = vpop.xlane.xlu2 %4392 }
0x21c9   : > { %v4396_v57 = vmul.f32 %v4393_v25, %v6097_v29 }
0x21cb   : > { %v5589_v40 = vpop.eup %5588  ;;  %v4399_v28 = vadd.f32 1e-05, %v4396_v57 }
0x21cc   : > { %v4411_v31 = vmul.f32 %v5589_v40, %v4398_v38  ;;  %vm4417_vm6 = vweird.f32 %v5589_v40 }
0x21cd   : > { %5590 = vrsqrt.f32 %v4399_v28  ;;  %vm4418_vm14 = vmor %vm4416_vm7, %vm4417_vm6  ;;  %vm4426_vm4 = vweird.f32 %v4399_v28 }
0x21ce   : > { %v4412_v61 = vmul.f32 %v5589_v40, %v4411_v31 }
0x21d0   : > { %v4413_v34 = vmul.f32 0.5, %v4412_v61 }
0x21d2   : > { %v4414_v44 = vsub.f32 1.5, %v4413_v34 }
0x21d3   : > { %v5591_v17 = vpop.eup %5590 }
0x21d4   : > { %v4415_v48 = vmul.f32 %v5589_v40, %v4414_v44  ;;  %v4421_v49 = vmul.f32 %v5591_v17, %v4399_v28  ;;  %vm4427_vm15 = vweird.f32 %v5591_v17 }
0x21d5   : > { %vm4428_vm10 = vmor %vm4426_vm4, %vm4427_vm15  ;;  %vm4732_vm15 = vcmask 7168   ;;  %vm4708_vm4 = vcmask 1046528  }
0x21d6   : > { %v4419_v22 = vsel %vm4418_vm14, %v5589_v40, %v4415_v48  ;;  %v4422_v46 = vmul.f32 %v5591_v17, %v4421_v49  ;;  %v5414_v49 = vld [vmem:[%s7281_s29 + $0x1] ss:$0 sm:$0xff]  ;;  %vm4665_vm14 = vcmask 392193  }
0x21d7   : > { %v4431_v32 = vmul.f32 %v4419_v22, %v6996_v3  ;;  %v5152_v3 = vld [vmem:[%s7277_s23 + $0xc0] sm:$0xff] }
0x21d8   : > { %v4423_v56 = vmul.f32 0.5, %v4422_v46  ;;  %4520 = vmatpush.msrb.mxu3 %v5152_v3 }
0x21d9   : > { %v4437_v54 = vmul.f32 %v5411_v35, %v4431_v32 }
0x21da   : > { %v4424_v58 = vsub.f32 1.5, %v4423_v56  ;;  %4521 = vmatpush.msrb.mxu3 %v5151_v12 }
0x21db   : > { %v4443_v55 = vadd.f32 %v5412_v53, %v4437_v54 }
0x21dc   : > { %v4425_v63 = vmul.f32 %v5591_v17, %v4424_v58  ;;  %4522 = vmatpush.msrb.mxu3 %v5150_v51 }
0x21dd   : > { %5208 = vmatmul.msk.f32.gmra.mxu0 %vm1612_vm8, %v4443_v55 }
0x21de   : > { %v4429_v60 = vsel %vm4428_vm10, %v5591_v17, %v4425_v63  ;;  %4523 = vmatpush.msrb.mxu3 %v5149_v15 }
0x21df   : > { %v4432_v0 = vmul.f32 %v4429_v60, %v7003_v13  ;;  %v5147_v13 = vld [vmem:[%s7277_s23 + $0x98] sm:$0xff] }
0x21e0   : > { %4524 = vmatpush.msrb.mxu3 %v5148_v24 }
0x21e1   : > { %v4438_v6 = vmul.f32 %v5411_v35, %v4432_v0 }
0x21e2   : > { %4525 = vmatpush.msrb.mxu3 %v5147_v13 }
0x21e3   : > { %v4444_v5 = vadd.f32 %v5412_v53, %v4438_v6 }
0x21e4   : > { %4526 = vmatpush.msrb.mxu3 %v5146_v14 }
0x21e5   : > { %5209 = vmatmul.msk.f32.gmra.mxu0 %vm1612_vm8, %v4444_v5 }
0x21e6   : > { %4527 = vmatpush.msrb.mxu3 %v5145_v16 }
0x21e8   : > { %4528 = vmatpush.msrb.mxu3 %v5144_v26  ;;  %v4625_v26 = vld [vmem:[%s7282_s5 + $0x18] sm:$0xff] }
0x21e9   : > { %4651 = vmatpush.msrb.mxu1 %v4625_v26 }
0x2243   : > { %v4474_v11 = vpop.f32.mrf.mxu0 }
0x2244   : > { %v4475_v23 = vadd.f32 %v5413_v9, %v4474_v11  ;;  %v4623_v11 = vld [vmem:[%s7282_s5 + $0x8] sm:$0xff] }
0x2246   : > { %v4483_v27 = vmul.f32 %v4475_v23, %v4475_v23 }
0x2248   : > { %v4486_v10 = vmul.f32 %v4483_v27, %v4475_v23 }
0x224a   : > { %v4489_v30 = vmul.f32 0.044715, %v4486_v10 }
0x224c   : > { %v4492_v45 = vadd.f32 %v4489_v30, %v4475_v23 }
0x224e   : > { %v4495_v8 = vmul.f32 0.7978846, %v4492_v45 }
0x2250   : > { %5592 = vtanh.f32 %v4495_v8  ;;  %v5757_v8 = vmov 0  }
0x2251   : > { %5376 = vset.pattern.permute.xlu0 %v5757_v8  ;;  %5377 = vset.pattern.permute.xlu1 %v5757_v8 }
0x2256   : > { %v5593_v21 = vpop.eup %5592 }
0x2257   : > { %v4501_v33 = vadd.f32 1.0, %v5593_v21  ;;  %v7067_v21 = vld [vmem:[%s1446_s16] sm:$0xff] }
0x2259   : > { %v4504_v19 = vmul.f32 0.5, %v4501_v33 }
0x225a   : > { %v4477_v4 = vpop.f32.mrf.mxu0 }
0x225b   : > { %v4478_v35 = vadd.f32 %v5413_v9, %v4477_v4  ;;  %v4507_v18 = vmul.f32 %v4504_v19, %v4475_v23  ;;  %v4622_v23 = vld [vmem:[%s7282_s5] sm:$0xff] }
0x225d   : > { %v4484_v53 = vmul.f32 %v4478_v35, %v4478_v35  ;;  %4529 = vmatmul.f32.vlgmr.msrb.gmra.mxu3 %v4507_v18 }
0x225f   : > { %v4487_v36 = vmul.f32 %v4484_v53, %v4478_v35  ;;  %v5415_v53 = vld [vmem:[%s7284_s3] ss:$0 sm:$0xff]  ;;  %s7082_s3 = scalar_lea.vmem [#allocation5], %s4986_s9 }
0x2261   : > { %v4490_v39 = vmul.f32 0.044715, %v4487_v36 }
0x2262   : > { %v4480_v41 = vpop.f32.mrf.mxu0 }
0x2263   : > { %v4481_v59 = vadd.f32 %v5413_v9, %v4480_v41  ;;  %v4493_v38 = vadd.f32 %v4490_v39, %v4478_v35  ;;  %v4624_v9 = vld [vmem:[%s7282_s5 + $0x10] sm:$0xff]  ;;  %v5416_v39 = vld [vmem:[%s7285_s22] ss:$0 sm:$0xff]  ;;  %s5222_s22 = sshll.u32 %s6015_s0, 4 }
0x2264   : > { %4652 = vmatpush.msrb.mxu1 %v4624_v9 }
0x2265   : > { %v4485_v20 = vmul.f32 %v4481_v59, %v4481_v59  ;;  %v4496_v42 = vmul.f32 0.7978846, %v4493_v38 }
0x2266   : > { %4653 = vmatpush.msrb.mxu1 %v4623_v11 }
0x2267   : > { %v4488_v37 = vmul.f32 %v4485_v20, %v4481_v59  ;;  %5594 = vtanh.f32 %v4496_v42 }
0x2268   : > { %4654 = vmatpush.msrb.mxu1 %v4622_v23 }
0x2269   : > { %v4491_v43 = vmul.f32 0.044715, %v4488_v37 }
0x226b   : > { %v4494_v25 = vadd.f32 %v4491_v43, %v4481_v59  ;;  %v4684_v43 = vld [vmem:[%s1446_s16 + $0x8] sm:$0xff]  ;;  %s1451_s16 = scalar_lea.vmem %s7286_s4, %s6075_s18  ;;  %s4766_s18 = sshll.u32 %s7082_s3, 4  ;;  %s4767_s18 = int_to_ptr.vmem [resolvable:$true] %s4766_s18 }
0x226c   : > { %s4765_s4 = scalar_lea.hbm %s5982_s20, %s5222_s22 }
0x226d   : > { %v5595_v57 = vpop.eup %5594  ;;  %v4497_v40 = vmul.f32 0.7978846, %v4494_v25  ;;  %s4768_s9 = sshll.u32 %s4765_s4, 4  ;;  %s4769_s9 = int_to_ptr.hbm [resolvable:$true] %s4768_s9 }
0x226e   : > { %v4502_v28 = vadd.f32 1.0, %v5595_v57  ;;  %s5648_s1 = sshra.s32 %s4769_s9, 4  ;;  %s5649_s1 = int_to_ptr.hbm [resolvable:$true] %s5648_s1 }
0x226f   : > { %5596 = vtanh.f32 %v4497_v40  ;;  %s5650_s5 = scalar_lea.hbm %s5649_s1, 16  ;;  %p5655_p13 = scmp.lt.s32.totalorder %s5649_s1, %s5982_s20 }
0x2270   : > { %v4505_v31 = vmul.f32 0.5, %v4502_v28  ;;  %p5651_p9 = scmp.ne.s32.totalorder %s5649_s1, %s5650_s5  ;;  %p5656_p0 = scmp.lt.s32.totalorder %s5654_s6, %s5650_s5 }
0x2272   : > { %v4508_v61 = vmul.f32 %v4505_v31, %v4478_v35  ;;  %p5652_p10 = pnand %p5651_p9, %p6032_p5  ;;  %p5657_p1 = por %p5656_p0, %p5655_p13 }
0x2274   : > { %4532 = vmatmul.f32.gmra.mxu3 %v4508_v61  ;;  %p5653_p12 = pneg %p5652_p10 }
0x2275   : > { %v5597_v34 = vpop.eup %5596 }
0x2276   : > { %v4503_v44 = vadd.f32 1.0, %v5597_v34  ;;  %p5658_p2 = pnand %p5657_p1, %p5653_p12 }
0x2278   : > { %v4506_v17 = vmul.f32 0.5, %v4503_v44 }
0x227a   : > { %v4509_v48 = vmul.f32 %v4506_v17, %v4481_v59 }
0x227c   : > { %4535 = vmatmul.f32.gmra.mxu3 %v4509_v48 }
0x22e0   : > { %v4530_v22 = vpop.f32.mrf.mxu3 }
0x22e1   : > { %v4531_v46 = vadd.f32 %v5414_v49, %v4530_v22 }
0x22e3   : > { %v4539_v32 = vadd.f32 %v4531_v46, %v6977_v50 }
0x22e5   : > { %v4544_v56 = vsel %vm1612_vm8, %v4539_v32, 0.0 }
0x22e6   : > { %4545 = vadd.xlane.f32.xlu0 %v4544_v56 }
0x22f7   : > { %v4533_v54 = vpop.f32.mrf.mxu3 }
0x22f8   : > { %v4534_v58 = vadd.f32 %v5414_v49, %v4533_v54 }
0x22fa   : > { %v4540_v55 = vadd.f32 %v4534_v58, %v6982_v62 }
0x22fc   : > { %v4547_v63 = vsel %vm1612_vm8, %v4540_v55, 0.0 }
0x22fd   : > { %4548 = vadd.xlane.f32.xlu1 %v4547_v63 }
0x22ff   : > { %v4536_v60 = vpop.f32.mrf.mxu3 }
0x2300   : > { %v4537_v0 = vadd.f32 %v5414_v49, %v4536_v60 }
0x2302   : > { %v4541_v6 = vadd.f32 %v4537_v0, %v6987_v1 }
0x2304   : > { %v4550_v5 = vsel %vm2701_vm5, %v4541_v6, 0.0 }
0x2305   : > { %4551 = vadd.xlane.f32.xlu2 %v4550_v5  ;;  %v5417_v5 = vld [vmem:[#allocation2] ss:$0 sm:$0xff] }
0x2359   : > { %v4546_v2 = vpop.xlane.xlu0 %4545 }
0x235a   : > { %v4553_v50 = vmul.f32 %v4546_v2, %v6097_v29 }
0x235c   : > { %v4556_v47 = vsub.f32 %v4539_v32, %v4553_v50 }
0x235e   : > { %v4559_v52 = vmul.f32 %v4556_v47, %v4556_v47 }
0x2360   : > { %v4562_v7 = vsel %vm1612_vm8, %v4559_v52, 0.0  ;;  %v4734_v52 = vsel %vm4732_vm15, %v4684_v43, 0.0 }
0x2361   : > { %4563 = vadd.xlane.f32.xlu0 %v4562_v7 }
0x2370   : > { %v4549_v62 = vpop.xlane.xlu1 %4548 }
0x2371   : > { %v4554_v3 = vmul.f32 %v4549_v62, %v6097_v29  ;;  %v4671_v62 = vld [vmem:[%s1451_s16 + $0x8] sm:$0xff] }
0x2373   : > { %v7049_v12 = vsub.f32 %v4540_v55, %v4554_v3  ;;  %v4670_v3 = vld [vmem:[%s1451_s16] sm:$0xff]  ;;  %s4748_s16 = scalar_lea.sflag [#allocation4], %s1415_s2 }
0x2375   : > { %v4560_v1 = vmul.f32 %v7049_v12, %v7049_v12  ;;  %4690 = vperm.xlu0 %5376, %v7067_v21  }
0x2377   : > { %v4565_v51 = vsel %vm1612_vm8, %v4560_v1, 0.0  ;;  %v4674_v1 = vrot.slane %v4670_v3, 7 }
0x2378   : > { %v4552_v15 = vpop.xlane.xlu2 %4551  ;;  %4566 = vadd.xlane.f32.xlu1 %v4565_v51 }
0x2379   : > { %v4555_v24 = vmul.f32 %v4552_v15, %v6097_v29 }
0x237b   : > { %v7055_v13 = vsub.f32 %v4541_v6, %v4555_v24 }
0x237d   : > { %v4561_v14 = vmul.f32 %v7055_v13, %v7055_v13 }
0x237f   : > { %v4568_v16 = vsel %vm2701_vm5, %v4561_v14, 0.0 }
0x2380   : > { %4569 = vadd.xlane.f32.xlu2 %v4568_v16 }
0x2391   : > { %4694 = vperm.xlu1 %5377, %v4684_v43  }
0x23d4   : > { %v4564_v27 = vpop.xlane.xlu0 %4563 }
0x23d5   : > { %v4571_v10 = vmul.f32 %v4564_v27, %v6097_v29 }
0x23d7   : > { %v4574_v30 = vadd.f32 1e-05, %v4571_v10 }
0x23d9   : > { %5598 = vrsqrt.f32 %v4574_v30  ;;  %vm4583_vm11 = vweird.f32 %v4574_v30 }
0x23df   : > { %v5599_v45 = vpop.eup %5598 }
0x23e0   : > { %v4578_v33 = vmul.f32 %v5599_v45, %v4574_v30  ;;  %vm4584_vm5 = vweird.f32 %v5599_v45 }
0x23e1   : > { %vm4585_vm12 = vmor %vm4583_vm11, %vm4584_vm5 }
0x23e2   : > { %v4579_v19 = vmul.f32 %v5599_v45, %v4578_v33 }
0x23e4   : > { %v4580_v4 = vmul.f32 0.5, %v4579_v19 }
0x23e6   : > { %v4581_v35 = vsub.f32 1.5, %v4580_v4 }
0x23e8   : > { %v4582_v18 = vmul.f32 %v5599_v45, %v4581_v35 }
0x23ea   : > { %v4586_v36 = vsel %vm4585_vm12, %v5599_v45, %v4582_v18 }
0x23eb   : > { %v4607_v41 = vmul.f32 %v4586_v36, %v4556_v47  ;;  %v4567_v59 = vpop.xlane.xlu1 %4566  ;;  %v4733_v47 = vsel %vm4732_vm15, %v7067_v21, 0.0 }
0x23ec   : > { %v4572_v38 = vmul.f32 %v4567_v59, %v6097_v29  ;;  %v4735_v7 = vadd.f32 %v4734_v52, %v4733_v47 }
0x23ed   : > { %v4613_v20 = vmul.f32 %v5415_v53, %v4607_v41 }
0x23ee   : > { %v4575_v42 = vadd.f32 1e-05, %v4572_v38 }
0x23ef   : > { %v4619_v37 = vadd.f32 %v5416_v39, %v4613_v20 }
0x23f0   : > { %5600 = vrsqrt.f32 %v4575_v42  ;;  %vm4593_vm1 = vweird.f32 %v4575_v42 }
0x23f1   : > { %5210 = vmatmul.msk.f32.vlgmr.msrb.gmra.mxu1 %vm1612_vm8, %v4619_v37 }
0x23f3   : > { %v4570_v25 = vpop.xlane.xlu2 %4569 }
0x23f4   : > { %v4573_v57 = vmul.f32 %v4570_v25, %v6097_v29 }
0x23f6   : > { %v5601_v40 = vpop.eup %5600  ;;  %v4576_v28 = vadd.f32 1e-05, %v4573_v57 }
0x23f7   : > { %v4588_v31 = vmul.f32 %v5601_v40, %v4575_v42  ;;  %vm4594_vm3 = vweird.f32 %v5601_v40 }
0x23f8   : > { %5602 = vrsqrt.f32 %v4576_v28  ;;  %vm4595_vm9 = vmor %vm4593_vm1, %vm4594_vm3  ;;  %vm4603_vm6 = vweird.f32 %v4576_v28 }
0x23f9   : > { %v4589_v61 = vmul.f32 %v5601_v40, %v4588_v31 }
0x23fb   : > { %v4590_v34 = vmul.f32 0.5, %v4589_v61 }
0x23fd   : > { %v4591_v44 = vsub.f32 1.5, %v4590_v34 }
0x23fe   : > { %v5603_v17 = vpop.eup %5602 }
0x23ff   : > { %v4592_v48 = vmul.f32 %v5601_v40, %v4591_v44  ;;  %v4598_v49 = vmul.f32 %v5603_v17, %v4576_v28  ;;  %vm4604_vm13 = vweird.f32 %v5603_v17 }
0x2400   : > { %vm4605_vm7 = vmor %vm4603_vm6, %vm4604_vm13 }
0x2401   : > { %v4596_v22 = vsel %vm4595_vm9, %v5601_v40, %v4592_v48  ;;  %v4599_v46 = vmul.f32 %v5603_v17, %v4598_v49 }
0x2402   : > { %v4608_v32 = vmul.f32 %v4596_v22, %v7049_v12  ;;  %v4675_v12 = vrot.slane %v4671_v62, 7 }
0x2403   : > { %v4600_v29 = vmul.f32 0.5, %v4599_v46  ;;  %v4695_v51 = vpop.permute.xlu1 %4694 }
0x2404   : > { %v4614_v56 = vmul.f32 %v5415_v53, %v4608_v32  ;;  %v4676_v24 = vsel %vm1533_vm2, %v4674_v1, %v4675_v12  ;;  %v4697_v16 = vrot.slane %v4695_v51, 7 }
0x2405   : > { %v4601_v54 = vsub.f32 1.5, %v4600_v29 }
0x2406   : > { %v4620_v58 = vadd.f32 %v5416_v39, %v4614_v56 }
0x2407   : > { %v4602_v55 = vmul.f32 %v5603_v17, %v4601_v54 }
0x2408   : > { %5211 = vmatmul.msk.f32.gmra.mxu1 %vm1612_vm8, %v4620_v58 }
0x2409   : > { %v4606_v63 = vsel %vm4605_vm7, %v5603_v17, %v4602_v55 }
0x240a   : > { %v4609_v60 = vmul.f32 %v4606_v63, %v7055_v13  ;;  %v4691_v13 = vpop.permute.xlu0 %4690 }
0x240b   : > { %v4696_v11 = vrot.slane %v4691_v13, 7 }
0x240c   : > { %v4615_v0 = vmul.f32 %v5415_v53, %v4609_v60 }
0x240d   : > { %v4698_v27 = vsel %vm1533_vm2, %v4696_v11, %v4697_v16 }
0x240e   : > { %v4621_v6 = vadd.f32 %v5416_v39, %v4615_v0 }
0x2410   : > { %5212 = vmatmul.msk.f32.gmra.mxu1 %vm1612_vm8, %v4621_v6  ;;  %vm4668_vm8 = vcmask 385024  }
0x246e   : > { %v4656_v2 = vpop.f32.mrf.mxu1 }
0x246f   : > { %v4657_v50 = vadd.f32 %v5417_v5, %v4656_v2 }
0x2471   : > { %4666 = vst.msk [vmem:[%s7082_s3 - $0x1] sm:$0xfe] %vm4665_vm14, %v4657_v50  ;;  %v4680_v26 = vsub.f32 %v4657_v50, %v4674_v1 }
0x2473   : > { %v4685_v10 = vmul.f32 %v4680_v26, %v4680_v26 }
0x2475   : > { %v4702_v21 = vmul.f32 %v4696_v11, %v4685_v10 }
0x2477   : > { %v4709_v35 = vrot.slane %v4702_v21, 1 }
0x2485   : > { %v4659_v15 = vpop.f32.mrf.mxu1 }
0x2486   : > { %v4660_v14 = vadd.f32 %v5417_v5, %v4659_v15 }
0x2488   : > { %4667 = vst.msk [vmem:[%s7082_s3 + $0x7] sm:$0xff] %vm1470_vm0, %v4660_v14  ;;  %v4681_v9 = vsub.f32 %v4660_v14, %v4676_v24 }
0x248a   : > { %v4686_v23 = vmul.f32 %v4681_v9, %v4681_v9 }
0x248c   : > { %v4703_v45 = vmul.f32 %v4698_v27, %v4686_v23 }
0x248d   : > { %v4662_v30 = vpop.f32.mrf.mxu1 }
0x248e   : > { %v4663_v8 = vadd.f32 %v5417_v5, %v4662_v30  ;;  %v4710_v19 = vrot.slane %v4703_v45, 1 }
0x2490   : > { %4669 = vst.msk [vmem:[%s7082_s3 + $0xf] sm:$0x1] %vm4668_vm8, %v4663_v8  ;;  %v4682_v33 = vsub.f32 %v4663_v8, %v4675_v12  ;;  %v4711_v36 = vsel %vm4708_vm4, %v4709_v35, %v4710_v19 }
0x2491   : > { %v4716_v41 = vsel %vm1470_vm0, %v4711_v36, 0.0 }
0x2492   : > { %v4687_v4 = vmul.f32 %v4682_v33, %v4682_v33 }
0x2494   : > { %v4704_v18 = vmul.f32 %v4697_v16, %v4687_v4 }
0x2496   : > { %v4712_v53 = vrot.slane %v4704_v18, 1 }
0x2498   : > { %v4713_v39 = vsel %vm4708_vm4, %v4710_v19, %v4712_v53 }
0x2499   : > { %v4717_v59 = vsel %vm1470_vm0, %v4713_v39, 0.0 }
0x249a   : > { %v4718_v38 = vadd.f32 %v4717_v59, %v4716_v41 }
0x249c   : > { %4719 = vadd.xlane.f32.xlu2 %v4718_v38 }
0x24a4   : > { %4736 = vadd.xlane.f32.xlu2 %v4735_v7 }
0x24a5   : > { %5661 = shalt.err (!%p5658_p2)
}
0x24a6   : > { %s5758_s0 = smov 128   ;;  %s1454_s28 = scalar_lea.vmem %s5987_s13, %s6070_s11  ;;  %vm4730_vm0 = vcmask 0  }
0x24a7   : > { %5234 = dma.vmem_to_hbm [thread:$0]  (%p6032_p5), %s4767_s18, 256, %s4769_s9, %s4748_s16, %s5758_s0, %s5758_s0, %s7259_s8  }
0x24a8   : > { %s1457_s1 = scalar_lea.vmem %s5992_s27, %s6070_s11 }
0x250f   : > { %v4720_v20 = vpop.xlane.xlu2 %4719 }
0x2510   : > { %v4721_v42 = vrot.slane %v4720_v20, 4 }
0x2512   : > { %v4722_v37 = vadd.f32 %v4721_v42, %v4720_v20 }
0x2514   : > { %v4723_v43 = vrot.slane %v4722_v37, 2 }
0x2516   : > { %v4724_v25 = vadd.f32 %v4723_v43, %v4722_v37 }
0x2517   : > { %v4737_v57 = vpop.xlane.xlu2 %4736 }
0x2518   : > { %v4725_v40 = vrot.slane %v4724_v25, 1  ;;  %v4738_v28 = vrot.slane %v4737_v57, 4 }
0x251a   : > { %v4726_v31 = vadd.f32 %v4725_v40, %v4724_v25  ;;  %v4739_v61 = vadd.f32 %v4738_v28, %v4737_v57 }
0x251c   : > { %5226 = vpush %v4726_v31  ;;  %v4740_v34 = vrot.slane %v4739_v61, 2 }
0x251e   : > { %v4741_v44 = vadd.f32 %v4740_v34, %v4739_v61 }
0x2520   : > { %v4742_v17 = vrot.slane %v4741_v44, 1 }
0x2522   : > { %v4743_v48 = vadd.f32 %v4742_v17, %v4741_v44 }
0x2524   : > { %5228 = vpush %v4743_v48 }
0x254d   : > { %s5227_s8 = spop %5226 }
0x254e   : > { %v4728_v49 = vstv %s5227_s8 }
0x254f   : > { %v4729_v22 = vmul.f32 0.020833334, %v4728_v49 }
0x2551   : > { %4731 = vst.msk [vmem:[%s1454_s28] sm:$0x1] %vm4730_vm0, %v4729_v22 }
0x2555   : > { %s5229_s6 = spop %5228 }
0x2556   : > { %v4745_v46 = vstv %s5229_s6 }
0x2557   : > { %4746 = vst.msk [vmem:[%s1457_s1] sm:$0x1] %vm4730_vm0, %v4745_v46 }
0x2558 PF: > { %p5246_p5 = scmp.ge.s32.totalorder %s5700_s15, 2  ;;  %s4789_s2 = sand.u32 1, %s5688_s7  }
0x2559   : > { %s4790_s3 = scalar_lea.sflag [#allocation4], %s4789_s2 }
0x255a   : > { %p5241_p3 = pnand %p5246_p5, %p6036_p6 }
0x255c   : > { %p5242_p4 = pneg %p5241_p3 }
0x255e   : > { %5683 = dma.done.wait (%p5242_p4), %s4790_s3, 256  }
0x255f   : > { %5685 = vsyncadd (%p5242_p4), %s4790_s3, 4294967040  ;;  %s7288_s15 = sld [smem:[#allocation51_spill]]  ;;  %s7291_s7 = smov %s5692_s10 }
0x2560   : > { %s7289_s18 = sld [smem:[#allocation50_spill]] }
0x2561   : > { %s7290_s11 = sld [smem:[#allocation52_spill]] }
0x2565   : > { %p103_p7 = scmp.ge.s32.totalorder %s7288_s15, 4  }
0x2566   : > { %s7292_s10 = smov %s7289_s18 }
0x2567   :  { %105 = sbr.rel (!%p103_p7) target bundleno = 104 (0x68), region = 337 }
0x256c   :  { %4808 = vsyncpa [#allocation3], 1 }
0x256d   :  { %4810 = vsyncpa [#allocation3 + $0x1], 1 }
0x256e   :  { %4811 = vsyncpa [#allocation4], 1 }
0x256f   :  { %4813 = vsyncpa [#allocation4 + $0x1], 1 }

</bundles_post_ra>
